<compile_context>
chip_gen: v7x
topology: tpu7x:2x2x1
jax: 0.10.0
libtpu: 0.0.40
codegen_flags: <defaults>
</compile_context>

<pallas_src>
import jax
import jax.numpy as jnp
from jax.experimental import pallas as pl
from jax.experimental.pallas import tpu as pltpu


# --------------------------- ConvTranspose2d(k=2, s=2) ---------------------------

def _convt_kernel(x_ref, w0_ref, w1_ref, b_ref, o_ref):
    # x_ref: (1, 1, W, Cin) -> one input image row
    # w{0,1}_ref: (Cin, 2*Cup) columns ordered (dw, cout) for dh = 0 / 1
    # o_ref: (1, 1, 2, W, 2*Cup) -> output rows 2i and 2i+1, columns (j, dw, c)
    x = x_ref[0, 0, :, :]                                    # (W, Cin)
    b = b_ref[...]                                           # (1, 2*Cup)
    o_ref[0, 0, 0, :, :] = jnp.dot(x, w0_ref[...], preferred_element_type=jnp.float32) + b
    o_ref[0, 0, 1, :, :] = jnp.dot(x, w1_ref[...], preferred_element_type=jnp.float32) + b


def conv_transpose_2x2(x, wt, bt):
    """x: (N,H,W,Cin) NHWC; wt: (Cin, Cup, 2, 2) torch layout; bt: (Cup,).
    Returns (N, 2H, 2W, Cup)."""
    N, H, W, Cin = x.shape
    Cup = wt.shape[1]
    # B_dh[ci, dw*Cup + c] = wt[ci, c, dh, dw]
    w_dh0 = jnp.transpose(wt[:, :, 0, :], (0, 2, 1)).reshape(Cin, 2 * Cup)
    w_dh1 = jnp.transpose(wt[:, :, 1, :], (0, 2, 1)).reshape(Cin, 2 * Cup)
    bias = jnp.tile(bt, 2).reshape(1, 2 * Cup)

    y = pl.pallas_call(
        _convt_kernel,
        out_shape=jax.ShapeDtypeStruct((N, H, 2, W, 2 * Cup), jnp.float32),
        grid=(N, H),
        in_specs=[
            pl.BlockSpec((1, 1, W, Cin), lambda n, i: (n, i, 0, 0)),
            pl.BlockSpec((Cin, 2 * Cup), lambda n, i: (0, 0)),
            pl.BlockSpec((Cin, 2 * Cup), lambda n, i: (0, 0)),
            pl.BlockSpec((1, 2 * Cup), lambda n, i: (0, 0)),
        ],
        out_specs=pl.BlockSpec((1, 1, 2, W, 2 * Cup), lambda n, i: (n, i, 0, 0, 0)),
        compiler_params=pltpu.CompilerParams(
            dimension_semantics=("parallel", "parallel")),
    )(x, w_dh0, w_dh1, bias)
    # (N, H, 2, W, 2*Cup) -> (N, 2H, 2W, Cup): contiguous row-major reshape, no transpose.
    return y.reshape(N, 2 * H, 2 * W, Cup)


# ------------------- fused DoubleConv on (up, skip) without concat -------------------

def _make_doubleconv_kernel(H, W, C1, C2, Cm, Co):
    def kernel(up_ref, sk_ref, w1u_ref, w1s_ref, b1_ref, w2_ref, b2_ref,
               o_ref, up_pad, sk_pad, mid_pad):
        # Build zero halos in VMEM scratch (no HBM pad / im2col / concat).
        up_pad[...] = jnp.zeros_like(up_pad)
        sk_pad[...] = jnp.zeros_like(sk_pad)
        up_pad[1:H + 1, 1:W + 1, :] = up_ref[0, :, :, :]
        sk_pad[1:H + 1, 1:W + 1, :] = sk_ref[0, :, :, :]

        # conv1: 9 shifted accumulating dots over BOTH channel groups (fused concat).
        acc = jnp.zeros((H * W, Cm), jnp.float32)
        for kh in range(3):
            for kw in range(3):
                acc += jnp.dot(
                    up_pad[kh:kh + H, kw:kw + W, :].reshape(H * W, C1),
                    w1u_ref[kh, kw, :, :], preferred_element_type=jnp.float32)
                acc += jnp.dot(
                    sk_pad[kh:kh + H, kw:kw + W, :].reshape(H * W, C2),
                    w1s_ref[kh, kw, :, :], preferred_element_type=jnp.float32)
        h = jnp.maximum(acc + b1_ref[...], 0.0)              # bias + ReLU epilogue

        # Intermediate stays in VMEM; re-pad it in scratch for conv2.
        mid_pad[...] = jnp.zeros_like(mid_pad)
        mid_pad[1:H + 1, 1:W + 1, :] = h.reshape(H, W, Cm)

        acc2 = jnp.zeros((H * W, Co), jnp.float32)
        for kh in range(3):
            for kw in range(3):
                acc2 += jnp.dot(
                    mid_pad[kh:kh + H, kw:kw + W, :].reshape(H * W, Cm),
                    w2_ref[kh, kw, :, :], preferred_element_type=jnp.float32)
        out = jnp.maximum(acc2 + b2_ref[...], 0.0)
        o_ref[0, :, :, :] = out.reshape(H, W, Co)
    return kernel


def double_conv_fused(up, skip, w1, b1, w2, b2):
    """up: (N,H,W,C1), skip: (N,H,W,C2); conv weights in torch layout
    w1: (Cm, C1+C2, 3, 3), w2: (Co, Cm, 3, 3). Channel order of the implicit
    concat is [up, skip] (== torch.cat([x1, x2], 1))."""
    N, H, W, C1 = up.shape
    C2 = skip.shape[-1]
    Cm = w1.shape[0]
    Co = w2.shape[0]
    w1u = jnp.transpose(w1[:, :C1], (2, 3, 1, 0))            # (3,3,C1,Cm)
    w1s = jnp.transpose(w1[:, C1:], (2, 3, 1, 0))            # (3,3,C2,Cm)
    w2t = jnp.transpose(w2, (2, 3, 1, 0))                    # (3,3,Cm,Co)

    kernel = _make_doubleconv_kernel(H, W, C1, C2, Cm, Co)
    return pl.pallas_call(
        kernel,
        out_shape=jax.ShapeDtypeStruct((N, H, W, Co), jnp.float32),
        grid=(N,),
        in_specs=[
            pl.BlockSpec((1, H, W, C1), lambda n: (n, 0, 0, 0)),
            pl.BlockSpec((1, H, W, C2), lambda n: (n, 0, 0, 0)),
            pl.BlockSpec((3, 3, C1, Cm), lambda n: (0, 0, 0, 0)),
            pl.BlockSpec((3, 3, C2, Cm), lambda n: (0, 0, 0, 0)),
            pl.BlockSpec((1, Cm), lambda n: (0, 0)),
            pl.BlockSpec((3, 3, Cm, Co), lambda n: (0, 0, 0, 0)),
            pl.BlockSpec((1, Co), lambda n: (0, 0)),
        ],
        out_specs=pl.BlockSpec((1, H, W, Co), lambda n: (n, 0, 0, 0)),
        scratch_shapes=[
            pltpu.VMEM((H + 2, W + 2, C1), jnp.float32),
            pltpu.VMEM((H + 2, W + 2, C2), jnp.float32),
            pltpu.VMEM((H + 2, W + 2, Cm), jnp.float32),
        ],
        compiler_params=pltpu.CompilerParams(dimension_semantics=("parallel",)),
    )(up, skip, w1u, w1s, b1.reshape(1, Cm), w2t, b2.reshape(1, Co))


# --------------------------------- forward pass ---------------------------------

def upsample_forward(x1_nchw, x2_nchw, p):
    """UpSample.forward(x1, x2): x1 = convT(x1); x = cat([x1, x2], ch); DoubleConv(x)."""
    x1 = jnp.transpose(x1_nchw, (0, 2, 3, 1)).astype(jnp.float32)   # NHWC
    x2 = jnp.transpose(x2_nchw, (0, 2, 3, 1)).astype(jnp.float32)
    up = conv_transpose_2x2(x1, p["wt"], p["bt"])                   # Pallas
    y = double_conv_fused(up, x2, p["w1"], p["b1"], p["w2"], p["b2"])  # Pallas (fused)
    return jnp.transpose(y, (0, 3, 1, 2))                           # back to NCHW


# ------------------------------ pure-JAX reference ------------------------------

def upsample_reference(x1_nchw, x2_nchw, p):
    x1 = jnp.transpose(x1_nchw, (0, 2, 3, 1)).astype(jnp.float32)
    x2 = jnp.transpose(x2_nchw, (0, 2, 3, 1)).astype(jnp.float32)
    up = jnp.einsum('nijc,cohw->nihjwo', x1, p["wt"],
                    precision=jax.lax.Precision.HIGHEST)
    N, H1, _, W1, _, Cup = up.shape
    up = up.reshape(N, 2 * H1, 2 * W1, Cup) + p["bt"]
    x = jnp.concatenate([up, x2], axis=-1)

    def conv3x3(x, w, b):
        wh = jnp.transpose(w, (2, 3, 1, 0))                  # HWIO
        y = jax.lax.conv_general_dilated(
            x, wh, (1, 1), "SAME",
            dimension_numbers=("NHWC", "HWIO", "NHWC"),
            precision=jax.lax.Precision.HIGHEST)
        return jnp.maximum(y + b, 0.0)

    x = conv3x3(x, p["w1"], p["b1"])
    x = conv3x3(x, p["w2"], p["b2"])
    return jnp.transpose(x, (0, 3, 1, 2))


# ---------------------------------- parameters ----------------------------------

def init_params(key, in_ch, out_ch):
    ks = jax.random.split(key, 6)
    cup = in_ch // 2
    wt = jax.random.normal(ks[0], (in_ch, cup, 2, 2), jnp.float32) / jnp.sqrt(4.0 * in_ch)
    bt = 0.05 * jax.random.normal(ks[1], (cup,), jnp.float32)
    w1 = jax.random.normal(ks[2], (out_ch, in_ch, 3, 3), jnp.float32) / jnp.sqrt(9.0 * in_ch)
    b1 = 0.05 * jax.random.normal(ks[3], (out_ch,), jnp.float32)
    w2 = jax.random.normal(ks[4], (out_ch, out_ch, 3, 3), jnp.float32) / jnp.sqrt(9.0 * out_ch)
    b2 = 0.05 * jax.random.normal(ks[5], (out_ch,), jnp.float32)
    return {"wt": wt, "bt": bt, "w1": w1, "b1": b1, "w2": w2, "b2": b2}


# ------------------------------------- main --------------------------------------

if __name__ == "__main__":
    key = jax.random.PRNGKey(0)
    kp, k1, k2 = jax.random.split(key, 3)

    in_channels, out_channels = 64, 32
    N, H1, W1 = 2, 8, 8                      # x1 spatial; x2 is 2x larger (UNet skip)

    params = init_params(kp, in_channels, out_channels)
    x1 = jax.random.normal(k1, (N, in_channels, H1, W1), jnp.float32)
    x2 = jax.random.normal(k2, (N, in_channels // 2, 2 * H1, 2 * W1), jnp.float32)

    fwd = jax.jit(upsample_forward)
    y = jax.block_until_ready(fwd(x1, x2, params))

    assert y.shape == (N, out_channels, 2 * H1, 2 * W1), y.shape
    assert bool(jnp.all(jnp.isfinite(y)))

    y_ref = jax.block_until_ready(upsample_reference(x1, x2, params))
    max_err = float(jnp.max(jnp.abs(y - y_ref)))
    assert jnp.allclose(y, y_ref, atol=1e-2, rtol=1e-2), max_err

    print("KERNEL_OK")
</pallas_src>

<mosaic_0001>
module attributes {stable_mosaic.version = 11 : i64} {
  func.func @_convt_kernel(%arg0: i32, %arg1: i32, %arg2: memref<1x1x8x64xf32, #tpu.memory_space<vmem>>, %arg3: memref<64x64xf32, #tpu.memory_space<vmem>>, %arg4: memref<64x64xf32, #tpu.memory_space<vmem>>, %arg5: memref<1x64xf32, #tpu.memory_space<vmem>>, %arg6: memref<1x1x2x8x64xf32, #tpu.memory_space<vmem>>) attributes {dimension_semantics = [#tpu.dimension_semantics<parallel>, #tpu.dimension_semantics<parallel>], iteration_bounds = array<i64: 2, 8>, scalar_prefetch = 0 : i64, scratch_operands = 0 : i64, tpu.core_type = #tpu.core_type<tc>, window_params = [{transform_indices = @transform_0, window_bounds = array<i64: 1, 1, 8, 64>}, {pipeline_mode = #tpu.pipeline_mode<synchronous>, transform_indices = @transform_1, window_bounds = array<i64: 64, 64>}, {pipeline_mode = #tpu.pipeline_mode<synchronous>, transform_indices = @transform_2, window_bounds = array<i64: 64, 64>}, {pipeline_mode = #tpu.pipeline_mode<synchronous>, transform_indices = @transform_3, window_bounds = array<i64: 1, 64>}, {transform_indices = @transform_4, window_bounds = array<i64: 1, 1, 2, 8, 64>}]} {
    %c0 = arith.constant 0 : index
    %c0_0 = arith.constant 0 : index
    %c0_1 = arith.constant 0 : index
    %c0_2 = arith.constant 0 : index
    %0 = vector.load %arg2[%c0, %c0_0, %c0_1, %c0_2] : memref<1x1x8x64xf32, #tpu.memory_space<vmem>>, vector<1x1x8x64xf32>
    %1 = vector.shape_cast %0 : vector<1x1x8x64xf32> to vector<8x64xf32>
    %c0_3 = arith.constant 0 : index
    %c0_4 = arith.constant 0 : index
    %2 = vector.load %arg5[%c0_3, %c0_4] : memref<1x64xf32, #tpu.memory_space<vmem>>, vector<1x64xf32>
    %c0_5 = arith.constant 0 : index
    %c0_6 = arith.constant 0 : index
    %3 = vector.load %arg3[%c0_5, %c0_6] : memref<64x64xf32, #tpu.memory_space<vmem>>, vector<64x64xf32>
    %cst = arith.constant dense<0.000000e+00> : vector<8x64xf32>
    %4 = tpu.matmul %1, %3, %cst {dimension_numbers = #tpu.dot_dimension_numbers<[1], [0], [0], [1], [0, 0, 1, 1], [], []>} : vector<8x64xf32>, vector<64x64xf32>, vector<8x64xf32> -> vector<8x64xf32>
    %5 = vector.broadcast %2 : vector<1x64xf32> to vector<8x64xf32>
    %6 = arith.addf %4, %5 : vector<8x64xf32>
    %c0_7 = arith.constant 0 : index
    %c0_8 = arith.constant 0 : index
    %c0_9 = arith.constant 0 : index
    %c0_10 = arith.constant 0 : index
    %c0_11 = arith.constant 0 : index
    %7 = vector.load %arg6[%c0_7, %c0_8, %c0_9, %c0_10, %c0_11] : memref<1x1x2x8x64xf32, #tpu.memory_space<vmem>>, vector<1x1x1x8x64xf32>
    %8 = vector.shape_cast %7 : vector<1x1x1x8x64xf32> to vector<8x64xf32>
    %9 = vector.shape_cast %6 : vector<8x64xf32> to vector<1x1x1x8x64xf32>
    tpu.vector_store %arg6[%c0_7, %c0_8, %c0_9, %c0_10, %c0_11], %9 {strides = array<i32>} : memref<1x1x2x8x64xf32, #tpu.memory_space<vmem>>, vector<1x1x1x8x64xf32>,
    %c0_12 = arith.constant 0 : index
    %c0_13 = arith.constant 0 : index
    %10 = vector.load %arg4[%c0_12, %c0_13] : memref<64x64xf32, #tpu.memory_space<vmem>>, vector<64x64xf32>
    %cst_14 = arith.constant dense<0.000000e+00> : vector<8x64xf32>
    %11 = tpu.matmul %1, %10, %cst_14 {dimension_numbers = #tpu.dot_dimension_numbers<[1], [0], [0], [1], [0, 0, 1, 1], [], []>} : vector<8x64xf32>, vector<64x64xf32>, vector<8x64xf32> -> vector<8x64xf32>
    %12 = vector.broadcast %2 : vector<1x64xf32> to vector<8x64xf32>
    %13 = arith.addf %11, %12 : vector<8x64xf32>
    %c0_15 = arith.constant 0 : index
    %c0_16 = arith.constant 0 : index
    %c1 = arith.constant 1 : index
    %c0_17 = arith.constant 0 : index
    %c0_18 = arith.constant 0 : index
    %14 = vector.load %arg6[%c0_15, %c0_16, %c1, %c0_17, %c0_18] : memref<1x1x2x8x64xf32, #tpu.memory_space<vmem>>, vector<1x1x1x8x64xf32>
    %15 = vector.shape_cast %14 : vector<1x1x1x8x64xf32> to vector<8x64xf32>
    %16 = vector.shape_cast %13 : vector<8x64xf32> to vector<1x1x1x8x64xf32>
    tpu.vector_store %arg6[%c0_15, %c0_16, %c1, %c0_17, %c0_18], %16 {strides = array<i32>} : memref<1x1x2x8x64xf32, #tpu.memory_space<vmem>>, vector<1x1x1x8x64xf32>,
    return
  }
  func.func @transform_0(%arg0: i32, %arg1: i32) -> (i32, i32, i32, i32) {
    %c0_i32 = arith.constant 0 : i32
    %c0_i32_0 = arith.constant 0 : i32
    %c0_i32_1 = arith.constant 0 : i32
    return %arg0, %arg1, %c0_i32, %c0_i32_0 : i32, i32, i32, i32
  }
  func.func @transform_1(%arg0: i32, %arg1: i32) -> (i32, i32) {
    %c0_i32 = arith.constant 0 : i32
    %c0_i32_0 = arith.constant 0 : i32
    %c0_i32_1 = arith.constant 0 : i32
    return %c0_i32, %c0_i32_0 : i32, i32
  }
  func.func @transform_2(%arg0: i32, %arg1: i32) -> (i32, i32) {
    %c0_i32 = arith.constant 0 : i32
    %c0_i32_0 = arith.constant 0 : i32
    %c0_i32_1 = arith.constant 0 : i32
    return %c0_i32, %c0_i32_0 : i32, i32
  }
  func.func @transform_3(%arg0: i32, %arg1: i32) -> (i32, i32) {
    %c0_i32 = arith.constant 0 : i32
    %c0_i32_0 = arith.constant 0 : i32
    %c0_i32_1 = arith.constant 0 : i32
    return %c0_i32, %c0_i32_0 : i32, i32
  }
  func.func @transform_4(%arg0: i32, %arg1: i32) -> (i32, i32, i32, i32, i32) {
    %c0_i32 = arith.constant 0 : i32
    %c0_i32_0 = arith.constant 0 : i32
    %c0_i32_1 = arith.constant 0 : i32
    %c0_i32_2 = arith.constant 0 : i32
    return %arg0, %arg1, %c0_i32, %c0_i32_0, %c0_i32_1 : i32, i32, i32, i32, i32
  }
}

module attributes {stable_mosaic.version = 11 : i64} {
  func.func @kernel(%arg0: i32, %arg1: memref<1x16x16x32xf32, #tpu.memory_space<vmem>>, %arg2: memref<1x16x16x32xf32, #tpu.memory_space<vmem>>, %arg3: memref<3x3x32x32xf32, #tpu.memory_space<vmem>>, %arg4: memref<3x3x32x32xf32, #tpu.memory_space<vmem>>, %arg5: memref<1x32xf32, #tpu.memory_space<vmem>>, %arg6: memref<3x3x32x32xf32, #tpu.memory_space<vmem>>, %arg7: memref<1x32xf32, #tpu.memory_space<vmem>>, %arg8: memref<1x16x16x32xf32, #tpu.memory_space<vmem>>, %arg9: memref<18x18x32xf32, #tpu.memory_space<vmem>>, %arg10: memref<18x18x32xf32, #tpu.memory_space<vmem>>, %arg11: memref<18x18x32xf32, #tpu.memory_space<vmem>>) attributes {dimension_semantics = [#tpu.dimension_semantics<parallel>], iteration_bounds = array<i64: 2>, scalar_prefetch = 0 : i64, scratch_operands = 3 : i64, tpu.core_type = #tpu.core_type<tc>, window_params = [{transform_indices = @transform_0, window_bounds = array<i64: 1, 16, 16, 32>}, {transform_indices = @transform_1, window_bounds = array<i64: 1, 16, 16, 32>}, {pipeline_mode = #tpu.pipeline_mode<synchronous>, transform_indices = @transform_2, window_bounds = array<i64: 3, 3, 32, 32>}, {pipeline_mode = #tpu.pipeline_mode<synchronous>, transform_indices = @transform_3, window_bounds = array<i64: 3, 3, 32, 32>}, {pipeline_mode = #tpu.pipeline_mode<synchronous>, transform_indices = @transform_4, window_bounds = array<i64: 1, 32>}, {pipeline_mode = #tpu.pipeline_mode<synchronous>, transform_indices = @transform_5, window_bounds = array<i64: 3, 3, 32, 32>}, {pipeline_mode = #tpu.pipeline_mode<synchronous>, transform_indices = @transform_6, window_bounds = array<i64: 1, 32>}, {transform_indices = @transform_7, window_bounds = array<i64: 1, 16, 16, 32>}]} {
    %cst = arith.constant 0.000000e+00 : f32
    %0 = vector.broadcast %cst : f32 to vector<18x18x32xf32>
    %c0 = arith.constant 0 : index
    %c0_0 = arith.constant 0 : index
    %c0_1 = arith.constant 0 : index
    %1 = vector.load %arg9[%c0, %c0_0, %c0_1] : memref<18x18x32xf32, #tpu.memory_space<vmem>>, vector<18x18x32xf32>
    tpu.vector_store %arg9[%c0, %c0_0, %c0_1], %0 {strides = array<i32>} : memref<18x18x32xf32, #tpu.memory_space<vmem>>, vector<18x18x32xf32>,
    %cst_2 = arith.constant 0.000000e+00 : f32
    %2 = vector.broadcast %cst_2 : f32 to vector<18x18x32xf32>
    %c0_3 = arith.constant 0 : index
    %c0_4 = arith.constant 0 : index
    %c0_5 = arith.constant 0 : index
    %3 = vector.load %arg10[%c0_3, %c0_4, %c0_5] : memref<18x18x32xf32, #tpu.memory_space<vmem>>, vector<18x18x32xf32>
    tpu.vector_store %arg10[%c0_3, %c0_4, %c0_5], %2 {strides = array<i32>} : memref<18x18x32xf32, #tpu.memory_space<vmem>>, vector<18x18x32xf32>,
    %c0_6 = arith.constant 0 : index
    %c0_7 = arith.constant 0 : index
    %c0_8 = arith.constant 0 : index
    %c0_9 = arith.constant 0 : index
    %4 = vector.load %arg1[%c0_6, %c0_7, %c0_8, %c0_9] : memref<1x16x16x32xf32, #tpu.memory_space<vmem>>, vector<1x16x16x32xf32>
    %5 = vector.shape_cast %4 : vector<1x16x16x32xf32> to vector<16x16x32xf32>
    %c1 = arith.constant 1 : index
    %c1_10 = arith.constant 1 : index
    %c0_11 = arith.constant 0 : index
    %6 = vector.load %arg9[%c1, %c1_10, %c0_11] : memref<18x18x32xf32, #tpu.memory_space<vmem>>, vector<16x16x32xf32>
    tpu.vector_store %arg9[%c1, %c1_10, %c0_11], %5 {strides = array<i32>} : memref<18x18x32xf32, #tpu.memory_space<vmem>>, vector<16x16x32xf32>,
    %c0_12 = arith.constant 0 : index
    %c0_13 = arith.constant 0 : index
    %c0_14 = arith.constant 0 : index
    %c0_15 = arith.constant 0 : index
    %7 = vector.load %arg2[%c0_12, %c0_13, %c0_14, %c0_15] : memref<1x16x16x32xf32, #tpu.memory_space<vmem>>, vector<1x16x16x32xf32>
    %8 = vector.shape_cast %7 : vector<1x16x16x32xf32> to vector<16x16x32xf32>
    %c1_16 = arith.constant 1 : index
    %c1_17 = arith.constant 1 : index
    %c0_18 = arith.constant 0 : index
    %9 = vector.load %arg10[%c1_16, %c1_17, %c0_18] : memref<18x18x32xf32, #tpu.memory_space<vmem>>, vector<16x16x32xf32>
    tpu.vector_store %arg10[%c1_16, %c1_17, %c0_18], %8 {strides = array<i32>} : memref<18x18x32xf32, #tpu.memory_space<vmem>>, vector<16x16x32xf32>,
    %cst_19 = arith.constant 0.000000e+00 : f32
    %10 = vector.broadcast %cst_19 : f32 to vector<256x32xf32>
    %c0_20 = arith.constant 0 : index
    %c0_21 = arith.constant 0 : index
    %c0_22 = arith.constant 0 : index
    %11 = vector.load %arg9[%c0_20, %c0_21, %c0_22] : memref<18x18x32xf32, #tpu.memory_space<vmem>>, vector<16x16x32xf32>
    %12 = vector.shape_cast %11 : vector<16x16x32xf32> to vector<256x32xf32>
    %c0_23 = arith.constant 0 : index
    %c0_24 = arith.constant 0 : index
    %c0_25 = arith.constant 0 : index
    %c0_26 = arith.constant 0 : index
    %13 = vector.load %arg3[%c0_23, %c0_24, %c0_25, %c0_26] : memref<3x3x32x32xf32, #tpu.memory_space<vmem>>, vector<1x1x32x32xf32>
    %14 = vector.shape_cast %13 : vector<1x1x32x32xf32> to vector<32x32xf32>
    %cst_27 = arith.constant dense<0.000000e+00> : vector<256x32xf32>
    %15 = tpu.matmul %12, %14, %cst_27 {dimension_numbers = #tpu.dot_dimension_numbers<[1], [0], [0], [1], [0, 0, 1, 1], [], []>} : vector<256x32xf32>, vector<32x32xf32>, vector<256x32xf32> -> vector<256x32xf32>
    %16 = arith.addf %10, %15 : vector<256x32xf32>
    %c0_28 = arith.constant 0 : index
    %c0_29 = arith.constant 0 : index
    %c0_30 = arith.constant 0 : index
    %17 = vector.load %arg10[%c0_28, %c0_29, %c0_30] : memref<18x18x32xf32, #tpu.memory_space<vmem>>, vector<16x16x32xf32>
    %18 = vector.shape_cast %17 : vector<16x16x32xf32> to vector<256x32xf32>
    %c0_31 = arith.constant 0 : index
    %c0_32 = arith.constant 0 : index
    %c0_33 = arith.constant 0 : index
    %c0_34 = arith.constant 0 : index
    %19 = vector.load %arg4[%c0_31, %c0_32, %c0_33, %c0_34] : memref<3x3x32x32xf32, #tpu.memory_space<vmem>>, vector<1x1x32x32xf32>
    %20 = vector.shape_cast %19 : vector<1x1x32x32xf32> to vector<32x32xf32>
    %cst_35 = arith.constant dense<0.000000e+00> : vector<256x32xf32>
    %21 = tpu.matmul %18, %20, %cst_35 {dimension_numbers = #tpu.dot_dimension_numbers<[1], [0], [0], [1], [0, 0, 1, 1], [], []>} : vector<256x32xf32>, vector<32x32xf32>, vector<256x32xf32> -> vector<256x32xf32>
    %22 = arith.addf %16, %21 : vector<256x32xf32>
    %c0_36 = arith.constant 0 : index
    %c1_37 = arith.constant 1 : index
    %c0_38 = arith.constant 0 : index
    %23 = vector.load %arg9[%c0_36, %c1_37, %c0_38] : memref<18x18x32xf32, #tpu.memory_space<vmem>>, vector<16x16x32xf32>
    %24 = vector.shape_cast %23 : vector<16x16x32xf32> to vector<256x32xf32>
    %c0_39 = arith.constant 0 : index
    %c1_40 = arith.constant 1 : index
    %c0_41 = arith.constant 0 : index
    %c0_42 = arith.constant 0 : index
    %25 = vector.load %arg3[%c0_39, %c1_40, %c0_41, %c0_42] : memref<3x3x32x32xf32, #tpu.memory_space<vmem>>, vector<1x1x32x32xf32>
    %26 = vector.shape_cast %25 : vector<1x1x32x32xf32> to vector<32x32xf32>
    %cst_43 = arith.constant dense<0.000000e+00> : vector<256x32xf32>
    %27 = tpu.matmul %24, %26, %cst_43 {dimension_numbers = #tpu.dot_dimension_numbers<[1], [0], [0], [1], [0, 0, 1, 1], [], []>} : vector<256x32xf32>, vector<32x32xf32>, vector<256x32xf32> -> vector<256x32xf32>
    %28 = arith.addf %22, %27 : vector<256x32xf32>
    %c0_44 = arith.constant 0 : index
    %c1_45 = arith.constant 1 : index
    %c0_46 = arith.constant 0 : index
    %29 = vector.load %arg10[%c0_44, %c1_45, %c0_46] : memref<18x18x32xf32, #tpu.memory_space<vmem>>, vector<16x16x32xf32>
    %30 = vector.shape_cast %29 : vector<16x16x32xf32> to vector<256x32xf32>
    %c0_47 = arith.constant 0 : index
    %c1_48 = arith.constant 1 : index
    %c0_49 = arith.constant 0 : index
    %c0_50 = arith.constant 0 : index
    %31 = vector.load %arg4[%c0_47, %c1_48, %c0_49, %c0_50] : memref<3x3x32x32xf32, #tpu.memory_space<vmem>>, vector<1x1x32x32xf32>
    %32 = vector.shape_cast %31 : vector<1x1x32x32xf32> to vector<32x32xf32>
    %cst_51 = arith.constant dense<0.000000e+00> : vector<256x32xf32>
    %33 = tpu.matmul %30, %32, %cst_51 {dimension_numbers = #tpu.dot_dimension_numbers<[1], [0], [0], [1], [0, 0, 1, 1], [], []>} : vector<256x32xf32>, vector<32x32xf32>, vector<256x32xf32> -> vector<256x32xf32>
    %34 = arith.addf %28, %33 : vector<256x32xf32>
    %c0_52 = arith.constant 0 : index
    %c2 = arith.constant 2 : index
    %c0_53 = arith.constant 0 : index
    %35 = vector.load %arg9[%c0_52, %c2, %c0_53] : memref<18x18x32xf32, #tpu.memory_space<vmem>>, vector<16x16x32xf32>
    %36 = vector.shape_cast %35 : vector<16x16x32xf32> to vector<256x32xf32>
    %c0_54 = arith.constant 0 : index
    %c2_55 = arith.constant 2 : index
    %c0_56 = arith.constant 0 : index
    %c0_57 = arith.constant 0 : index
    %37 = vector.load %arg3[%c0_54, %c2_55, %c0_56, %c0_57] : memref<3x3x32x32xf32, #tpu.memory_space<vmem>>, vector<1x1x32x32xf32>
    %38 = vector.shape_cast %37 : vector<1x1x32x32xf32> to vector<32x32xf32>
    %cst_58 = arith.constant dense<0.000000e+00> : vector<256x32xf32>
    %39 = tpu.matmul %36, %38, %cst_58 {dimension_numbers = #tpu.dot_dimension_numbers<[1], [0], [0], [1], [0, 0, 1, 1], [], []>} : vector<256x32xf32>, vector<32x32xf32>, vector<256x32xf32> -> vector<256x32xf32>
    %40 = arith.addf %34, %39 : vector<256x32xf32>
    %c0_59 = arith.constant 0 : index
    %c2_60 = arith.constant 2 : index
    %c0_61 = arith.constant 0 : index
    %41 = vector.load %arg10[%c0_59, %c2_60, %c0_61] : memref<18x18x32xf32, #tpu.memory_space<vmem>>, vector<16x16x32xf32>
    %42 = vector.shape_cast %41 : vector<16x16x32xf32> to vector<256x32xf32>
    %c0_62 = arith.constant 0 : index
    %c2_63 = arith.constant 2 : index
    %c0_64 = arith.constant 0 : index
    %c0_65 = arith.constant 0 : index
    %43 = vector.load %arg4[%c0_62, %c2_63, %c0_64, %c0_65] : memref<3x3x32x32xf32, #tpu.memory_space<vmem>>, vector<1x1x32x32xf32>
    %44 = vector.shape_cast %43 : vector<1x1x32x32xf32> to vector<32x32xf32>
    %cst_66 = arith.constant dense<0.000000e+00> : vector<256x32xf32>
    %45 = tpu.matmul %42, %44, %cst_66 {dimension_numbers = #tpu.dot_dimension_numbers<[1], [0], [0], [1], [0, 0, 1, 1], [], []>} : vector<256x32xf32>, vector<32x32xf32>, vector<256x32xf32> -> vector<256x32xf32>
    %46 = arith.addf %40, %45 : vector<256x32xf32>
    %c1_67 = arith.constant 1 : index
    %c0_68 = arith.constant 0 : index
    %c0_69 = arith.constant 0 : index
    %47 = vector.load %arg9[%c1_67, %c0_68, %c0_69] : memref<18x18x32xf32, #tpu.memory_space<vmem>>, vector<16x16x32xf32>
    %48 = vector.shape_cast %47 : vector<16x16x32xf32> to vector<256x32xf32>
    %c1_70 = arith.constant 1 : index
    %c0_71 = arith.constant 0 : index
    %c0_72 = arith.constant 0 : index
    %c0_73 = arith.constant 0 : index
    %49 = vector.load %arg3[%c1_70, %c0_71, %c0_72, %c0_73] : memref<3x3x32x32xf32, #tpu.memory_space<vmem>>, vector<1x1x32x32xf32>
    %50 = vector.shape_cast %49 : vector<1x1x32x32xf32> to vector<32x32xf32>
    %cst_74 = arith.constant dense<0.000000e+00> : vector<256x32xf32>
    %51 = tpu.matmul %48, %50, %cst_74 {dimension_numbers = #tpu.dot_dimension_numbers<[1], [0], [0], [1], [0, 0, 1, 1], [], []>} : vector<256x32xf32>, vector<32x32xf32>, vector<256x32xf32> -> vector<256x32xf32>
    %52 = arith.addf %46, %51 : vector<256x32xf32>
    %c1_75 = arith.constant 1 : index
    %c0_76 = arith.constant 0 : index
    %c0_77 = arith.constant 0 : index
    %53 = vector.load %arg10[%c1_75, %c0_76, %c0_77] : memref<18x18x32xf32, #tpu.memory_space<vmem>>, vector<16x16x32xf32>
    %54 = vector.shape_cast %53 : vector<16x16x32xf32> to vector<256x32xf32>
    %c1_78 = arith.constant 1 : index
    %c0_79 = arith.constant 0 : index
    %c0_80 = arith.constant 0 : index
    %c0_81 = arith.constant 0 : index
    %55 = vector.load %arg4[%c1_78, %c0_79, %c0_80, %c0_81] : memref<3x3x32x32xf32, #tpu.memory_space<vmem>>, vector<1x1x32x32xf32>
    %56 = vector.shape_cast %55 : vector<1x1x32x32xf32> to vector<32x32xf32>
    %cst_82 = arith.constant dense<0.000000e+00> : vector<256x32xf32>
    %57 = tpu.matmul %54, %56, %cst_82 {dimension_numbers = #tpu.dot_dimension_numbers<[1], [0], [0], [1], [0, 0, 1, 1], [], []>} : vector<256x32xf32>, vector<32x32xf32>, vector<256x32xf32> -> vector<256x32xf32>
    %58 = arith.addf %52, %57 : vector<256x32xf32>
    %c1_83 = arith.constant 1 : index
    %c1_84 = arith.constant 1 : index
    %c0_85 = arith.constant 0 : index
    %59 = vector.load %arg9[%c1_83, %c1_84, %c0_85] : memref<18x18x32xf32, #tpu.memory_space<vmem>>, vector<16x16x32xf32>
    %60 = vector.shape_cast %59 : vector<16x16x32xf32> to vector<256x32xf32>
    %c1_86 = arith.constant 1 : index
    %c1_87 = arith.constant 1 : index
    %c0_88 = arith.constant 0 : index
    %c0_89 = arith.constant 0 : index
    %61 = vector.load %arg3[%c1_86, %c1_87, %c0_88, %c0_89] : memref<3x3x32x32xf32, #tpu.memory_space<vmem>>, vector<1x1x32x32xf32>
    %62 = vector.shape_cast %61 : vector<1x1x32x32xf32> to vector<32x32xf32>
    %cst_90 = arith.constant dense<0.000000e+00> : vector<256x32xf32>
    %63 = tpu.matmul %60, %62, %cst_90 {dimension_numbers = #tpu.dot_dimension_numbers<[1], [0], [0], [1], [0, 0, 1, 1], [], []>} : vector<256x32xf32>, vector<32x32xf32>, vector<256x32xf32> -> vector<256x32xf32>
    %64 = arith.addf %58, %63 : vector<256x32xf32>
    %c1_91 = arith.constant 1 : index
    %c1_92 = arith.constant 1 : index
    %c0_93 = arith.constant 0 : index
    %65 = vector.load %arg10[%c1_91, %c1_92, %c0_93] : memref<18x18x32xf32, #tpu.memory_space<vmem>>, vector<16x16x32xf32>
    %66 = vector.shape_cast %65 : vector<16x16x32xf32> to vector<256x32xf32>
    %c1_94 = arith.constant 1 : index
    %c1_95 = arith.constant 1 : index
    %c0_96 = arith.constant 0 : index
    %c0_97 = arith.constant 0 : index
    %67 = vector.load %arg4[%c1_94, %c1_95, %c0_96, %c0_97] : memref<3x3x32x32xf32, #tpu.memory_space<vmem>>, vector<1x1x32x32xf32>
    %68 = vector.shape_cast %67 : vector<1x1x32x32xf32> to vector<32x32xf32>
    %cst_98 = arith.constant dense<0.000000e+00> : vector<256x32xf32>
    %69 = tpu.matmul %66, %68, %cst_98 {dimension_numbers = #tpu.dot_dimension_numbers<[1], [0], [0], [1], [0, 0, 1, 1], [], []>} : vector<256x32xf32>, vector<32x32xf32>, vector<256x32xf32> -> vector<256x32xf32>
    %70 = arith.addf %64, %69 : vector<256x32xf32>
    %c1_99 = arith.constant 1 : index
    %c2_100 = arith.constant 2 : index
    %c0_101 = arith.constant 0 : index
    %71 = vector.load %arg9[%c1_99, %c2_100, %c0_101] : memref<18x18x32xf32, #tpu.memory_space<vmem>>, vector<16x16x32xf32>
    %72 = vector.shape_cast %71 : vector<16x16x32xf32> to vector<256x32xf32>
    %c1_102 = arith.constant 1 : index
    %c2_103 = arith.constant 2 : index
    %c0_104 = arith.constant 0 : index
    %c0_105 = arith.constant 0 : index
    %73 = vector.load %arg3[%c1_102, %c2_103, %c0_104, %c0_105] : memref<3x3x32x32xf32, #tpu.memory_space<vmem>>, vector<1x1x32x32xf32>
    %74 = vector.shape_cast %73 : vector<1x1x32x32xf32> to vector<32x32xf32>
    %cst_106 = arith.constant dense<0.000000e+00> : vector<256x32xf32>
    %75 = tpu.matmul %72, %74, %cst_106 {dimension_numbers = #tpu.dot_dimension_numbers<[1], [0], [0], [1], [0, 0, 1, 1], [], []>} : vector<256x32xf32>, vector<32x32xf32>, vector<256x32xf32> -> vector<256x32xf32>
    %76 = arith.addf %70, %75 : vector<256x32xf32>
    %c1_107 = arith.constant 1 : index
    %c2_108 = arith.constant 2 : index
    %c0_109 = arith.constant 0 : index
    %77 = vector.load %arg10[%c1_107, %c2_108, %c0_109] : memref<18x18x32xf32, #tpu.memory_space<vmem>>, vector<16x16x32xf32>
    %78 = vector.shape_cast %77 : vector<16x16x32xf32> to vector<256x32xf32>
    %c1_110 = arith.constant 1 : index
    %c2_111 = arith.constant 2 : index
    %c0_112 = arith.constant 0 : index
    %c0_113 = arith.constant 0 : index
    %79 = vector.load %arg4[%c1_110, %c2_111, %c0_112, %c0_113] : memref<3x3x32x32xf32, #tpu.memory_space<vmem>>, vector<1x1x32x32xf32>
    %80 = vector.shape_cast %79 : vector<1x1x32x32xf32> to vector<32x32xf32>
    %cst_114 = arith.constant dense<0.000000e+00> : vector<256x32xf32>
    %81 = tpu.matmul %78, %80, %cst_114 {dimension_numbers = #tpu.dot_dimension_numbers<[1], [0], [0], [1], [0, 0, 1, 1], [], []>} : vector<256x32xf32>, vector<32x32xf32>, vector<256x32xf32> -> vector<256x32xf32>
    %82 = arith.addf %76, %81 : vector<256x32xf32>
    %c2_115 = arith.constant 2 : index
    %c0_116 = arith.constant 0 : index
    %c0_117 = arith.constant 0 : index
    %83 = vector.load %arg9[%c2_115, %c0_116, %c0_117] : memref<18x18x32xf32, #tpu.memory_space<vmem>>, vector<16x16x32xf32>
    %84 = vector.shape_cast %83 : vector<16x16x32xf32> to vector<256x32xf32>
    %c2_118 = arith.constant 2 : index
    %c0_119 = arith.constant 0 : index
    %c0_120 = arith.constant 0 : index
    %c0_121 = arith.constant 0 : index
    %85 = vector.load %arg3[%c2_118, %c0_119, %c0_120, %c0_121] : memref<3x3x32x32xf32, #tpu.memory_space<vmem>>, vector<1x1x32x32xf32>
    %86 = vector.shape_cast %85 : vector<1x1x32x32xf32> to vector<32x32xf32>
    %cst_122 = arith.constant dense<0.000000e+00> : vector<256x32xf32>
    %87 = tpu.matmul %84, %86, %cst_122 {dimension_numbers = #tpu.dot_dimension_numbers<[1], [0], [0], [1], [0, 0, 1, 1], [], []>} : vector<256x32xf32>, vector<32x32xf32>, vector<256x32xf32> -> vector<256x32xf32>
    %88 = arith.addf %82, %87 : vector<256x32xf32>
    %c2_123 = arith.constant 2 : index
    %c0_124 = arith.constant 0 : index
    %c0_125 = arith.constant 0 : index
    %89 = vector.load %arg10[%c2_123, %c0_124, %c0_125] : memref<18x18x32xf32, #tpu.memory_space<vmem>>, vector<16x16x32xf32>
    %90 = vector.shape_cast %89 : vector<16x16x32xf32> to vector<256x32xf32>
    %c2_126 = arith.constant 2 : index
    %c0_127 = arith.constant 0 : index
    %c0_128 = arith.constant 0 : index
    %c0_129 = arith.constant 0 : index
    %91 = vector.load %arg4[%c2_126, %c0_127, %c0_128, %c0_129] : memref<3x3x32x32xf32, #tpu.memory_space<vmem>>, vector<1x1x32x32xf32>
    %92 = vector.shape_cast %91 : vector<1x1x32x32xf32> to vector<32x32xf32>
    %cst_130 = arith.constant dense<0.000000e+00> : vector<256x32xf32>
    %93 = tpu.matmul %90, %92, %cst_130 {dimension_numbers = #tpu.dot_dimension_numbers<[1], [0], [0], [1], [0, 0, 1, 1], [], []>} : vector<256x32xf32>, vector<32x32xf32>, vector<256x32xf32> -> vector<256x32xf32>
    %94 = arith.addf %88, %93 : vector<256x32xf32>
    %c2_131 = arith.constant 2 : index
    %c1_132 = arith.constant 1 : index
    %c0_133 = arith.constant 0 : index
    %95 = vector.load %arg9[%c2_131, %c1_132, %c0_133] : memref<18x18x32xf32, #tpu.memory_space<vmem>>, vector<16x16x32xf32>
    %96 = vector.shape_cast %95 : vector<16x16x32xf32> to vector<256x32xf32>
    %c2_134 = arith.constant 2 : index
    %c1_135 = arith.constant 1 : index
    %c0_136 = arith.constant 0 : index
    %c0_137 = arith.constant 0 : index
    %97 = vector.load %arg3[%c2_134, %c1_135, %c0_136, %c0_137] : memref<3x3x32x32xf32, #tpu.memory_space<vmem>>, vector<1x1x32x32xf32>
    %98 = vector.shape_cast %97 : vector<1x1x32x32xf32> to vector<32x32xf32>
    %cst_138 = arith.constant dense<0.000000e+00> : vector<256x32xf32>
    %99 = tpu.matmul %96, %98, %cst_138 {dimension_numbers = #tpu.dot_dimension_numbers<[1], [0], [0], [1], [0, 0, 1, 1], [], []>} : vector<256x32xf32>, vector<32x32xf32>, vector<256x32xf32> -> vector<256x32xf32>
    %100 = arith.addf %94, %99 : vector<256x32xf32>
    %c2_139 = arith.constant 2 : index
    %c1_140 = arith.constant 1 : index
    %c0_141 = arith.constant 0 : index
    %101 = vector.load %arg10[%c2_139, %c1_140, %c0_141] : memref<18x18x32xf32, #tpu.memory_space<vmem>>, vector<16x16x32xf32>
    %102 = vector.shape_cast %101 : vector<16x16x32xf32> to vector<256x32xf32>
    %c2_142 = arith.constant 2 : index
    %c1_143 = arith.constant 1 : index
    %c0_144 = arith.constant 0 : index
    %c0_145 = arith.constant 0 : index
    %103 = vector.load %arg4[%c2_142, %c1_143, %c0_144, %c0_145] : memref<3x3x32x32xf32, #tpu.memory_space<vmem>>, vector<1x1x32x32xf32>
    %104 = vector.shape_cast %103 : vector<1x1x32x32xf32> to vector<32x32xf32>
    %cst_146 = arith.constant dense<0.000000e+00> : vector<256x32xf32>
    %105 = tpu.matmul %102, %104, %cst_146 {dimension_numbers = #tpu.dot_dimension_numbers<[1], [0], [0], [1], [0, 0, 1, 1], [], []>} : vector<256x32xf32>, vector<32x32xf32>, vector<256x32xf32> -> vector<256x32xf32>
    %106 = arith.addf %100, %105 : vector<256x32xf32>
    %c2_147 = arith.constant 2 : index
    %c2_148 = arith.constant 2 : index
    %c0_149 = arith.constant 0 : index
    %107 = vector.load %arg9[%c2_147, %c2_148, %c0_149] : memref<18x18x32xf32, #tpu.memory_space<vmem>>, vector<16x16x32xf32>
    %108 = vector.shape_cast %107 : vector<16x16x32xf32> to vector<256x32xf32>
    %c2_150 = arith.constant 2 : index
    %c2_151 = arith.constant 2 : index
    %c0_152 = arith.constant 0 : index
    %c0_153 = arith.constant 0 : index
    %109 = vector.load %arg3[%c2_150, %c2_151, %c0_152, %c0_153] : memref<3x3x32x32xf32, #tpu.memory_space<vmem>>, vector<1x1x32x32xf32>
    %110 = vector.shape_cast %109 : vector<1x1x32x32xf32> to vector<32x32xf32>
    %cst_154 = arith.constant dense<0.000000e+00> : vector<256x32xf32>
    %111 = tpu.matmul %108, %110, %cst_154 {dimension_numbers = #tpu.dot_dimension_numbers<[1], [0], [0], [1], [0, 0, 1, 1], [], []>} : vector<256x32xf32>, vector<32x32xf32>, vector<256x32xf32> -> vector<256x32xf32>
    %112 = arith.addf %106, %111 : vector<256x32xf32>
    %c2_155 = arith.constant 2 : index
    %c2_156 = arith.constant 2 : index
    %c0_157 = arith.constant 0 : index
    %113 = vector.load %arg10[%c2_155, %c2_156, %c0_157] : memref<18x18x32xf32, #tpu.memory_space<vmem>>, vector<16x16x32xf32>
    %114 = vector.shape_cast %113 : vector<16x16x32xf32> to vector<256x32xf32>
    %c2_158 = arith.constant 2 : index
    %c2_159 = arith.constant 2 : index
    %c0_160 = arith.constant 0 : index
    %c0_161 = arith.constant 0 : index
    %115 = vector.load %arg4[%c2_158, %c2_159, %c0_160, %c0_161] : memref<3x3x32x32xf32, #tpu.memory_space<vmem>>, vector<1x1x32x32xf32>
    %116 = vector.shape_cast %115 : vector<1x1x32x32xf32> to vector<32x32xf32>
    %cst_162 = arith.constant dense<0.000000e+00> : vector<256x32xf32>
    %117 = tpu.matmul %114, %116, %cst_162 {dimension_numbers = #tpu.dot_dimension_numbers<[1], [0], [0], [1], [0, 0, 1, 1], [], []>} : vector<256x32xf32>, vector<32x32xf32>, vector<256x32xf32> -> vector<256x32xf32>
    %118 = arith.addf %112, %117 : vector<256x32xf32>
    %c0_163 = arith.constant 0 : index
    %c0_164 = arith.constant 0 : index
    %119 = vector.load %arg5[%c0_163, %c0_164] : memref<1x32xf32, #tpu.memory_space<vmem>>, vector<1x32xf32>
    %120 = vector.broadcast %119 : vector<1x32xf32> to vector<256x32xf32>
    %121 = arith.addf %118, %120 : vector<256x32xf32>
    %cst_165 = arith.constant 0.000000e+00 : f32
    %122 = vector.broadcast %cst_165 : f32 to vector<256x32xf32>
    %123 = arith.maximumf %121, %122 : vector<256x32xf32>
    %cst_166 = arith.constant 0.000000e+00 : f32
    %124 = vector.broadcast %cst_166 : f32 to vector<18x18x32xf32>
    %c0_167 = arith.constant 0 : index
    %c0_168 = arith.constant 0 : index
    %c0_169 = arith.constant 0 : index
    %125 = vector.load %arg11[%c0_167, %c0_168, %c0_169] : memref<18x18x32xf32, #tpu.memory_space<vmem>>, vector<18x18x32xf32>
    tpu.vector_store %arg11[%c0_167, %c0_168, %c0_169], %124 {strides = array<i32>} : memref<18x18x32xf32, #tpu.memory_space<vmem>>, vector<18x18x32xf32>,
    %126 = vector.shape_cast %123 : vector<256x32xf32> to vector<16x16x32xf32>
    %c1_170 = arith.constant 1 : index
    %c1_171 = arith.constant 1 : index
    %c0_172 = arith.constant 0 : index
    %127 = vector.load %arg11[%c1_170, %c1_171, %c0_172] : memref<18x18x32xf32, #tpu.memory_space<vmem>>, vector<16x16x32xf32>
    tpu.vector_store %arg11[%c1_170, %c1_171, %c0_172], %126 {strides = array<i32>} : memref<18x18x32xf32, #tpu.memory_space<vmem>>, vector<16x16x32xf32>,
    %cst_173 = arith.constant 0.000000e+00 : f32
    %128 = vector.broadcast %cst_173 : f32 to vector<256x32xf32>
    %c0_174 = arith.constant 0 : index
    %c0_175 = arith.constant 0 : index
    %c0_176 = arith.constant 0 : index
    %129 = vector.load %arg11[%c0_174, %c0_175, %c0_176] : memref<18x18x32xf32, #tpu.memory_space<vmem>>, vector<16x16x32xf32>
    %130 = vector.shape_cast %129 : vector<16x16x32xf32> to vector<256x32xf32>
    %c0_177 = arith.constant 0 : index
    %c0_178 = arith.constant 0 : index
    %c0_179 = arith.constant 0 : index
    %c0_180 = arith.constant 0 : index
    %131 = vector.load %arg6[%c0_177, %c0_178, %c0_179, %c0_180] : memref<3x3x32x32xf32, #tpu.memory_space<vmem>>, vector<1x1x32x32xf32>
    %132 = vector.shape_cast %131 : vector<1x1x32x32xf32> to vector<32x32xf32>
    %cst_181 = arith.constant dense<0.000000e+00> : vector<256x32xf32>
    %133 = tpu.matmul %130, %132, %cst_181 {dimension_numbers = #tpu.dot_dimension_numbers<[1], [0], [0], [1], [0, 0, 1, 1], [], []>} : vector<256x32xf32>, vector<32x32xf32>, vector<256x32xf32> -> vector<256x32xf32>
    %134 = arith.addf %128, %133 : vector<256x32xf32>
    %c0_182 = arith.constant 0 : index
    %c1_183 = arith.constant 1 : index
    %c0_184 = arith.constant 0 : index
    %135 = vector.load %arg11[%c0_182, %c1_183, %c0_184] : memref<18x18x32xf32, #tpu.memory_space<vmem>>, vector<16x16x32xf32>
    %136 = vector.shape_cast %135 : vector<16x16x32xf32> to vector<256x32xf32>
    %c0_185 = arith.constant 0 : index
    %c1_186 = arith.constant 1 : index
    %c0_187 = arith.constant 0 : index
    %c0_188 = arith.constant 0 : index
    %137 = vector.load %arg6[%c0_185, %c1_186, %c0_187, %c0_188] : memref<3x3x32x32xf32, #tpu.memory_space<vmem>>, vector<1x1x32x32xf32>
    %138 = vector.shape_cast %137 : vector<1x1x32x32xf32> to vector<32x32xf32>
    %cst_189 = arith.constant dense<0.000000e+00> : vector<256x32xf32>
    %139 = tpu.matmul %136, %138, %cst_189 {dimension_numbers = #tpu.dot_dimension_numbers<[1], [0], [0], [1], [0, 0, 1, 1], [], []>} : vector<256x32xf32>, vector<32x32xf32>, vector<256x32xf32> -> vector<256x32xf32>
    %140 = arith.addf %134, %139 : vector<256x32xf32>
    %c0_190 = arith.constant 0 : index
    %c2_191 = arith.constant 2 : index
    %c0_192 = arith.constant 0 : index
    %141 = vector.load %arg11[%c0_190, %c2_191, %c0_192] : memref<18x18x32xf32, #tpu.memory_space<vmem>>, vector<16x16x32xf32>
    %142 = vector.shape_cast %141 : vector<16x16x32xf32> to vector<256x32xf32>
    %c0_193 = arith.constant 0 : index
    %c2_194 = arith.constant 2 : index
    %c0_195 = arith.constant 0 : index
    %c0_196 = arith.constant 0 : index
    %143 = vector.load %arg6[%c0_193, %c2_194, %c0_195, %c0_196] : memref<3x3x32x32xf32, #tpu.memory_space<vmem>>, vector<1x1x32x32xf32>
    %144 = vector.shape_cast %143 : vector<1x1x32x32xf32> to vector<32x32xf32>
    %cst_197 = arith.constant dense<0.000000e+00> : vector<256x32xf32>
    %145 = tpu.matmul %142, %144, %cst_197 {dimension_numbers = #tpu.dot_dimension_numbers<[1], [0], [0], [1], [0, 0, 1, 1], [], []>} : vector<256x32xf32>, vector<32x32xf32>, vector<256x32xf32> -> vector<256x32xf32>
    %146 = arith.addf %140, %145 : vector<256x32xf32>
    %c1_198 = arith.constant 1 : index
    %c0_199 = arith.constant 0 : index
    %c0_200 = arith.constant 0 : index
    %147 = vector.load %arg11[%c1_198, %c0_199, %c0_200] : memref<18x18x32xf32, #tpu.memory_space<vmem>>, vector<16x16x32xf32>
    %148 = vector.shape_cast %147 : vector<16x16x32xf32> to vector<256x32xf32>
    %c1_201 = arith.constant 1 : index
    %c0_202 = arith.constant 0 : index
    %c0_203 = arith.constant 0 : index
    %c0_204 = arith.constant 0 : index
    %149 = vector.load %arg6[%c1_201, %c0_202, %c0_203, %c0_204] : memref<3x3x32x32xf32, #tpu.memory_space<vmem>>, vector<1x1x32x32xf32>
    %150 = vector.shape_cast %149 : vector<1x1x32x32xf32> to vector<32x32xf32>
    %cst_205 = arith.constant dense<0.000000e+00> : vector<256x32xf32>
    %151 = tpu.matmul %148, %150, %cst_205 {dimension_numbers = #tpu.dot_dimension_numbers<[1], [0], [0], [1], [0, 0, 1, 1], [], []>} : vector<256x32xf32>, vector<32x32xf32>, vector<256x32xf32> -> vector<256x32xf32>
    %152 = arith.addf %146, %151 : vector<256x32xf32>
    %c1_206 = arith.constant 1 : index
    %c1_207 = arith.constant 1 : index
    %c0_208 = arith.constant 0 : index
    %153 = vector.load %arg11[%c1_206, %c1_207, %c0_208] : memref<18x18x32xf32, #tpu.memory_space<vmem>>, vector<16x16x32xf32>
    %154 = vector.shape_cast %153 : vector<16x16x32xf32> to vector<256x32xf32>
    %c1_209 = arith.constant 1 : index
    %c1_210 = arith.constant 1 : index
    %c0_211 = arith.constant 0 : index
    %c0_212 = arith.constant 0 : index
    %155 = vector.load %arg6[%c1_209, %c1_210, %c0_211, %c0_212] : memref<3x3x32x32xf32, #tpu.memory_space<vmem>>, vector<1x1x32x32xf32>
    %156 = vector.shape_cast %155 : vector<1x1x32x32xf32> to vector<32x32xf32>
    %cst_213 = arith.constant dense<0.000000e+00> : vector<256x32xf32>
    %157 = tpu.matmul %154, %156, %cst_213 {dimension_numbers = #tpu.dot_dimension_numbers<[1], [0], [0], [1], [0, 0, 1, 1], [], []>} : vector<256x32xf32>, vector<32x32xf32>, vector<256x32xf32> -> vector<256x32xf32>
    %158 = arith.addf %152, %157 : vector<256x32xf32>
    %c1_214 = arith.constant 1 : index
    %c2_215 = arith.constant 2 : index
    %c0_216 = arith.constant 0 : index
    %159 = vector.load %arg11[%c1_214, %c2_215, %c0_216] : memref<18x18x32xf32, #tpu.memory_space<vmem>>, vector<16x16x32xf32>
    %160 = vector.shape_cast %159 : vector<16x16x32xf32> to vector<256x32xf32>
    %c1_217 = arith.constant 1 : index
    %c2_218 = arith.constant 2 : index
    %c0_219 = arith.constant 0 : index
    %c0_220 = arith.constant 0 : index
    %161 = vector.load %arg6[%c1_217, %c2_218, %c0_219, %c0_220] : memref<3x3x32x32xf32, #tpu.memory_space<vmem>>, vector<1x1x32x32xf32>
    %162 = vector.shape_cast %161 : vector<1x1x32x32xf32> to vector<32x32xf32>
    %cst_221 = arith.constant dense<0.000000e+00> : vector<256x32xf32>
    %163 = tpu.matmul %160, %162, %cst_221 {dimension_numbers = #tpu.dot_dimension_numbers<[1], [0], [0], [1], [0, 0, 1, 1], [], []>} : vector<256x32xf32>, vector<32x32xf32>, vector<256x32xf32> -> vector<256x32xf32>
    %164 = arith.addf %158, %163 : vector<256x32xf32>
    %c2_222 = arith.constant 2 : index
    %c0_223 = arith.constant 0 : index
    %c0_224 = arith.constant 0 : index
    %165 = vector.load %arg11[%c2_222, %c0_223, %c0_224] : memref<18x18x32xf32, #tpu.memory_space<vmem>>, vector<16x16x32xf32>
    %166 = vector.shape_cast %165 : vector<16x16x32xf32> to vector<256x32xf32>
    %c2_225 = arith.constant 2 : index
    %c0_226 = arith.constant 0 : index
    %c0_227 = arith.constant 0 : index
    %c0_228 = arith.constant 0 : index
    %167 = vector.load %arg6[%c2_225, %c0_226, %c0_227, %c0_228] : memref<3x3x32x32xf32, #tpu.memory_space<vmem>>, vector<1x1x32x32xf32>
    %168 = vector.shape_cast %167 : vector<1x1x32x32xf32> to vector<32x32xf32>
    %cst_229 = arith.constant dense<0.000000e+00> : vector<256x32xf32>
    %169 = tpu.matmul %166, %168, %cst_229 {dimension_numbers = #tpu.dot_dimension_numbers<[1], [0], [0], [1], [0, 0, 1, 1], [], []>} : vector<256x32xf32>, vector<32x32xf32>, vector<256x32xf32> -> vector<256x32xf32>
    %170 = arith.addf %164, %169 : vector<256x32xf32>
    %c2_230 = arith.constant 2 : index
    %c1_231 = arith.constant 1 : index
    %c0_232 = arith.constant 0 : index
    %171 = vector.load %arg11[%c2_230, %c1_231, %c0_232] : memref<18x18x32xf32, #tpu.memory_space<vmem>>, vector<16x16x32xf32>
    %172 = vector.shape_cast %171 : vector<16x16x32xf32> to vector<256x32xf32>
    %c2_233 = arith.constant 2 : index
    %c1_234 = arith.constant 1 : index
    %c0_235 = arith.constant 0 : index
    %c0_236 = arith.constant 0 : index
    %173 = vector.load %arg6[%c2_233, %c1_234, %c0_235, %c0_236] : memref<3x3x32x32xf32, #tpu.memory_space<vmem>>, vector<1x1x32x32xf32>
    %174 = vector.shape_cast %173 : vector<1x1x32x32xf32> to vector<32x32xf32>
    %cst_237 = arith.constant dense<0.000000e+00> : vector<256x32xf32>
    %175 = tpu.matmul %172, %174, %cst_237 {dimension_numbers = #tpu.dot_dimension_numbers<[1], [0], [0], [1], [0, 0, 1, 1], [], []>} : vector<256x32xf32>, vector<32x32xf32>, vector<256x32xf32> -> vector<256x32xf32>
    %176 = arith.addf %170, %175 : vector<256x32xf32>
    %c2_238 = arith.constant 2 : index
    %c2_239 = arith.constant 2 : index
    %c0_240 = arith.constant 0 : index
    %177 = vector.load %arg11[%c2_238, %c2_239, %c0_240] : memref<18x18x32xf32, #tpu.memory_space<vmem>>, vector<16x16x32xf32>
    %178 = vector.shape_cast %177 : vector<16x16x32xf32> to vector<256x32xf32>
    %c2_241 = arith.constant 2 : index
    %c2_242 = arith.constant 2 : index
    %c0_243 = arith.constant 0 : index
    %c0_244 = arith.constant 0 : index
    %179 = vector.load %arg6[%c2_241, %c2_242, %c0_243, %c0_244] : memref<3x3x32x32xf32, #tpu.memory_space<vmem>>, vector<1x1x32x32xf32>
    %180 = vector.shape_cast %179 : vector<1x1x32x32xf32> to vector<32x32xf32>
    %cst_245 = arith.constant dense<0.000000e+00> : vector<256x32xf32>
    %181 = tpu.matmul %178, %180, %cst_245 {dimension_numbers = #tpu.dot_dimension_numbers<[1], [0], [0], [1], [0, 0, 1, 1], [], []>} : vector<256x32xf32>, vector<32x32xf32>, vector<256x32xf32> -> vector<256x32xf32>
    %182 = arith.addf %176, %181 : vector<256x32xf32>
    %c0_246 = arith.constant 0 : index
    %c0_247 = arith.constant 0 : index
    %183 = vector.load %arg7[%c0_246, %c0_247] : memref<1x32xf32, #tpu.memory_space<vmem>>, vector<1x32xf32>
    %184 = vector.broadcast %183 : vector<1x32xf32> to vector<256x32xf32>
    %185 = arith.addf %182, %184 : vector<256x32xf32>
    %cst_248 = arith.constant 0.000000e+00 : f32
    %186 = vector.broadcast %cst_248 : f32 to vector<256x32xf32>
    %187 = arith.maximumf %185, %186 : vector<256x32xf32>
    %188 = vector.shape_cast %187 : vector<256x32xf32> to vector<16x16x32xf32>
    %c0_249 = arith.constant 0 : index
    %c0_250 = arith.constant 0 : index
    %c0_251 = arith.constant 0 : index
    %c0_252 = arith.constant 0 : index
    %189 = vector.load %arg8[%c0_249, %c0_250, %c0_251, %c0_252] : memref<1x16x16x32xf32, #tpu.memory_space<vmem>>, vector<1x16x16x32xf32>
    %190 = vector.shape_cast %189 : vector<1x16x16x32xf32> to vector<16x16x32xf32>
    %191 = vector.shape_cast %188 : vector<16x16x32xf32> to vector<1x16x16x32xf32>
    tpu.vector_store %arg8[%c0_249, %c0_250, %c0_251, %c0_252], %191 {strides = array<i32>} : memref<1x16x16x32xf32, #tpu.memory_space<vmem>>, vector<1x16x16x32xf32>,
    return
  }
  func.func @transform_0(%arg0: i32) -> (i32, i32, i32, i32) {
    %c0_i32 = arith.constant 0 : i32
    %c0_i32_0 = arith.constant 0 : i32
    %c0_i32_1 = arith.constant 0 : i32
    %c0_i32_2 = arith.constant 0 : i32
    return %arg0, %c0_i32, %c0_i32_0, %c0_i32_1 : i32, i32, i32, i32
  }
  func.func @transform_1(%arg0: i32) -> (i32, i32, i32, i32) {
    %c0_i32 = arith.constant 0 : i32
    %c0_i32_0 = arith.constant 0 : i32
    %c0_i32_1 = arith.constant 0 : i32
    %c0_i32_2 = arith.constant 0 : i32
    return %arg0, %c0_i32, %c0_i32_0, %c0_i32_1 : i32, i32, i32, i32
  }
  func.func @transform_2(%arg0: i32) -> (i32, i32, i32, i32) {
    %c0_i32 = arith.constant 0 : i32
    %c0_i32_0 = arith.constant 0 : i32
    %c0_i32_1 = arith.constant 0 : i32
    %c0_i32_2 = arith.constant 0 : i32
    %c0_i32_3 = arith.constant 0 : i32
    return %c0_i32, %c0_i32_0, %c0_i32_1, %c0_i32_2 : i32, i32, i32, i32
  }
  func.func @transform_3(%arg0: i32) -> (i32, i32, i32, i32) {
    %c0_i32 = arith.constant 0 : i32
    %c0_i32_0 = arith.constant 0 : i32
    %c0_i32_1 = arith.constant 0 : i32
    %c0_i32_2 = arith.constant 0 : i32
    %c0_i32_3 = arith.constant 0 : i32
    return %c0_i32, %c0_i32_0, %c0_i32_1, %c0_i32_2 : i32, i32, i32, i32
  }
  func.func @transform_4(%arg0: i32) -> (i32, i32) {
    %c0_i32 = arith.constant 0 : i32
    %c0_i32_0 = arith.constant 0 : i32
    %c0_i32_1 = arith.constant 0 : i32
    return %c0_i32, %c0_i32_0 : i32, i32
  }
  func.func @transform_5(%arg0: i32) -> (i32, i32, i32, i32) {
    %c0_i32 = arith.constant 0 : i32
    %c0_i32_0 = arith.constant 0 : i32
    %c0_i32_1 = arith.constant 0 : i32
    %c0_i32_2 = arith.constant 0 : i32
    %c0_i32_3 = arith.constant 0 : i32
    return %c0_i32, %c0_i32_0, %c0_i32_1, %c0_i32_2 : i32, i32, i32, i32
  }
  func.func @transform_6(%arg0: i32) -> (i32, i32) {
    %c0_i32 = arith.constant 0 : i32
    %c0_i32_0 = arith.constant 0 : i32
    %c0_i32_1 = arith.constant 0 : i32
    return %c0_i32, %c0_i32_0 : i32, i32
  }
  func.func @transform_7(%arg0: i32) -> (i32, i32, i32, i32) {
    %c0_i32 = arith.constant 0 : i32
    %c0_i32_0 = arith.constant 0 : i32
    %c0_i32_1 = arith.constant 0 : i32
    %c0_i32_2 = arith.constant 0 : i32
    return %arg0, %c0_i32, %c0_i32_0, %c0_i32_1 : i32, i32, i32, i32
  }
}

</mosaic_0001>

<bundles_post_ra>
// kernel: tile.8
= control target key start
LH: loop header
LB: loop body
LE: loop exit
PB: predicated region body
PF: predicated region fallthrough
CT: control target
= control target key end

     0   :  { %s22_s0 = inlined_call_operand.vmem [shape: f32[32], index: 0, kind: input, shape index: {}]   ;;  %s23_s1 = inlined_call_operand.vmem [shape: f32[2,32], index: 1, kind: output, shape index: {}]  }
   0x1   :  { %v4_v0 = vld [vmem:[%s22_s0] ss:$0 sm:$0xff] }
   0x2   :  { %5 = vst [vmem:[%s23_s1] sm:$0x3] %v4_v0 }

// kernel: tile.9
= control target key start
LH: loop header
LB: loop body
LE: loop exit
PB: predicated region body
PF: predicated region fallthrough
CT: control target
= control target key end

     0   :  { %vm7_vm0 = vcmask 261120   ;;  %vm13_vm1 = vcmask 523520   ;;  %s39_s0 = inlined_call_operand.vmem [shape: f32[2,32], index: 0, kind: input, shape index: {}]   ;;  %s40_s1 = inlined_call_operand.vmem [shape: f32[1,64], index: 1, kind: output, shape index: {}]  }
   0x1   :  { %v4_v0 = vld [vmem:[%s39_s0] sm:$0x3]  ;;  %s22_s0 = smov 32  }
   0x2   :  { %5 = vst [vmem:[#allocation1] sm:$0x3] %v4_v0 }
   0x9   :  { %v10_v1 = vld [vmem:[#allocation1 + $0x1] sm:$0x1]   ;;  %v6_v2 = vld [vmem:[#allocation1] sm:$0x1]  }
   0xa   :  { %11 = vrot.lane.b32.xlu0 %v10_v1, %s22_s0  ;;  %8 = vst.msk [vmem:[#allocation0] sm:$0x1] %vm7_vm0, %v6_v2  }
  0x7c   :  { %v12_v3 = vpop.permute.xlu0 %11  }
  0x7d   :  { %14 = vst.msk [vmem:[#allocation0] sm:$0x1] %vm13_vm1, %v12_v3  }
  0x84   :  { %v18_v4 = vld [vmem:[#allocation0] sm:$0x1] }
  0x85   :  { %20 = vst [vmem:[%s40_s1] sm:$0x1] %v18_v4 }

// kernel: upsample_forward.2
= control target key start
LH: loop header
LB: loop body
LE: loop exit
PB: predicated region body
PF: predicated region fallthrough
CT: control target
= control target key end

     0   :  { %s701_s15 = smov 0   ;;  %s703_s16 = smov 0   ;;  %s813_s0 = inlined_call_operand.vmem [shape: f32[2,8,8,64], index: 0, kind: input, shape index: {}]   ;;  %s814_s1 = inlined_call_operand.vmem [shape: f32[64,64], index: 1, kind: input, shape index: {}]   ;;  %s815_s2 = inlined_call_operand.vmem [shape: f32[64,64], index: 2, kind: input, shape index: {}]   ;;  %s816_s3 = inlined_call_operand.vmem [shape: f32[1,64], index: 3, kind: input, shape index: {}]   ;;  %s817_s4 = inlined_call_operand.vmem [shape: f32[2,8,2,8,64], index: 4, kind: output, shape index: {}]  }
   0x1   :  { %s705_s17 = smov 0   ;;  %s707_s18 = smov 0  }
   0x2   :  { %s709_s19 = smov 0  }
   0x3 LB: > { %s23_s20 = sadd.s32 1, %s663_s17  ;;  %s26_s21 = sadd.s32 1, %s667_s18  ;;  %s671_s19 = sphi %s709_s19, %s14_s19   ;;  %s667_s18 = sphi %s707_s18, %s821_s18   ;;  %s663_s17 = sphi %s705_s17, %s820_s17   ;;  %s659_s16 = sphi %s703_s16, %s819_s16   ;;  %s655_s15 = sphi %s701_s15, %s818_s15  }
   0x4   : > { %p24_p0 = scmp.ge.s32.totalorder %s23_s20, 8  ;;  %p498_p1 = scmp.ge.s32.totalorder %s671_s19, 1 }
   0x5   : > { %p181_p2 = scmp.lt.s32.totalorder %s671_s19, 17 }
   0x6   : > { %s823_s20 = smov (%p24_p0, %s23_s20), 0  ;;  %s825_s21 = smov (!%p24_p0, %s26_s21), %s667_s18 }
   0x7   : > { %p182_p3 = pnand %p498_p1, %p181_p2  ;;  %p28_p4 = scmp.ge.s32.totalorder %s825_s21, 2 }
   0x8   : > { %v233_v0 = vld [vmem:[%s814_s1] sm:$0xff] (!%p182_p3)  ;;  %v234_v1 = vld [vmem:[%s814_s1 + $0x8] sm:$0xff] (!%p182_p3)  ;;  %v673_v3 = vmov (!%p182_p3), 0.0|0.0   ;;  %v235_v6 = vld [vmem:[%s814_s1 + $0x10] sm:$0xff] (!%p182_p3)  ;;  %p214_p5 = scmp.lt.s32.totalorder (!%p182_p3), %s659_s16, 1  ;;  %p216_p6 = scmp.lt.s32.totalorder (!%p182_p3), %s655_s15, 7 }
   0x9   : > { %s827_s21 = smov (%p28_p4, %s825_s21), 0  ;;  %185 = sbr.rel (%p182_p3) target bundleno = 243 (0xf3), region = 36 }
   0xa   : > { %v322_v2 = vld [vmem:[%s815_s2] sm:$0xff] (!%p182_p3)  ;;  %566 = vmatprep.subr.bf16.mxu0 (!%p182_p3), %v673_v3  ;;  %578 = vmatprep.subr.bf16.mxu1 (!%p182_p3), %v673_v3  ;;  %v567_v4 = vpack.c.bf16 (!%p182_p3), %v234_v1, %v233_v0  ;;  %v323_v5 = vld [vmem:[%s815_s2 + $0x8] sm:$0xff] (!%p182_p3)  ;;  %v236_v7 = vld [vmem:[%s814_s1 + $0x18] sm:$0xff] (!%p182_p3)  ;;  %vm674_vm0 = vmmov (!%p182_p3), 0   ;;  %v675_v11 = vmov (!%p182_p3), 0.0   ;;  %vm247_vm1 = vcmask (!%p182_p3), 523264  }
   0xb   : > { %v579_v8 = vpack.c.bf16 (!%p182_p3), %v323_v5, %v322_v2  ;;  %v324_v9 = vld [vmem:[%s815_s2 + $0x10] sm:$0xff] (!%p182_p3)  ;;  %v325_v10 = vld [vmem:[%s815_s2 + $0x18] sm:$0xff] (!%p182_p3)  ;;  %544 = vmatprep.mubr.msk.f32.mxu0 (!%p182_p3), %vm674_vm0, %v675_v11  ;;  %563 = vmatprep.mubr.msk.f32.mxu1 (!%p182_p3), %vm674_vm0, %v675_v11  ;;  %v570_v12 = vpack.c.bf16 (!%p182_p3), %v236_v7, %v235_v6  ;;  %v237_v14 = vld [vmem:[%s814_s1 + $0x20] sm:$0xff] (!%p182_p3) }
   0xc   : > { %568 = vmatpush3.bf16.msra.mxu0 (!%p182_p3), %v567_v4  ;;  %v582_v13 = vpack.c.bf16 (!%p182_p3), %v325_v10, %v324_v9  ;;  %v238_v15 = vld [vmem:[%s814_s1 + $0x28] sm:$0xff] (!%p182_p3)  ;;  %v326_v16 = vld [vmem:[%s815_s2 + $0x20] sm:$0xff] (!%p182_p3)  ;;  %v239_v20 = vld [vmem:[%s814_s1 + $0x30] sm:$0xff] (!%p182_p3) }
   0xd   : > { %580 = vmatpush3.bf16.msra.mxu1 (!%p182_p3), %v579_v8  ;;  %569 = vmatprep.subr.bf16.mxu0 (!%p182_p3), %v673_v3  ;;  %v327_v17 = vld [vmem:[%s815_s2 + $0x28] sm:$0xff] (!%p182_p3)  ;;  %v573_v18 = vpack.c.bf16 (!%p182_p3), %v238_v15, %v237_v14  ;;  %v240_v21 = vld [vmem:[%s814_s1 + $0x38] sm:$0xff] (!%p182_p3)  ;;  %v328_v22 = vld [vmem:[%s815_s2 + $0x30] sm:$0xff] (!%p182_p3) }
   0xe   : > { %581 = vmatprep.subr.bf16.mxu1 (!%p182_p3), %v673_v3  ;;  %v585_v19 = vpack.c.bf16 (!%p182_p3), %v327_v17, %v326_v16  ;;  %v329_v23 = vld [vmem:[%s815_s2 + $0x38] sm:$0xff] (!%p182_p3)  ;;  %v576_v24 = vpack.c.bf16 (!%p182_p3), %v240_v21, %v239_v20  ;;  %v504_v27 = vld [vmem:[%s816_s3] ss:$0 sm:$0xff] (!%p182_p3) }
   0xf   : > { %v588_v25 = vpack.c.bf16 (!%p182_p3), %v329_v23, %v328_v22 }
  0x10   : > { %s829_s16 = smov (!%p214_p5, %s659_s16), 1  ;;  %s831_s15 = smov (!%p216_p6, %s655_s15), 7  ;;  %571 = vmatpush3.bf16.msra.mxu0 %v570_v12 }
  0x11   : > { %s499_s27 = sshll.u32 %s829_s16, 3  ;;  %s502_s28 = sshll.u32 %s829_s16, 4  ;;  %583 = vmatpush3.bf16.msra.mxu1 %v582_v13  ;;  %572 = vmatprep.subr.bf16.mxu0 %v673_v3 }
  0x12   : > { %s219_s29 = sadd.s32 %s499_s27, %s831_s15  ;;  %s501_s30 = sshll.u32 %s831_s15, 1  ;;  %584 = vmatprep.subr.bf16.mxu1 %v673_v3 }
  0x13   : > { %s228_s5 = sadd.s32 %s502_s28, %s501_s30  ;;  %s500_s12 = sshll.u32 %s219_s29, 3 }
  0x14   : > { %574 = vmatpush3.bf16.msra.mxu0 %v573_v18  ;;  %s221_s22 = scalar_lea.vmem %s813_s0, %s500_s12  ;;  %s503_s23 = sshll.u32 %s228_s5, 3 }
  0x15   : > { %586 = vmatpush3.bf16.msra.mxu1 %v585_v19  ;;  %575 = vmatprep.subr.bf16.mxu0 %v673_v3  ;;  %v231_v26 = vld [vmem:[%s221_s22] sm:$0xff]  ;;  %s230_s28 = scalar_lea.vmem %s817_s4, %s503_s23 }
  0x16   : > { %587 = vmatprep.subr.bf16.mxu1 %v673_v3 }
  0x18   : > { %577 = vmatpush3.bf16.msra.mxu0 %v576_v24 }
  0x19   : > { %589 = vmatpush3.bf16.msra.mxu1 %v588_v25 }
  0x1b   : > { %545 = vmatmul.mubr.msk.f32.vlgmr.msra.gmra.mrb[0].mxu0 %vm247_vm1, %v231_v26 }
  0x1c   : > { %564 = vmatmul.mubr.msk.f32.vlgmr.msra.gmra.mrb[0].mxu1 %vm247_vm1, %v231_v26 }
  0xee   : > { %v317_v28 = vpop.f32.mrb[0].mxu0 }
  0xef   : > { %v318_v29 = vadd.f32 %v504_v27, %v317_v28  ;;  %v396_v30 = vpop.f32.mrb[0].mxu1  ;;  %v546_v31 = vpop.f32.mrb[1].mxu0 }
  0xf0   : > { %v397_v32 = vadd.f32 %v504_v27, %v396_v30  ;;  %v565_v33 = vpop.f32.mrb[1].mxu1 }
  0xf1   : > { %321 = vst.msk [vmem:[%s230_s28] sm:$0xff] %vm247_vm1, %v318_v29 }
  0xf2   : > { %507 = vst.msk [vmem:[%s230_s28 + $0x8] sm:$0xff] %vm247_vm1, %v397_v32 }
  0xf3 PF: > { %s14_s19 = sadd.s32 1, %s671_s19   ;;  %s818_s15 = smov %s663_s17 }
  0xf4   : > { %p11_p7 = scmp.ge.s32.totalorder %s14_s19, 18   ;;  %s819_s16 = smov %s667_s18 }
  0xf5   : > { %s820_s17 = smov %s823_s20  ;;  %s821_s18 = smov %s827_s21 }
  0xf6   :  { %13 = sbr.rel (!%p11_p7) target bundleno = 3 (0x3), region = 67 }

// kernel: upsample_forward.3
= control target key start
LH: loop header
LB: loop body
LE: loop exit
PB: predicated region body
PF: predicated region fallthrough
CT: control target
= control target key end

     0   :  { %12 = vsyncpa [#allocation6], 0  ;;  %s19012_s0 = inlined_call_operand.vmem [shape: f32[2,16,16,32], index: 0, kind: input, shape index: {}]   ;;  %s19013_s1 = inlined_call_operand.vmem [shape: f32[2,16,16,32], index: 1, kind: input, shape index: {}]   ;;  %s19014_s2 = inlined_call_operand.vmem [shape: f32[3,3,32,32], index: 2, kind: input, shape index: {}]   ;;  %s19015_s3 = inlined_call_operand.vmem [shape: f32[3,3,32,32], index: 3, kind: input, shape index: {}]   ;;  %s19016_s4 = inlined_call_operand.vmem [shape: f32[1,32], index: 4, kind: input, shape index: {}]   ;;  %s19017_s5 = inlined_call_operand.vmem [shape: f32[3,3,32,32], index: 5, kind: input, shape index: {}]   ;;  %s19018_s6 = inlined_call_operand.vmem [shape: f32[1,32], index: 6, kind: input, shape index: {}]   ;;  %s19019_s7 = inlined_call_operand.hbm [shape: f32[2,16,16,32], index: 7, kind: output, shape index: {}]  }
   0x1   :  { %14 = vsyncpa [#allocation6 + $0x1], 0  ;;  %s15921_s24 = smov 0   ;;  %s15923_s25 = smov 0  }
   0x2   :  { %s15925_s26 = smov 0   ;;  %s15927_s27 = smov 0  }
   0x3 LB: > { %s15942_s28 = sadd.s32 4294967295, %s15875_s27   ;;  %s11288_s29 = sadd.s32 4294967294, %s15875_s27   ;;  %s15875_s27 = sphi %s15927_s27, %s19185_s27   ;;  %s15871_s26 = sphi %s15925_s26, %s19184_s26   ;;  %s15867_s25 = sphi %s15923_s25, %s19183_s25   ;;  %s15863_s24 = sphi %s15921_s24, %s19182_s24  }
   0x4   : > { %s15946_s30 = sadd.s32 1, %s15875_s27   ;;  %s184_s8 = sadd.s32 1, %s15871_s26 }
   0x5   : > { %s181_s9 = ssub.s32 %s15875_s27, %s15946_s30  ;;  %p194_p0 = scmp.ne.s32.totalorder %s15871_s26, %s15867_s25 }
   0x6   : > { %p182_p1 = scmp.eq.s32.totalorder %s181_s9, 0  ;;  %p195_p2 = scmp.eq.s32.totalorder %s15942_s28, 1 }
   0x7   : > { %p200_p3 = scmp.ne.s32.totalorder %s15867_s25, %s15863_s24  ;;  %p201_p4 = scmp.eq.s32.totalorder %s11288_s29, 1 }
   0x8   : > { %s15957_s10 = scalar_select %p182_p1, %s15871_s26, %s184_s8  }
   0x9   : > { %p15959_p5 = por %p195_p2, %p194_p0  ;;  %p15963_p6 = por %p201_p4, %p200_p3 }
   0xa   : > { %p11291_p7 = scmp.ge.s32.totalorder %s15875_s27, 1  ;;  %p250_p8 = scmp.lt.s32.totalorder %s15875_s27, 3 }
   0xc   : > { %p251_p9 = pnand %p11291_p7, %p250_p8 }
   0xe   : > { %254 = sbr.rel (%p251_p9) target bundleno = 1936 (0x790), region = 48 }
  0x15   : > { %v11433_v0 = vld [vmem:[%s19014_s2 + $0x40] sm:$0xff]  ;;  %v11434_v1 = vld [vmem:[%s19014_s2 + $0x48] sm:$0xff]  ;;  %v15978_v2 = vld [vmem:[%s19014_s2 + $0x50] sm:$0xff]  ;;  %vm297_vm0 = vcmask 261120   ;;  %vm300_vm1 = vcmask 254976   ;;  %v15877_v5 = vmov 0.0  }
  0x16   : > { %v15980_v3 = vpack.c.bf16 %v11434_v1, %v11433_v0  ;;  %v15985_v4 = vld [vmem:[%s19014_s2 + $0x58] sm:$0xff]  ;;  %298 = vst.msk [vmem:[#allocation2] sm:$0xff] %vm297_vm0, %v15877_v5  ;;  %299 = vst.msk [vmem:[#allocation2 + $0x8] sm:$0xff] %vm297_vm0, %v15877_v5  ;;  %p287_p10 = scmp.lt.s32.totalorder %s15942_s28, 1  ;;  %v11469_v7 = vld [vmem:[%s19015_s3 + $0x40] sm:$0xff]  ;;  %s284_s16 = sand.u32 1, %s15867_s25  }
  0x17   : > { %302 = vst.msk [vmem:[#allocation2 + $0x18] sm:$0xff] %vm297_vm0, %v15877_v5  ;;  %303 = vst.msk [vmem:[#allocation2 + $0x20] sm:$0xff] %vm297_vm0, %v15877_v5  ;;  %v16314_v6 = vpack.c.bf16 %v15985_v4, %v15978_v2  ;;  %v11470_v8 = vld [vmem:[%s19015_s3 + $0x48] sm:$0xff]  ;;  %v11471_v10 = vld [vmem:[%s19015_s3 + $0x50] sm:$0xff]  ;;  %s11292_s19 = sshll.u32 %s284_s16, 8  ;;  %s12266_s21 = sshll.u32 %s15942_s28, 12 }
  0x18   : > { %305 = vst.msk [vmem:[#allocation2 + $0x30] sm:$0xff] %vm297_vm0, %v15877_v5  ;;  %306 = vst.msk [vmem:[#allocation2 + $0x38] sm:$0xff] %vm297_vm0, %v15877_v5  ;;  %14784 = vmatprep.subr.bf16.mxu0 %v15980_v3  ;;  %s16324_s8 = scalar_select %p287_p10, %s15942_s28, 1  ;;  %v14791_v9 = vpack.c.bf16 %v11470_v8, %v11469_v7  ;;  %v11472_v11 = vld [vmem:[%s19015_s3 + $0x58] sm:$0xff]  ;;  %v11505_v18 = vld [vmem:[%s19014_s2 + $0x60] sm:$0xff] }
  0x19   : > { %308 = vst.msk [vmem:[#allocation2 + $0x48] sm:$0xff] %vm297_vm0, %v15877_v5  ;;  %309 = vst.msk [vmem:[#allocation2 + $0x50] sm:$0xff] %vm297_vm0, %v15877_v5  ;;  %14786 = vmatpush3.bf16.msra.mxu0 %v15980_v3  ;;  %v11506_v19 = vld [vmem:[%s19014_s2 + $0x68] sm:$0xff]  ;;  %v14795_v23 = vpack.c.bf16 %v11472_v11, %v11471_v10  ;;  %s18864_s20 = scalar_lea.vmem [#allocation5], %s11292_s19  ;;  %s18961_s29 = scalar_lea.hbm %s19019_s7, %s12266_s21 }
  0x1a   : > { %311 = vst.msk [vmem:[#allocation2 + $0x60] sm:$0xff] %vm297_vm0, %v15877_v5  ;;  %312 = vst.msk [vmem:[#allocation2 + $0x68] sm:$0xff] %vm297_vm0, %v15877_v5  ;;  %14788 = vmatprep.subr.bf16.mxu0 %v16314_v6  ;;  %s12264_s9 = sshll.u32 %s16324_s8, 8  ;;  %v16386_v31 = vpack.c.bf16 %v11506_v19, %v11505_v18  ;;  %v11541_v18 = vld [vmem:[%s19015_s3 + $0x60] sm:$0xff]  ;;  %s18971_s28 = scalar_lea.sflag [#allocation6], %s284_s16 }
  0x1b   : > { %314 = vst.msk [vmem:[#allocation2 + $0x78] sm:$0xff] %vm297_vm0, %v15877_v5  ;;  %315 = vst.msk [vmem:[#allocation2 + $0x80] sm:$0xff] %vm297_vm0, %v15877_v5  ;;  %s16334_s15 = scalar_lea.vmem %s19012_s0, %s12264_s9  ;;  %s16372_s14 = scalar_lea.vmem %s19013_s1, %s12264_s9 }
  0x1c   : > { %317 = vst.msk [vmem:[#allocation2 + $0x90] sm:$0xff] %vm297_vm0, %v15877_v5  ;;  %318 = vst.msk [vmem:[#allocation2 + $0x98] sm:$0xff] %vm297_vm0, %v15877_v5  ;;  %v407_v12 = vld [vmem:[%s16334_s15] sm:$0xff]  ;;  %v408_v13 = vld [vmem:[%s16334_s15 + $0x8] sm:$0xff] }
  0x1d   : > { %320 = vst.msk [vmem:[#allocation2 + $0xa8] sm:$0xff] %vm297_vm0, %v15877_v5  ;;  %321 = vst.msk [vmem:[#allocation2 + $0xb0] sm:$0xff] %vm297_vm0, %v15877_v5  ;;  %v409_v14 = vld [vmem:[%s16334_s15 + $0x10] sm:$0xff]  ;;  %14790 = vmatpush3.bf16.msra.mxu0 %v16314_v6  ;;  %v2031_v15 = vld [vmem:[#allocation2 + $0x2] sm:$0xff] }
  0x1e   : > { %323 = vst.msk [vmem:[#allocation2 + $0xc0] sm:$0xff] %vm297_vm0, %v15877_v5  ;;  %324 = vst.msk [vmem:[#allocation2 + $0xc8] sm:$0xff] %vm297_vm0, %v15877_v5  ;;  %v410_v17 = vld [vmem:[%s16334_s15 + $0x18] sm:$0xff]  ;;  %13471 = vmatprep.mubr.msk.f32.mxu0 %vm297_vm0, %v2031_v15  ;;  %14792 = vmatprep.subr.bf16.mxu0 %v14791_v9  ;;  %v411_v20 = vld [vmem:[%s16334_s15 + $0x20] sm:$0xff] }
  0x1f   : > { %326 = vst.msk [vmem:[#allocation2 + $0xd8] sm:$0xff] %vm297_vm0, %v15877_v5  ;;  %327 = vst.msk [vmem:[#allocation2 + $0xe0] sm:$0xff] %vm297_vm0, %v15877_v5  ;;  %v412_v21 = vld [vmem:[%s16334_s15 + $0x28] sm:$0xff]  ;;  %v413_v22 = vld [vmem:[%s16334_s15 + $0x30] sm:$0xff] }
  0x20   : > { %329 = vst.msk [vmem:[#allocation2 + $0xf0] sm:$0xff] %vm297_vm0, %v15877_v5  ;;  %330 = vst.msk [vmem:[#allocation2 + $0xf8] sm:$0xff] %vm297_vm0, %v15877_v5  ;;  %v414_v24 = vld [vmem:[%s16334_s15 + $0x38] sm:$0xff]  ;;  %v415_v25 = vld [vmem:[%s16334_s15 + $0x40] sm:$0xff] }
  0x21   : > { %332 = vst.msk [vmem:[#allocation2 + $0x108] sm:$0xff] %vm297_vm0, %v15877_v5  ;;  %333 = vst.msk [vmem:[#allocation2 + $0x110] sm:$0xff] %vm297_vm0, %v15877_v5  ;;  %v416_v26 = vld [vmem:[%s16334_s15 + $0x48] sm:$0xff]  ;;  %v417_v27 = vld [vmem:[%s16334_s15 + $0x50] sm:$0xff] }
  0x22   : > { %335 = vst.msk [vmem:[#allocation2 + $0x120] sm:$0xff] %vm297_vm0, %v15877_v5  ;;  %336 = vst.msk [vmem:[#allocation2 + $0x128] sm:$0xff] %vm297_vm0, %v15877_v5  ;;  %v418_v28 = vld [vmem:[%s16334_s15 + $0x58] sm:$0xff]  ;;  %v419_v29 = vld [vmem:[%s16334_s15 + $0x60] sm:$0xff] }
  0x23   : > { %338 = vst.msk [vmem:[#allocation2 + $0x138] sm:$0xff] %vm297_vm0, %v15877_v5  ;;  %339 = vst.msk [vmem:[#allocation2 + $0x140] sm:$0xff] %vm297_vm0, %v15877_v5  ;;  %v420_v30 = vld [vmem:[%s16334_s15 + $0x68] sm:$0xff]  ;;  %v472_v32 = vld [vmem:[%s16372_s14] sm:$0xff] }
  0x24   : > { %341 = vst.msk [vmem:[#allocation2 + $0x150] sm:$0xff] %vm297_vm0, %v15877_v5  ;;  %342 = vst.msk [vmem:[#allocation2 + $0x158] sm:$0xff] %vm297_vm0, %v15877_v5  ;;  %v473_v33 = vld [vmem:[%s16372_s14 + $0x8] sm:$0xff]  ;;  %v474_v34 = vld [vmem:[%s16372_s14 + $0x10] sm:$0xff] }
  0x25   : > { %344 = vst.msk [vmem:[#allocation2 + $0x168] sm:$0xff] %vm297_vm0, %v15877_v5  ;;  %345 = vst.msk [vmem:[#allocation2 + $0x170] sm:$0xff] %vm297_vm0, %v15877_v5  ;;  %v475_v35 = vld [vmem:[%s16372_s14 + $0x18] sm:$0xff]  ;;  %v476_v36 = vld [vmem:[%s16372_s14 + $0x20] sm:$0xff] }
  0x26   : > { %347 = vst.msk [vmem:[#allocation2 + $0x180] sm:$0xff] %vm297_vm0, %v15877_v5  ;;  %348 = vst.msk [vmem:[#allocation2 + $0x188] sm:$0xff] %vm297_vm0, %v15877_v5  ;;  %v477_v37 = vld [vmem:[%s16372_s14 + $0x28] sm:$0xff]  ;;  %v478_v40 = vld [vmem:[%s16372_s14 + $0x30] sm:$0xff] }
  0x27   : > { %350 = vst.msk [vmem:[#allocation2 + $0x198] sm:$0xff] %vm297_vm0, %v15877_v5  ;;  %351 = vst.msk [vmem:[#allocation2 + $0x1a0] sm:$0xff] %vm297_vm0, %v15877_v5  ;;  %v479_v42 = vld [vmem:[%s16372_s14 + $0x38] sm:$0xff]  ;;  %v480_v43 = vld [vmem:[%s16372_s14 + $0x40] sm:$0xff] }
  0x28   : > { %353 = vst.msk [vmem:[#allocation3] sm:$0xff] %vm297_vm0, %v15877_v5  ;;  %354 = vst.msk [vmem:[#allocation3 + $0x8] sm:$0xff] %vm297_vm0, %v15877_v5  ;;  %v481_v46 = vld [vmem:[%s16372_s14 + $0x48] sm:$0xff]  ;;  %v482_v47 = vld [vmem:[%s16372_s14 + $0x50] sm:$0xff] }
  0x29   : > { %356 = vst.msk [vmem:[#allocation3 + $0x18] sm:$0xff] %vm297_vm0, %v15877_v5  ;;  %357 = vst.msk [vmem:[#allocation3 + $0x20] sm:$0xff] %vm297_vm0, %v15877_v5  ;;  %v483_v50 = vld [vmem:[%s16372_s14 + $0x58] sm:$0xff]  ;;  %v484_v51 = vld [vmem:[%s16372_s14 + $0x60] sm:$0xff] }
  0x2a   : > { %359 = vst.msk [vmem:[#allocation3 + $0x30] sm:$0xff] %vm297_vm0, %v15877_v5  ;;  %360 = vst.msk [vmem:[#allocation3 + $0x38] sm:$0xff] %vm297_vm0, %v15877_v5  ;;  %v485_v53 = vld [vmem:[%s16372_s14 + $0x68] sm:$0xff]  ;;  %v486_v55 = vld [vmem:[%s16372_s14 + $0x70] sm:$0xff] }
  0x2b   : > { %362 = vst.msk [vmem:[#allocation3 + $0x48] sm:$0xff] %vm297_vm0, %v15877_v5  ;;  %363 = vst.msk [vmem:[#allocation3 + $0x50] sm:$0xff] %vm297_vm0, %v15877_v5  ;;  %v487_v56 = vld [vmem:[%s16372_s14 + $0x78] sm:$0xff]  ;;  %v488_v57 = vld [vmem:[%s16372_s14 + $0x80] sm:$0xff] }
  0x2c   : > { %365 = vst.msk [vmem:[#allocation3 + $0x60] sm:$0xff] %vm297_vm0, %v15877_v5  ;;  %366 = vst.msk [vmem:[#allocation3 + $0x68] sm:$0xff] %vm297_vm0, %v15877_v5  ;;  %v489_v58 = vld [vmem:[%s16372_s14 + $0x88] sm:$0xff]  ;;  %v490_v59 = vld [vmem:[%s16372_s14 + $0x90] sm:$0xff] }
  0x2d   : > { %368 = vst.msk [vmem:[#allocation3 + $0x78] sm:$0xff] %vm297_vm0, %v15877_v5  ;;  %369 = vst.msk [vmem:[#allocation3 + $0x80] sm:$0xff] %vm297_vm0, %v15877_v5  ;;  %v491_v60 = vld [vmem:[%s16372_s14 + $0x98] sm:$0xff]  ;;  %v492_v61 = vld [vmem:[%s16372_s14 + $0xa0] sm:$0xff] }
  0x2e   : > { %371 = vst.msk [vmem:[#allocation3 + $0x90] sm:$0xff] %vm297_vm0, %v15877_v5  ;;  %372 = vst.msk [vmem:[#allocation3 + $0x98] sm:$0xff] %vm297_vm0, %v15877_v5  ;;  %v493_v62 = vld [vmem:[%s16372_s14 + $0xa8] sm:$0xff]  ;;  %v494_v63 = vld [vmem:[%s16372_s14 + $0xb0] sm:$0xff] }
  0x2f   : > { %374 = vst.msk [vmem:[#allocation3 + $0xa8] sm:$0xff] %vm297_vm0, %v15877_v5  ;;  %375 = vst.msk [vmem:[#allocation3 + $0xb0] sm:$0xff] %vm297_vm0, %v15877_v5  ;;  %v495_v1 = vld [vmem:[%s16372_s14 + $0xb8] sm:$0xff]  ;;  %v496_v2 = vld [vmem:[%s16372_s14 + $0xc0] sm:$0xff] }
  0x30   : > { %377 = vst.msk [vmem:[#allocation3 + $0xc0] sm:$0xff] %vm297_vm0, %v15877_v5  ;;  %378 = vst.msk [vmem:[#allocation3 + $0xc8] sm:$0xff] %vm297_vm0, %v15877_v5  ;;  %v497_v4 = vld [vmem:[%s16372_s14 + $0xc8] sm:$0xff]  ;;  %v499_v7 = vld [vmem:[%s16372_s14 + $0xd8] sm:$0xff] }
  0x31   : > { %380 = vst.msk [vmem:[#allocation3 + $0xd8] sm:$0xff] %vm297_vm0, %v15877_v5  ;;  %381 = vst.msk [vmem:[#allocation3 + $0xe0] sm:$0xff] %vm297_vm0, %v15877_v5  ;;  %v500_v8 = vld [vmem:[%s16372_s14 + $0xe0] sm:$0xff]  ;;  %v11507_v15 = vld [vmem:[%s19014_s2 + $0x70] sm:$0xff] }
  0x32   : > { %383 = vst.msk [vmem:[#allocation3 + $0xf0] sm:$0xff] %vm297_vm0, %v15877_v5  ;;  %384 = vst.msk [vmem:[#allocation3 + $0xf8] sm:$0xff] %vm297_vm0, %v15877_v5  ;;  %v421_v19 = vld [vmem:[%s16334_s15 + $0x70] sm:$0xff] }
  0x33   : > { %386 = vst.msk [vmem:[#allocation3 + $0x108] sm:$0xff] %vm297_vm0, %v15877_v5  ;;  %387 = vst.msk [vmem:[#allocation3 + $0x110] sm:$0xff] %vm297_vm0, %v15877_v5 }
  0x34   : > { %389 = vst.msk [vmem:[#allocation3 + $0x120] sm:$0xff] %vm297_vm0, %v15877_v5  ;;  %390 = vst.msk [vmem:[#allocation3 + $0x128] sm:$0xff] %vm297_vm0, %v15877_v5 }
  0x35   : > { %392 = vst.msk [vmem:[#allocation3 + $0x138] sm:$0xff] %vm297_vm0, %v15877_v5  ;;  %393 = vst.msk [vmem:[#allocation3 + $0x140] sm:$0xff] %vm297_vm0, %v15877_v5 }
  0x36   : > { %395 = vst.msk [vmem:[#allocation3 + $0x150] sm:$0xff] %vm297_vm0, %v15877_v5  ;;  %396 = vst.msk [vmem:[#allocation3 + $0x158] sm:$0xff] %vm297_vm0, %v15877_v5 }
  0x37   : > { %398 = vst.msk [vmem:[#allocation3 + $0x168] sm:$0xff] %vm297_vm0, %v15877_v5  ;;  %399 = vst.msk [vmem:[#allocation3 + $0x170] sm:$0xff] %vm297_vm0, %v15877_v5 }
  0x38   : > { %401 = vst.msk [vmem:[#allocation3 + $0x180] sm:$0xff] %vm297_vm0, %v15877_v5  ;;  %402 = vst.msk [vmem:[#allocation3 + $0x188] sm:$0xff] %vm297_vm0, %v15877_v5 }
  0x39   : > { %404 = vst.msk [vmem:[#allocation3 + $0x198] sm:$0xff] %vm297_vm0, %v15877_v5  ;;  %405 = vst.msk [vmem:[#allocation3 + $0x1a0] sm:$0xff] %vm297_vm0, %v15877_v5 }
  0x3a   : > { %7564 = vst.msk [vmem:[#allocation4] sm:$0xff] %vm297_vm0, %v15877_v5  ;;  %7565 = vst.msk [vmem:[#allocation4 + $0x8] sm:$0xff] %vm297_vm0, %v15877_v5 }
  0x3b   : > { %7567 = vst.msk [vmem:[#allocation4 + $0x18] sm:$0xff] %vm297_vm0, %v15877_v5  ;;  %7568 = vst.msk [vmem:[#allocation4 + $0x20] sm:$0xff] %vm297_vm0, %v15877_v5 }
  0x3c   : > { %7570 = vst.msk [vmem:[#allocation4 + $0x30] sm:$0xff] %vm297_vm0, %v15877_v5  ;;  %7571 = vst.msk [vmem:[#allocation4 + $0x38] sm:$0xff] %vm297_vm0, %v15877_v5 }
  0x3d   : > { %7573 = vst.msk [vmem:[#allocation4 + $0x48] sm:$0xff] %vm297_vm0, %v15877_v5  ;;  %7574 = vst.msk [vmem:[#allocation4 + $0x50] sm:$0xff] %vm297_vm0, %v15877_v5 }
  0x3e   : > { %7576 = vst.msk [vmem:[#allocation4 + $0x60] sm:$0xff] %vm297_vm0, %v15877_v5  ;;  %7577 = vst.msk [vmem:[#allocation4 + $0x68] sm:$0xff] %vm297_vm0, %v15877_v5 }
  0x3f   : > { %7579 = vst.msk [vmem:[#allocation4 + $0x78] sm:$0xff] %vm297_vm0, %v15877_v5  ;;  %7580 = vst.msk [vmem:[#allocation4 + $0x80] sm:$0xff] %vm297_vm0, %v15877_v5 }
  0x40   : > { %7582 = vst.msk [vmem:[#allocation4 + $0x90] sm:$0xff] %vm297_vm0, %v15877_v5  ;;  %7583 = vst.msk [vmem:[#allocation4 + $0x98] sm:$0xff] %vm297_vm0, %v15877_v5 }
  0x41   : > { %7585 = vst.msk [vmem:[#allocation4 + $0xa8] sm:$0xff] %vm297_vm0, %v15877_v5  ;;  %7586 = vst.msk [vmem:[#allocation4 + $0xb0] sm:$0xff] %vm297_vm0, %v15877_v5 }
  0x42   : > { %7588 = vst.msk [vmem:[#allocation4 + $0xc0] sm:$0xff] %vm297_vm0, %v15877_v5  ;;  %7589 = vst.msk [vmem:[#allocation4 + $0xc8] sm:$0xff] %vm297_vm0, %v15877_v5 }
  0x43   : > { %7591 = vst.msk [vmem:[#allocation4 + $0xd8] sm:$0xff] %vm297_vm0, %v15877_v5  ;;  %7592 = vst.msk [vmem:[#allocation4 + $0xe0] sm:$0xff] %vm297_vm0, %v15877_v5 }
  0x44   : > { %7594 = vst.msk [vmem:[#allocation4 + $0xf0] sm:$0xff] %vm297_vm0, %v15877_v5  ;;  %7595 = vst.msk [vmem:[#allocation4 + $0xf8] sm:$0xff] %vm297_vm0, %v15877_v5 }
  0x45   : > { %7597 = vst.msk [vmem:[#allocation4 + $0x108] sm:$0xff] %vm297_vm0, %v15877_v5  ;;  %7598 = vst.msk [vmem:[#allocation4 + $0x110] sm:$0xff] %vm297_vm0, %v15877_v5 }
  0x46   : > { %7600 = vst.msk [vmem:[#allocation4 + $0x120] sm:$0xff] %vm297_vm0, %v15877_v5  ;;  %7601 = vst.msk [vmem:[#allocation4 + $0x128] sm:$0xff] %vm297_vm0, %v15877_v5 }
  0x47   : > { %7603 = vst.msk [vmem:[#allocation4 + $0x138] sm:$0xff] %vm297_vm0, %v15877_v5  ;;  %7604 = vst.msk [vmem:[#allocation4 + $0x140] sm:$0xff] %vm297_vm0, %v15877_v5 }
  0x48   : > { %7606 = vst.msk [vmem:[#allocation4 + $0x150] sm:$0xff] %vm297_vm0, %v15877_v5  ;;  %7607 = vst.msk [vmem:[#allocation4 + $0x158] sm:$0xff] %vm297_vm0, %v15877_v5 }
  0x49   : > { %7609 = vst.msk [vmem:[#allocation4 + $0x168] sm:$0xff] %vm297_vm0, %v15877_v5  ;;  %7610 = vst.msk [vmem:[#allocation4 + $0x170] sm:$0xff] %vm297_vm0, %v15877_v5 }
  0x4a   : > { %7612 = vst.msk [vmem:[#allocation4 + $0x180] sm:$0xff] %vm297_vm0, %v15877_v5  ;;  %7613 = vst.msk [vmem:[#allocation4 + $0x188] sm:$0xff] %vm297_vm0, %v15877_v5 }
  0x4b   : > { %7615 = vst.msk [vmem:[#allocation4 + $0x198] sm:$0xff] %vm297_vm0, %v15877_v5  ;;  %7616 = vst.msk [vmem:[#allocation4 + $0x1a0] sm:$0xff] %vm297_vm0, %v15877_v5 }
  0x4c   : > { %301 = vst.msk [vmem:[#allocation2 + $0x10] sm:$0x3] %vm300_vm1, %v15877_v5  ;;  %304 = vst.msk [vmem:[#allocation2 + $0x28] sm:$0x3] %vm300_vm1, %v15877_v5 }
  0x4d   : > { %307 = vst.msk [vmem:[#allocation2 + $0x40] sm:$0x3] %vm300_vm1, %v15877_v5  ;;  %310 = vst.msk [vmem:[#allocation2 + $0x58] sm:$0x3] %vm300_vm1, %v15877_v5 }
  0x4e   : > { %313 = vst.msk [vmem:[#allocation2 + $0x70] sm:$0x3] %vm300_vm1, %v15877_v5  ;;  %316 = vst.msk [vmem:[#allocation2 + $0x88] sm:$0x3] %vm300_vm1, %v15877_v5 }
  0x4f   : > { %319 = vst.msk [vmem:[#allocation2 + $0xa0] sm:$0x3] %vm300_vm1, %v15877_v5  ;;  %322 = vst.msk [vmem:[#allocation2 + $0xb8] sm:$0x3] %vm300_vm1, %v15877_v5 }
  0x50   : > { %325 = vst.msk [vmem:[#allocation2 + $0xd0] sm:$0x3] %vm300_vm1, %v15877_v5  ;;  %328 = vst.msk [vmem:[#allocation2 + $0xe8] sm:$0x3] %vm300_vm1, %v15877_v5 }
  0x51   : > { %331 = vst.msk [vmem:[#allocation2 + $0x100] sm:$0x3] %vm300_vm1, %v15877_v5  ;;  %334 = vst.msk [vmem:[#allocation2 + $0x118] sm:$0x3] %vm300_vm1, %v15877_v5 }
  0x52   : > { %337 = vst.msk [vmem:[#allocation2 + $0x130] sm:$0x3] %vm300_vm1, %v15877_v5  ;;  %340 = vst.msk [vmem:[#allocation2 + $0x148] sm:$0x3] %vm300_vm1, %v15877_v5 }
  0x53   : > { %343 = vst.msk [vmem:[#allocation2 + $0x160] sm:$0x3] %vm300_vm1, %v15877_v5  ;;  %346 = vst.msk [vmem:[#allocation2 + $0x178] sm:$0x3] %vm300_vm1, %v15877_v5  ;;  %v2032_v16 = vld [vmem:[#allocation2 + $0xa] sm:$0xff] }
  0x54   : > { %349 = vst.msk [vmem:[#allocation2 + $0x190] sm:$0x3] %vm300_vm1, %v15877_v5  ;;  %352 = vst.msk [vmem:[#allocation2 + $0x1a8] sm:$0x3] %vm300_vm1, %v15877_v5  ;;  %13472 = vmatmul.mubr.msk.f32.vlgmr.msra.gmra.mrb[0].mxu0 %vm297_vm0, %v2032_v16  ;;  %v11508_v16 = vld [vmem:[%s19014_s2 + $0x78] sm:$0xff] }
  0x55   : > { %355 = vst.msk [vmem:[#allocation3 + $0x10] sm:$0x3] %vm300_vm1, %v15877_v5  ;;  %358 = vst.msk [vmem:[#allocation3 + $0x28] sm:$0x3] %vm300_vm1, %v15877_v5  ;;  %14794 = vmatpush3.bf16.msra.mxu0 %v14791_v9  ;;  %v501_v9 = vld [vmem:[%s16372_s14 + $0xe8] sm:$0xff] }
  0x56   : > { %361 = vst.msk [vmem:[#allocation3 + $0x40] sm:$0x3] %vm300_vm1, %v15877_v5  ;;  %364 = vst.msk [vmem:[#allocation3 + $0x58] sm:$0x3] %vm300_vm1, %v15877_v5  ;;  %14796 = vmatprep.subr.bf16.mxu0 %v14795_v23 }
  0x57   : > { %367 = vst.msk [vmem:[#allocation3 + $0x70] sm:$0x3] %vm300_vm1, %v15877_v5  ;;  %370 = vst.msk [vmem:[#allocation3 + $0x88] sm:$0x3] %vm300_vm1, %v15877_v5 }
  0x58   : > { %373 = vst.msk [vmem:[#allocation3 + $0xa0] sm:$0x3] %vm300_vm1, %v15877_v5  ;;  %376 = vst.msk [vmem:[#allocation3 + $0xb8] sm:$0x3] %vm300_vm1, %v15877_v5 }
  0x59   : > { %379 = vst.msk [vmem:[#allocation3 + $0xd0] sm:$0x3] %vm300_vm1, %v15877_v5  ;;  %382 = vst.msk [vmem:[#allocation3 + $0xe8] sm:$0x3] %vm300_vm1, %v15877_v5  ;;  %14798 = vmatpush3.bf16.msra.mxu0 %v14795_v23  ;;  %v11542_v23 = vld [vmem:[%s19015_s3 + $0x68] sm:$0xff] }
  0x5a   : > { %385 = vst.msk [vmem:[#allocation3 + $0x100] sm:$0x3] %vm300_vm1, %v15877_v5  ;;  %388 = vst.msk [vmem:[#allocation3 + $0x118] sm:$0x3] %vm300_vm1, %v15877_v5  ;;  %14800 = vmatprep.subr.bf16.mxu0 %v16386_v31 }
  0x5b   : > { %391 = vst.msk [vmem:[#allocation3 + $0x130] sm:$0x3] %vm300_vm1, %v15877_v5  ;;  %394 = vst.msk [vmem:[#allocation3 + $0x148] sm:$0x3] %vm300_vm1, %v15877_v5 }
  0x5c   : > { %397 = vst.msk [vmem:[#allocation3 + $0x160] sm:$0x3] %vm300_vm1, %v15877_v5  ;;  %400 = vst.msk [vmem:[#allocation3 + $0x178] sm:$0x3] %vm300_vm1, %v15877_v5 }
  0x5d   : > { %403 = vst.msk [vmem:[#allocation3 + $0x190] sm:$0x3] %vm300_vm1, %v15877_v5  ;;  %406 = vst.msk [vmem:[#allocation3 + $0x1a8] sm:$0x3] %vm300_vm1, %v15877_v5 }
  0x5e   : > { %7566 = vst.msk [vmem:[#allocation4 + $0x10] sm:$0x3] %vm300_vm1, %v15877_v5  ;;  %7569 = vst.msk [vmem:[#allocation4 + $0x28] sm:$0x3] %vm300_vm1, %v15877_v5 }
  0x5f   : > { %7572 = vst.msk [vmem:[#allocation4 + $0x40] sm:$0x3] %vm300_vm1, %v15877_v5  ;;  %7575 = vst.msk [vmem:[#allocation4 + $0x58] sm:$0x3] %vm300_vm1, %v15877_v5 }
  0x60   : > { %7578 = vst.msk [vmem:[#allocation4 + $0x70] sm:$0x3] %vm300_vm1, %v15877_v5  ;;  %7581 = vst.msk [vmem:[#allocation4 + $0x88] sm:$0x3] %vm300_vm1, %v15877_v5 }
  0x61   : > { %7584 = vst.msk [vmem:[#allocation4 + $0xa0] sm:$0x3] %vm300_vm1, %v15877_v5  ;;  %7587 = vst.msk [vmem:[#allocation4 + $0xb8] sm:$0x3] %vm300_vm1, %v15877_v5 }
  0x62   : > { %7590 = vst.msk [vmem:[#allocation4 + $0xd0] sm:$0x3] %vm300_vm1, %v15877_v5  ;;  %7593 = vst.msk [vmem:[#allocation4 + $0xe8] sm:$0x3] %vm300_vm1, %v15877_v5 }
  0x63   : > { %7596 = vst.msk [vmem:[#allocation4 + $0x100] sm:$0x3] %vm300_vm1, %v15877_v5  ;;  %7599 = vst.msk [vmem:[#allocation4 + $0x118] sm:$0x3] %vm300_vm1, %v15877_v5 }
  0x64   : > { %7602 = vst.msk [vmem:[#allocation4 + $0x130] sm:$0x3] %vm300_vm1, %v15877_v5  ;;  %7605 = vst.msk [vmem:[#allocation4 + $0x148] sm:$0x3] %vm300_vm1, %v15877_v5 }
  0x65   : > { %7608 = vst.msk [vmem:[#allocation4 + $0x160] sm:$0x3] %vm300_vm1, %v15877_v5  ;;  %7611 = vst.msk [vmem:[#allocation4 + $0x178] sm:$0x3] %vm300_vm1, %v15877_v5 }
  0x66   : > { %7614 = vst.msk [vmem:[#allocation4 + $0x190] sm:$0x3] %vm300_vm1, %v15877_v5  ;;  %7617 = vst.msk [vmem:[#allocation4 + $0x1a8] sm:$0x3] %vm300_vm1, %v15877_v5  ;;  %v498_v5 = vld [vmem:[%s16372_s14 + $0xd0] sm:$0xff] }
  0x67   : > { %440 = vst.msk [vmem:[#allocation2 + $0x19] sm:$0xff] %vm297_vm0, %v407_v12  ;;  %441 = vst.msk [vmem:[#allocation2 + $0x21] sm:$0xff] %vm297_vm0, %v408_v13 }
  0x68   : > { %442 = vst.msk [vmem:[#allocation2 + $0x31] sm:$0xff] %vm297_vm0, %v409_v14  ;;  %443 = vst.msk [vmem:[#allocation2 + $0x39] sm:$0xff] %vm297_vm0, %v410_v17  ;;  %v2421_v14 = vld [vmem:[#allocation3 + $0x2] sm:$0xff]  ;;  %v2422_v17 = vld [vmem:[#allocation3 + $0xa] sm:$0xff] }
  0x69   : > { %444 = vst.msk [vmem:[#allocation2 + $0x49] sm:$0xff] %vm297_vm0, %v411_v20  ;;  %445 = vst.msk [vmem:[#allocation2 + $0x51] sm:$0xff] %vm297_vm0, %v412_v21  ;;  %v422_v20 = vld [vmem:[%s16334_s15 + $0x78] sm:$0xff] }
  0x6a   : > { %446 = vst.msk [vmem:[#allocation2 + $0x61] sm:$0xff] %vm297_vm0, %v413_v22  ;;  %447 = vst.msk [vmem:[#allocation2 + $0x69] sm:$0xff] %vm297_vm0, %v414_v24  ;;  %v14803_v22 = vpack.c.bf16 %v11508_v16, %v11507_v15  ;;  %v423_v24 = vld [vmem:[%s16334_s15 + $0x80] sm:$0xff] }
  0x6b   : > { %448 = vst.msk [vmem:[#allocation2 + $0x79] sm:$0xff] %vm297_vm0, %v415_v25  ;;  %449 = vst.msk [vmem:[#allocation2 + $0x81] sm:$0xff] %vm297_vm0, %v416_v26  ;;  %v424_v26 = vld [vmem:[%s16334_s15 + $0x88] sm:$0xff]  ;;  %v11577_v16 = vld [vmem:[%s19014_s2 + $0x80] sm:$0xff] }
  0x6c   : > { %450 = vst.msk [vmem:[#allocation2 + $0x91] sm:$0xff] %vm297_vm0, %v417_v27  ;;  %451 = vst.msk [vmem:[#allocation2 + $0x99] sm:$0xff] %vm297_vm0, %v418_v28  ;;  %v425_v27 = vld [vmem:[%s16334_s15 + $0x90] sm:$0xff]  ;;  %v426_v28 = vld [vmem:[%s16334_s15 + $0x98] sm:$0xff] }
  0x6d   : > { %452 = vst.msk [vmem:[#allocation2 + $0xa9] sm:$0xff] %vm297_vm0, %v419_v29  ;;  %453 = vst.msk [vmem:[#allocation2 + $0xb1] sm:$0xff] %vm297_vm0, %v420_v30  ;;  %v427_v30 = vld [vmem:[%s16334_s15 + $0xa0] sm:$0xff] }
  0x6e   : > { %505 = vst.msk [vmem:[#allocation3 + $0x19] sm:$0xff] %vm297_vm0, %v472_v32  ;;  %506 = vst.msk [vmem:[#allocation3 + $0x21] sm:$0xff] %vm297_vm0, %v473_v33  ;;  %v2033_v38 = vld [vmem:[#allocation2 + $0x1a] sm:$0xff]  ;;  %v2034_v39 = vld [vmem:[#allocation2 + $0x22] sm:$0xff] }
  0x6f   : > { %507 = vst.msk [vmem:[#allocation3 + $0x31] sm:$0xff] %vm297_vm0, %v474_v34  ;;  %508 = vst.msk [vmem:[#allocation3 + $0x39] sm:$0xff] %vm297_vm0, %v475_v35  ;;  %13474 = vmatprep.mubr.msk.f32.mxu0 %vm297_vm0, %v2033_v38  ;;  %v2035_v41 = vld [vmem:[#allocation2 + $0x32] sm:$0xff]  ;;  %v2036_v44 = vld [vmem:[#allocation2 + $0x3a] sm:$0xff] }
  0x70   : > { %509 = vst.msk [vmem:[#allocation3 + $0x49] sm:$0xff] %vm297_vm0, %v476_v36  ;;  %510 = vst.msk [vmem:[#allocation3 + $0x51] sm:$0xff] %vm297_vm0, %v477_v37  ;;  %13475 = vmatmul.mubr.msk.f32.gmra.mrb[2].mxu0 %vm297_vm0, %v2034_v39  ;;  %v2037_v45 = vld [vmem:[#allocation2 + $0x4a] sm:$0xff]  ;;  %v2038_v48 = vld [vmem:[#allocation2 + $0x52] sm:$0xff]  ;;  %v16500_v37 = vpack.c.bf16 %v11542_v23, %v11541_v18 }
  0x71   : > { %511 = vst.msk [vmem:[#allocation3 + $0x61] sm:$0xff] %vm297_vm0, %v478_v40  ;;  %512 = vst.msk [vmem:[#allocation3 + $0x69] sm:$0xff] %vm297_vm0, %v479_v42  ;;  %13477 = vmatprep.mubr.msk.f32.mxu0 %vm297_vm0, %v2035_v41  ;;  %v2039_v49 = vld [vmem:[#allocation2 + $0x62] sm:$0xff]  ;;  %v2040_v52 = vld [vmem:[#allocation2 + $0x6a] sm:$0xff] }
  0x72   : > { %513 = vst.msk [vmem:[#allocation3 + $0x79] sm:$0xff] %vm297_vm0, %v480_v43  ;;  %514 = vst.msk [vmem:[#allocation3 + $0x81] sm:$0xff] %vm297_vm0, %v481_v46  ;;  %v2041_v54 = vld [vmem:[#allocation2 + $0x7a] sm:$0xff]  ;;  %v2042_v0 = vld [vmem:[#allocation2 + $0x82] sm:$0xff] }
  0x73   : > { %515 = vst.msk [vmem:[#allocation3 + $0x91] sm:$0xff] %vm297_vm0, %v482_v47  ;;  %516 = vst.msk [vmem:[#allocation3 + $0x99] sm:$0xff] %vm297_vm0, %v483_v50  ;;  %v2043_v10 = vld [vmem:[#allocation2 + $0x92] sm:$0xff]  ;;  %v2044_v11 = vld [vmem:[#allocation2 + $0x9a] sm:$0xff] }
  0x74   : > { %13478 = vmatmul.mubr.msk.f32.gmra.mrb[4].mxu0 %vm297_vm0, %v2036_v44  ;;  %517 = vst.msk [vmem:[#allocation3 + $0xa9] sm:$0xff] %vm297_vm0, %v484_v51  ;;  %518 = vst.msk [vmem:[#allocation3 + $0xb1] sm:$0xff] %vm297_vm0, %v485_v53  ;;  %v2045_v12 = vld [vmem:[#allocation2 + $0xaa] sm:$0xff]  ;;  %v2046_v13 = vld [vmem:[#allocation2 + $0xb2] sm:$0xff] }
  0x75   : > { %13480 = vmatprep.mubr.msk.f32.mxu0 %vm297_vm0, %v2037_v45  ;;  %519 = vst.msk [vmem:[#allocation3 + $0xc1] sm:$0xff] %vm297_vm0, %v486_v55  ;;  %520 = vst.msk [vmem:[#allocation3 + $0xc9] sm:$0xff] %vm297_vm0, %v487_v56  ;;  %v2423_v21 = vld [vmem:[#allocation3 + $0x1a] sm:$0xff]  ;;  %v2424_v25 = vld [vmem:[#allocation3 + $0x22] sm:$0xff] }
  0x76   : > { %521 = vst.msk [vmem:[#allocation3 + $0xd9] sm:$0xff] %vm297_vm0, %v488_v57  ;;  %522 = vst.msk [vmem:[#allocation3 + $0xe1] sm:$0xff] %vm297_vm0, %v489_v58  ;;  %v2425_v29 = vld [vmem:[#allocation3 + $0x32] sm:$0xff]  ;;  %v429_v33 = vld [vmem:[%s16334_s15 + $0xb0] sm:$0xff] }
  0x77   : > { %523 = vst.msk [vmem:[#allocation3 + $0xf1] sm:$0xff] %vm297_vm0, %v490_v59  ;;  %524 = vst.msk [vmem:[#allocation3 + $0xf9] sm:$0xff] %vm297_vm0, %v491_v60  ;;  %v428_v32 = vld [vmem:[%s16334_s15 + $0xa8] sm:$0xff]  ;;  %v430_v34 = vld [vmem:[%s16334_s15 + $0xb8] sm:$0xff] }
  0x78   : > { %13481 = vmatmul.mubr.msk.f32.gmra.mrb[6].mxu0 %vm297_vm0, %v2038_v48  ;;  %525 = vst.msk [vmem:[#allocation3 + $0x109] sm:$0xff] %vm297_vm0, %v492_v61  ;;  %526 = vst.msk [vmem:[#allocation3 + $0x111] sm:$0xff] %vm297_vm0, %v493_v62  ;;  %v431_v35 = vld [vmem:[%s16334_s15 + $0xc0] sm:$0xff]  ;;  %v432_v36 = vld [vmem:[%s16334_s15 + $0xc8] sm:$0xff] }
  0x79   : > { %13483 = vmatprep.mubr.msk.f32.mxu0 %vm297_vm0, %v2039_v49  ;;  %527 = vst.msk [vmem:[#allocation3 + $0x121] sm:$0xff] %vm297_vm0, %v494_v63  ;;  %528 = vst.msk [vmem:[#allocation3 + $0x129] sm:$0xff] %vm297_vm0, %v495_v1  ;;  %v434_v38 = vld [vmem:[%s16334_s15 + $0xd8] sm:$0xff]  ;;  %v435_v39 = vld [vmem:[%s16334_s15 + $0xe0] sm:$0xff] }
  0x7a   : > { %529 = vst.msk [vmem:[#allocation3 + $0x139] sm:$0xff] %vm297_vm0, %v496_v2  ;;  %530 = vst.msk [vmem:[#allocation3 + $0x141] sm:$0xff] %vm297_vm0, %v497_v4  ;;  %v436_v40 = vld [vmem:[%s16334_s15 + $0xe8] sm:$0xff]  ;;  %v437_v41 = vld [vmem:[%s16334_s15 + $0xf0] sm:$0xff] }
  0x7b   : > { %531 = vst.msk [vmem:[#allocation3 + $0x151] sm:$0xff] %vm297_vm0, %v498_v5  ;;  %532 = vst.msk [vmem:[#allocation3 + $0x159] sm:$0xff] %vm297_vm0, %v499_v7  ;;  %v438_v42 = vld [vmem:[%s16334_s15 + $0xf8] sm:$0xff]  ;;  %v2426_v43 = vld [vmem:[#allocation3 + $0x3a] sm:$0xff] }
  0x7c   : > { %13484 = vmatmul.mubr.msk.f32.gmra.mrb[8].mxu0 %vm297_vm0, %v2040_v52  ;;  %533 = vst.msk [vmem:[#allocation3 + $0x169] sm:$0xff] %vm297_vm0, %v500_v8  ;;  %534 = vst.msk [vmem:[#allocation3 + $0x171] sm:$0xff] %vm297_vm0, %v501_v9  ;;  %v2427_v44 = vld [vmem:[#allocation3 + $0x4a] sm:$0xff]  ;;  %v2428_v45 = vld [vmem:[#allocation3 + $0x52] sm:$0xff] }
  0x7d   : > { %13486 = vmatprep.mubr.msk.f32.mxu0 %vm297_vm0, %v2041_v54  ;;  %454 = vst.msk [vmem:[#allocation2 + $0xc1] sm:$0xff] %vm297_vm0, %v421_v19  ;;  %455 = vst.msk [vmem:[#allocation2 + $0xc9] sm:$0xff] %vm297_vm0, %v422_v20  ;;  %v2429_v46 = vld [vmem:[#allocation3 + $0x62] sm:$0xff]  ;;  %v2430_v47 = vld [vmem:[#allocation3 + $0x6a] sm:$0xff] }
  0x7e   : > { %456 = vst.msk [vmem:[#allocation2 + $0xd9] sm:$0xff] %vm297_vm0, %v423_v24  ;;  %457 = vst.msk [vmem:[#allocation2 + $0xe1] sm:$0xff] %vm297_vm0, %v424_v26  ;;  %v2431_v48 = vld [vmem:[#allocation3 + $0x7a] sm:$0xff]  ;;  %v2432_v49 = vld [vmem:[#allocation3 + $0x82] sm:$0xff] }
  0x7f   : > { %458 = vst.msk [vmem:[#allocation2 + $0xf1] sm:$0xff] %vm297_vm0, %v425_v27  ;;  %459 = vst.msk [vmem:[#allocation2 + $0xf9] sm:$0xff] %vm297_vm0, %v426_v28  ;;  %v2433_v50 = vld [vmem:[#allocation3 + $0x92] sm:$0xff]  ;;  %v2434_v51 = vld [vmem:[#allocation3 + $0x9a] sm:$0xff] }
  0x80   : > { %13487 = vmatmul.mubr.msk.f32.gmra.mrb[10].mxu0 %vm297_vm0, %v2042_v0  ;;  %460 = vst.msk [vmem:[#allocation2 + $0x109] sm:$0xff] %vm297_vm0, %v427_v30  ;;  %461 = vst.msk [vmem:[#allocation2 + $0x111] sm:$0xff] %vm297_vm0, %v428_v32  ;;  %v2435_v52 = vld [vmem:[#allocation3 + $0xaa] sm:$0xff]  ;;  %v2436_v53 = vld [vmem:[#allocation3 + $0xb2] sm:$0xff] }
  0x81   : > { %13489 = vmatprep.mubr.msk.f32.mxu0 %vm297_vm0, %v2043_v10  ;;  %462 = vst.msk [vmem:[#allocation2 + $0x121] sm:$0xff] %vm297_vm0, %v429_v33  ;;  %463 = vst.msk [vmem:[#allocation2 + $0x129] sm:$0xff] %vm297_vm0, %v430_v34  ;;  %v2437_v54 = vld [vmem:[#allocation3 + $0xc2] sm:$0xff]  ;;  %v2438_v55 = vld [vmem:[#allocation3 + $0xca] sm:$0xff] }
  0x82   : > { %464 = vst.msk [vmem:[#allocation2 + $0x139] sm:$0xff] %vm297_vm0, %v431_v35  ;;  %465 = vst.msk [vmem:[#allocation2 + $0x141] sm:$0xff] %vm297_vm0, %v432_v36  ;;  %v2439_v56 = vld [vmem:[#allocation3 + $0xda] sm:$0xff]  ;;  %v2440_v57 = vld [vmem:[#allocation3 + $0xe2] sm:$0xff] }
  0x83   : > { %467 = vst.msk [vmem:[#allocation2 + $0x159] sm:$0xff] %vm297_vm0, %v434_v38  ;;  %468 = vst.msk [vmem:[#allocation2 + $0x169] sm:$0xff] %vm297_vm0, %v435_v39  ;;  %v2441_v58 = vld [vmem:[#allocation3 + $0xf2] sm:$0xff]  ;;  %v2442_v59 = vld [vmem:[#allocation3 + $0xfa] sm:$0xff] }
  0x84   : > { %13490 = vmatmul.mubr.msk.f32.gmra.mrb[12].mxu0 %vm297_vm0, %v2044_v11  ;;  %469 = vst.msk [vmem:[#allocation2 + $0x171] sm:$0xff] %vm297_vm0, %v436_v40  ;;  %470 = vst.msk [vmem:[#allocation2 + $0x181] sm:$0xff] %vm297_vm0, %v437_v41  ;;  %v2443_v60 = vld [vmem:[#allocation3 + $0x10a] sm:$0xff]  ;;  %v2444_v61 = vld [vmem:[#allocation3 + $0x112] sm:$0xff] }
  0x85   : > { %13492 = vmatprep.mubr.msk.f32.mxu0 %vm297_vm0, %v2045_v12  ;;  %471 = vst.msk [vmem:[#allocation2 + $0x189] sm:$0xff] %vm297_vm0, %v438_v42  ;;  %v2445_v62 = vld [vmem:[#allocation3 + $0x122] sm:$0xff]  ;;  %v2446_v63 = vld [vmem:[#allocation3 + $0x12a] sm:$0xff]  ;;  %v2447_v0 = vld [vmem:[#allocation3 + $0x13a] sm:$0xff] }
  0x86   : > { %v2448_v1 = vld [vmem:[#allocation3 + $0x142] sm:$0xff]  ;;  %v2449_v2 = vld [vmem:[#allocation3 + $0x152] sm:$0xff]  ;;  %v2450_v7 = vld [vmem:[#allocation3 + $0x15a] sm:$0xff] }
  0x87   : > { %v502_v4 = vld [vmem:[%s16372_s14 + $0xf0] sm:$0xff]  ;;  %v503_v5 = vld [vmem:[%s16372_s14 + $0xf8] sm:$0xff]  ;;  %v2452_v9 = vld [vmem:[#allocation3 + $0x172] sm:$0xff]  ;;  %s15878_s14 = smov [#allocation5]  }
  0x88   : > { %13493 = vmatmul.mubr.msk.f32.gmra.mrb[14].mxu0 %vm297_vm0, %v2046_v13  ;;  %535 = vst.msk [vmem:[#allocation3 + $0x181] sm:$0xff] %vm297_vm0, %v502_v4  ;;  %536 = vst.msk [vmem:[#allocation3 + $0x189] sm:$0xff] %vm297_vm0, %v503_v5  ;;  %v2451_v8 = vld [vmem:[#allocation3 + $0x16a] sm:$0xff]  ;;  %v11543_v11 = vld [vmem:[%s19015_s3 + $0x70] sm:$0xff]  ;;  %s15817_s8 = sshll.u32 %s15878_s14, 4  ;;  %s15818_s8 = int_to_ptr.vmem [resolvable:$false] %s15817_s8 }
  0x89   : > { %13527 = vmatprep.mubr.msk.f32.mxu0 %vm297_vm0, %v2421_v14  ;;  %v16550_v10 = vld [vmem:[#allocation2 + $0x18] sm:$0xff]  ;;  %v16561_v13 = vld [vmem:[#allocation2 + $0x20] sm:$0xff]  ;;  %v16563_v14 = vld [vmem:[#allocation2 + $0x30] sm:$0xff]  ;;  %s15819_s9 = scalar_lea.vmem %s15818_s8, 8192 }
  0x8a   : > { %v11544_v12 = vld [vmem:[%s19015_s3 + $0x78] sm:$0xff]  ;;  %v16578_v19 = vld [vmem:[#allocation2 + $0x48] sm:$0xff]  ;;  %v2821_v26 = vld [vmem:[#allocation2 + $0x90] sm:$0xff] }
  0x8b   : > { %v14811_v15 = vpack.c.bf16 %v11544_v12, %v11543_v11  ;;  %v16576_v18 = vld [vmem:[#allocation2 + $0x38] sm:$0xff]  ;;  %v2818_v23 = vld [vmem:[#allocation2 + $0x68] sm:$0xff]  ;;  %v2825_v30 = vld [vmem:[#allocation2 + $0xc0] sm:$0xff] }
  0x8c   : > { %13528 = vmatmul.mubr.msk.f32.vlgmr.msra.gmra.mrb[0].mxu0 %vm297_vm0, %v2422_v17  ;;  %v11578_v17 = vld [vmem:[%s19014_s2 + $0x88] sm:$0xff]  ;;  %v2819_v24 = vld [vmem:[#allocation2 + $0x78] sm:$0xff]  ;;  %v2828_v34 = vld [vmem:[#allocation2 + $0xe0] sm:$0xff] }
  0x8d   : > { %14802 = vmatpush3.bf16.msra.mxu0 %v16386_v31  ;;  %13530 = vmatprep.mubr.msk.f32.mxu0 %vm297_vm0, %v2423_v21  ;;  %v433_v31 = vld [vmem:[%s16334_s15 + $0xd0] sm:$0xff]  ;;  %v16580_v20 = vpack.c.bf16 %v11578_v17, %v11577_v16  ;;  %v2822_v27 = vld [vmem:[#allocation2 + $0x98] sm:$0xff]  ;;  %v2823_v28 = vld [vmem:[#allocation2 + $0xa8] sm:$0xff]  ;;  %s11214_s15 = sshll.u32 %s18864_s20, 4  ;;  %s18963_s15 = int_to_ptr.vmem [resolvable:$true] %s11214_s15 }
  0x8e   : > { %14804 = vmatprep.subr.bf16.mxu0 %v14803_v22  ;;  %466 = vst.msk [vmem:[#allocation2 + $0x151] sm:$0xff] %vm297_vm0, %v433_v31  ;;  %v16586_v21 = vld [vmem:[#allocation2 + $0x50] sm:$0xff]  ;;  %v2826_v32 = vld [vmem:[#allocation2 + $0xc8] sm:$0xff]  ;;  %v2827_v33 = vld [vmem:[#allocation2 + $0xd8] sm:$0xff]  ;;  %s15813_s13 = scalar_lea.vmem %s18963_s15, 4096  ;;  %p15820_p0 = scmp.lt.s32.totalorder %s18963_s15, %s15818_s8 }
  0x8f   : > { %v2829_v35 = vld [vmem:[#allocation2 + $0xf0] sm:$0xff]  ;;  %v2830_v36 = vld [vmem:[#allocation2 + $0xf8] sm:$0xff]  ;;  %v2833_v38 = vld [vmem:[#allocation2 + $0x120] sm:$0xff]  ;;  %p15814_p11 = scmp.ne.s32.totalorder %s18963_s15, %s15813_s13  ;;  %p15821_p1 = scmp.lt.s32.totalorder %s15819_s9, %s15813_s13 }
  0x90   : > { %13531 = vmatmul.mubr.msk.f32.gmra.mrb[2].mxu0 %vm297_vm0, %v2424_v25  ;;  %v2820_v25 = vld [vmem:[#allocation2 + $0x80] sm:$0xff]  ;;  %v2832_v31 = vld [vmem:[#allocation2 + $0x110] sm:$0xff]  ;;  %v2834_v39 = vld [vmem:[#allocation2 + $0x128] sm:$0xff] }
  0x91   : > { %13533 = vmatprep.mubr.msk.f32.mxu0 %vm297_vm0, %v2425_v29  ;;  %14806 = vmatpush3.bf16.msra.mxu0 %v14803_v22  ;;  %v2817_v22 = vld [vmem:[#allocation2 + $0x60] sm:$0xff]  ;;  %v2824_v29 = vld [vmem:[#allocation2 + $0xb0] sm:$0xff]  ;;  %v2835_v40 = vld [vmem:[#allocation2 + $0x138] sm:$0xff]  ;;  %p15815_p12 = pnand %p15814_p11, %p15959_p5  ;;  %p15822_p2 = por %p15821_p1, %p15820_p0 }
  0x92   : > { %14808 = vmatprep.subr.bf16.mxu0 %v16500_v37  ;;  %v2836_v41 = vld [vmem:[#allocation2 + $0x140] sm:$0xff]  ;;  %v16687_v5 = vld [vmem:[#allocation3 + $0xc0] sm:$0xff]  ;;  %v16709_v12 = vld [vmem:[#allocation3 + $0xf8] sm:$0xff] }
  0x93   : > { %v16685_v4 = vld [vmem:[#allocation3 + $0xb0] sm:$0xff]  ;;  %v16719_v17 = vld [vmem:[#allocation3 + $0x120] sm:$0xff]  ;;  %p15816_p13 = pneg %p15815_p12 }
  0x94   : > { %13534 = vmatmul.mubr.msk.f32.gmra.mrb[4].mxu0 %vm297_vm0, %v2426_v43  ;;  %v16703_v11 = vld [vmem:[#allocation3 + $0xf0] sm:$0xff] }
  0x95   : > { %13536 = vmatprep.mubr.msk.f32.mxu0 %vm297_vm0, %v2427_v44  ;;  %v2837_v42 = vld [vmem:[#allocation2 + $0x150] sm:$0xff]  ;;  %v2838_v43 = vld [vmem:[#allocation2 + $0x158] sm:$0xff]  ;;  %v2839_v44 = vld [vmem:[#allocation2 + $0x168] sm:$0xff]  ;;  %p15823_p3 = pnand %p15822_p2, %p15816_p13 }
  0x96   : > { %v16717_v16 = vld [vmem:[#allocation3 + $0x110] sm:$0xff] }
  0x98   : > { %13537 = vmatmul.mubr.msk.f32.gmra.mrb[6].mxu0 %vm297_vm0, %v2428_v45  ;;  %v2840_v45 = vld [vmem:[#allocation2 + $0x170] sm:$0xff] }
  0x99   : > { %13539 = vmatprep.mubr.msk.f32.mxu0 %vm297_vm0, %v2429_v46  ;;  %v2841_v46 = vld [vmem:[#allocation2 + $0x180] sm:$0xff] }
  0x9c   : > { %13540 = vmatmul.mubr.msk.f32.gmra.mrb[8].mxu0 %vm297_vm0, %v2430_v47  ;;  %v2842_v47 = vld [vmem:[#allocation2 + $0x188] sm:$0xff] }
  0x9d   : > { %13542 = vmatprep.mubr.msk.f32.mxu0 %vm297_vm0, %v2431_v48  ;;  %v16616_v48 = vld [vmem:[#allocation3 + $0x18] sm:$0xff] }
  0xa0   : > { %13543 = vmatmul.mubr.msk.f32.gmra.mrb[10].mxu0 %vm297_vm0, %v2432_v49  ;;  %v11579_v49 = vld [vmem:[%s19014_s2 + $0x90] sm:$0xff] }
  0xa1   : > { %13545 = vmatprep.mubr.msk.f32.mxu0 %vm297_vm0, %v2433_v50  ;;  %v11580_v50 = vld [vmem:[%s19014_s2 + $0x98] sm:$0xff] }
  0xa4   : > { %13546 = vmatmul.mubr.msk.f32.gmra.mrb[12].mxu0 %vm297_vm0, %v2434_v51  ;;  %v16627_v51 = vld [vmem:[#allocation3 + $0x20] sm:$0xff] }
  0xa5   : > { %13548 = vmatprep.mubr.msk.f32.mxu0 %vm297_vm0, %v2435_v52  ;;  %v16629_v52 = vld [vmem:[#allocation3 + $0x30] sm:$0xff] }
  0xa8   : > { %13549 = vmatmul.mubr.msk.f32.gmra.mrb[14].mxu0 %vm297_vm0, %v2436_v53  ;;  %v14819_v53 = vpack.c.bf16 %v11580_v50, %v11579_v49  ;;  %v16812_v50 = vld [vmem:[#allocation2 + $0x61] sm:$0xff] }
  0xa9   : > { %13551 = vmatprep.mubr.msk.f32.mxu0 %vm297_vm0, %v2437_v54  ;;  %v11613_v54 = vld [vmem:[%s19015_s3 + $0x80] sm:$0xff] }
  0xac   : > { %13552 = vmatmul.mubr.msk.f32.gmra.mrb[16].mxu0 %vm297_vm0, %v2438_v55  ;;  %v11614_v55 = vld [vmem:[%s19015_s3 + $0x88] sm:$0xff] }
  0xad   : > { %13554 = vmatprep.mubr.msk.f32.mxu0 %vm297_vm0, %v2439_v56  ;;  %v16642_v56 = vld [vmem:[#allocation3 + $0x38] sm:$0xff] }
  0xb0   : > { %13555 = vmatmul.mubr.msk.f32.gmra.mrb[18].mxu0 %vm297_vm0, %v2440_v57  ;;  %v16644_v57 = vld [vmem:[#allocation3 + $0x48] sm:$0xff] }
  0xb1   : > { %13557 = vmatprep.mubr.msk.f32.mxu0 %vm297_vm0, %v2441_v58  ;;  %v16646_v58 = vpack.c.bf16 %v11614_v55, %v11613_v54  ;;  %v16837_v54 = vld [vmem:[#allocation2 + $0x91] sm:$0xff]  ;;  %v16847_v55 = vld [vmem:[#allocation2 + $0x99] sm:$0xff] }
  0xb4   : > { %13558 = vmatmul.mubr.msk.f32.gmra.mrb[20].mxu0 %vm297_vm0, %v2442_v59  ;;  %v16652_v59 = vld [vmem:[#allocation3 + $0x50] sm:$0xff] }
  0xb5   : > { %13560 = vmatprep.mubr.msk.f32.mxu0 %vm297_vm0, %v2443_v60  ;;  %v16654_v60 = vld [vmem:[#allocation3 + $0x60] sm:$0xff] }
  0xb8   : > { %13561 = vmatmul.mubr.msk.f32.gmra.mrb[22].mxu0 %vm297_vm0, %v2444_v61  ;;  %v16661_v61 = vld [vmem:[#allocation3 + $0x68] sm:$0xff] }
  0xb9   : > { %13563 = vmatprep.mubr.msk.f32.mxu0 %vm297_vm0, %v2445_v62  ;;  %v16663_v62 = vld [vmem:[#allocation3 + $0x78] sm:$0xff] }
  0xbc   : > { %13564 = vmatmul.mubr.msk.f32.gmra.mrb[24].mxu0 %vm297_vm0, %v2446_v63  ;;  %v16669_v63 = vld [vmem:[#allocation3 + $0x80] sm:$0xff] }
  0xbd   : > { %13566 = vmatprep.mubr.msk.f32.mxu0 %vm297_vm0, %v2447_v0  ;;  %v16671_v0 = vld [vmem:[#allocation3 + $0x90] sm:$0xff] }
  0xc0   : > { %13567 = vmatmul.mubr.msk.f32.gmra.mrb[26].mxu0 %vm297_vm0, %v2448_v1  ;;  %v16677_v1 = vld [vmem:[#allocation3 + $0x98] sm:$0xff] }
  0xc1   : > { %13569 = vmatprep.mubr.msk.f32.mxu0 %vm297_vm0, %v2449_v2  ;;  %v16679_v2 = vld [vmem:[#allocation3 + $0xa8] sm:$0xff] }
  0xc4   : > { %13570 = vmatmul.mubr.msk.f32.gmra.mrb[28].mxu0 %vm297_vm0, %v2450_v7  ;;  %v16693_v7 = vld [vmem:[#allocation3 + $0xc8] sm:$0xff] }
  0xc5   : > { %13572 = vmatprep.mubr.msk.f32.mxu0 %vm297_vm0, %v2451_v8  ;;  %v16695_v8 = vld [vmem:[#allocation3 + $0xd8] sm:$0xff] }
  0xc8   : > { %13573 = vmatmul.mubr.msk.f32.gmra.mrb[30].mxu0 %vm297_vm0, %v2452_v9  ;;  %v16701_v9 = vld [vmem:[#allocation3 + $0xe0] sm:$0xff] }
  0xc9   : > { %13583 = vmatprep.mubr.msk.f32.mxu0 %vm297_vm0, %v16550_v10 }
  0xcc   : > { %13584 = vmatmul.mubr.msk.f32.vlgmr.msra.gmra.mrb[0].mxu0 %vm297_vm0, %v16561_v13 }
  0xcd   : > { %14810 = vmatpush3.bf16.msra.mxu0 %v16500_v37  ;;  %13586 = vmatprep.mubr.msk.f32.mxu0 %vm297_vm0, %v16563_v14  ;;  %v2831_v37 = vld [vmem:[#allocation2 + $0x108] sm:$0xff] }
  0xce   : > { %14812 = vmatprep.subr.bf16.mxu0 %v14811_v15 }
  0xd0   : > { %13587 = vmatmul.mubr.msk.f32.gmra.mrb[2].mxu0 %vm297_vm0, %v16576_v18 }
  0xd1   : > { %13589 = vmatprep.mubr.msk.f32.mxu0 %vm297_vm0, %v16578_v19  ;;  %14814 = vmatpush3.bf16.msra.mxu0 %v14811_v15  ;;  %v16711_v15 = vld [vmem:[#allocation3 + $0x108] sm:$0xff] }
  0xd2   : > { %14816 = vmatprep.subr.bf16.mxu0 %v16580_v20 }
  0xd4   : > { %13590 = vmatmul.mubr.msk.f32.gmra.mrb[4].mxu0 %vm297_vm0, %v16586_v21 }
  0xd5   : > { %13592 = vmatprep.mubr.msk.f32.mxu0 %vm297_vm0, %v2817_v22  ;;  %v16727_v22 = vld [vmem:[#allocation3 + $0x138] sm:$0xff] }
  0xd8   : > { %13593 = vmatmul.mubr.msk.f32.gmra.mrb[6].mxu0 %vm297_vm0, %v2818_v23  ;;  %v16733_v23 = vld [vmem:[#allocation3 + $0x140] sm:$0xff] }
  0xd9   : > { %13595 = vmatprep.mubr.msk.f32.mxu0 %vm297_vm0, %v2819_v24  ;;  %v16735_v24 = vld [vmem:[#allocation3 + $0x150] sm:$0xff] }
  0xdc   : > { %13596 = vmatmul.mubr.msk.f32.gmra.mrb[8].mxu0 %vm297_vm0, %v2820_v25  ;;  %v16741_v25 = vld [vmem:[#allocation3 + $0x158] sm:$0xff] }
  0xdd   : > { %13598 = vmatprep.mubr.msk.f32.mxu0 %vm297_vm0, %v2821_v26  ;;  %v16743_v26 = vld [vmem:[#allocation3 + $0x168] sm:$0xff] }
  0xe0   : > { %13599 = vmatmul.mubr.msk.f32.gmra.mrb[10].mxu0 %vm297_vm0, %v2822_v27  ;;  %v605_v27 = vld [vmem:[%s19015_s3] sm:$0xff] }
  0xe1   : > { %13601 = vmatprep.mubr.msk.f32.mxu0 %vm297_vm0, %v2823_v28  ;;  %v606_v28 = vld [vmem:[%s19015_s3 + $0x8] sm:$0xff] }
  0xe4   : > { %13602 = vmatmul.mubr.msk.f32.gmra.mrb[12].mxu0 %vm297_vm0, %v2824_v29  ;;  %v16755_v29 = vld [vmem:[#allocation3 + $0x170] sm:$0xff] }
  0xe5   : > { %13604 = vmatprep.mubr.msk.f32.mxu0 %vm297_vm0, %v2825_v30  ;;  %v14751_v30 = vpack.c.bf16 %v606_v28, %v605_v27  ;;  %v11651_v28 = vld [vmem:[%s19014_s2 + $0xb0] sm:$0xff] }
  0xe7   : > { %14752 = vmatprep.subr.bf16.mxu1 %v14751_v30 }
  0xe8   : > { %13605 = vmatmul.mubr.msk.f32.gmra.mrb[14].mxu0 %vm297_vm0, %v2826_v32  ;;  %v3231_v32 = vld [vmem:[#allocation3 + $0x180] sm:$0xff]  ;;  %14754 = vmatpush3.bf16.msra.mxu1 %v14751_v30  ;;  %v11652_v30 = vld [vmem:[%s19014_s2 + $0xb8] sm:$0xff] }
  0xe9   : > { %13607 = vmatprep.mubr.msk.f32.mxu0 %vm297_vm0, %v2827_v33  ;;  %v607_v33 = vld [vmem:[%s19015_s3 + $0x10] sm:$0xff] }
  0xec   : > { %13608 = vmatmul.mubr.msk.f32.gmra.mrb[16].mxu0 %vm297_vm0, %v2828_v34  ;;  %v608_v34 = vld [vmem:[%s19015_s3 + $0x18] sm:$0xff] }
  0xed   : > { %13610 = vmatprep.mubr.msk.f32.mxu0 %vm297_vm0, %v2829_v35  ;;  %v3232_v35 = vld [vmem:[#allocation3 + $0x188] sm:$0xff] }
  0xf0   : > { %13611 = vmatmul.mubr.msk.f32.gmra.mrb[18].mxu0 %vm297_vm0, %v2830_v36  ;;  %v14755_v36 = vpack.c.bf16 %v608_v34, %v607_v33  ;;  %v538_v33 = vld [vmem:[#allocation2 + $0x8] sm:$0xff] }
  0xf1   : > { %13613 = vmatprep.mubr.msk.f32.mxu0 %vm297_vm0, %v2831_v37  ;;  %v16766_v37 = vld [vmem:[#allocation2 + $0x19] sm:$0xff]  ;;  %v3983_v34 = vld [vmem:[#allocation3 + $0x31] sm:$0xff] }
  0xf2   : > { %14756 = vmatprep.subr.bf16.mxu1 %v14755_v36 }
  0xf3   : > { %14758 = vmatpush3.bf16.msra.mxu1 %v14755_v36  ;;  %v11685_v36 = vld [vmem:[%s19015_s3 + $0xa0] sm:$0xff] }
  0xf4   : > { %13614 = vmatmul.mubr.msk.f32.gmra.mrb[20].mxu0 %vm297_vm0, %v2832_v31  ;;  %v11615_v31 = vld [vmem:[%s19015_s3 + $0x90] sm:$0xff] }
  0xf5   : > { %13616 = vmatprep.mubr.msk.f32.mxu0 %vm297_vm0, %v2833_v38  ;;  %v11616_v38 = vld [vmem:[%s19015_s3 + $0x98] sm:$0xff] }
  0xf8   : > { %13617 = vmatmul.mubr.msk.f32.gmra.mrb[22].mxu0 %vm297_vm0, %v2834_v39  ;;  %v573_v39 = vld [vmem:[#allocation3] sm:$0xff] }
  0xf9   : > { %13619 = vmatprep.mubr.msk.f32.mxu0 %vm297_vm0, %v2835_v40  ;;  %v574_v40 = vld [vmem:[#allocation3 + $0x8] sm:$0xff]  ;;  %13247 = vmatprep.mubr.msk.f32.mxu1 %vm297_vm0, %v573_v39 }
  0xfa   : > { %13248 = vmatmul.mubr.msk.f32.vlgmr.msra.gmra.mrb[0].mxu1 %vm297_vm0, %v574_v40  ;;  %v3987_v40 = vld [vmem:[#allocation3 + $0x61] sm:$0xff] }
  0xfb   : > { %13250 = vmatprep.mubr.msk.f32.mxu1 %vm297_vm0, %v16616_v48 }
  0xfc   : > { %13620 = vmatmul.mubr.msk.f32.gmra.mrb[24].mxu0 %vm297_vm0, %v2836_v41  ;;  %v16777_v41 = vld [vmem:[#allocation2 + $0x21] sm:$0xff] }
  0xfd   : > { %13622 = vmatprep.mubr.msk.f32.mxu0 %vm297_vm0, %v2837_v42  ;;  %v16780_v42 = vld [vmem:[#allocation2 + $0x31] sm:$0xff] }
  0xfe   : > { %13251 = vmatmul.mubr.msk.f32.gmra.mrb[2].mxu1 %vm297_vm0, %v16627_v51 }
  0xff   : > { %13253 = vmatprep.mubr.msk.f32.mxu1 %vm297_vm0, %v16629_v52 }
 0x100   : > { %13623 = vmatmul.mubr.msk.f32.gmra.mrb[26].mxu0 %vm297_vm0, %v2838_v43  ;;  %v14827_v43 = vpack.c.bf16 %v11616_v38, %v11615_v31  ;;  %v3984_v31 = vld [vmem:[#allocation3 + $0x39] sm:$0xff]  ;;  %v3985_v38 = vld [vmem:[#allocation3 + $0x49] sm:$0xff] }
 0x101   : > { %13625 = vmatprep.mubr.msk.f32.mxu0 %vm297_vm0, %v2839_v44  ;;  %v11649_v44 = vld [vmem:[%s19014_s2 + $0xa0] sm:$0xff] }
 0x102   : > { %13254 = vmatmul.mubr.msk.f32.gmra.mrb[4].mxu1 %vm297_vm0, %v16642_v56 }
 0x103   : > { %13256 = vmatprep.mubr.msk.f32.mxu1 %vm297_vm0, %v16644_v57 }
 0x104   : > { %13626 = vmatmul.mubr.msk.f32.gmra.mrb[28].mxu0 %vm297_vm0, %v2840_v45  ;;  %v11650_v45 = vld [vmem:[%s19014_s2 + $0xa8] sm:$0xff] }
 0x105   : > { %13628 = vmatprep.mubr.msk.f32.mxu0 %vm297_vm0, %v2841_v46  ;;  %v16796_v46 = vld [vmem:[#allocation2 + $0x39] sm:$0xff]  ;;  %v16800_v49 = vpack.c.bf16 %v11650_v45, %v11649_v44  ;;  %v17007_v44 = vld [vmem:[#allocation2 + $0x68] sm:$0xff] }
 0x106   : > { %13257 = vmatmul.mubr.msk.f32.gmra.mrb[6].mxu1 %vm297_vm0, %v16652_v59  ;;  %v17015_v45 = vld [vmem:[#allocation2 + $0x78] sm:$0xff] }
 0x107   : > { %13259 = vmatprep.mubr.msk.f32.mxu1 %vm297_vm0, %v16654_v60 }
 0x108   : > { %13629 = vmatmul.mubr.msk.f32.gmra.mrb[30].mxu0 %vm297_vm0, %v2842_v47  ;;  %v16798_v47 = vld [vmem:[#allocation2 + $0x49] sm:$0xff] }
 0x109   : > { %13639 = vmatprep.mubr.msk.f32.mxu0 %vm297_vm0, %v16616_v48  ;;  %v16810_v48 = vld [vmem:[#allocation2 + $0x51] sm:$0xff] }
 0x10a   : > { %13260 = vmatmul.mubr.msk.f32.gmra.mrb[8].mxu1 %vm297_vm0, %v16661_v61 }
 0x10b   : > { %13262 = vmatprep.mubr.msk.f32.mxu1 %vm297_vm0, %v16663_v62 }
 0x10c   : > { %13640 = vmatmul.mubr.msk.f32.vlgmr.msra.gmra.mrb[0].mxu0 %vm297_vm0, %v16627_v51  ;;  %v16823_v51 = vld [vmem:[#allocation2 + $0x69] sm:$0xff] }
 0x10d   : > { %14818 = vmatpush3.bf16.msra.mxu0 %v16580_v20  ;;  %13642 = vmatprep.mubr.msk.f32.mxu0 %vm297_vm0, %v16629_v52  ;;  %v16725_v20 = vld [vmem:[#allocation3 + $0x128] sm:$0xff] }
 0x10e   : > { %14820 = vmatprep.subr.bf16.mxu0 %v14819_v53  ;;  %v16825_v52 = vld [vmem:[#allocation2 + $0x79] sm:$0xff]  ;;  %13263 = vmatmul.mubr.msk.f32.gmra.mrb[10].mxu1 %vm297_vm0, %v16669_v63 }
 0x10f   : > { %13265 = vmatprep.mubr.msk.f32.mxu1 %vm297_vm0, %v16671_v0 }
 0x110   : > { %13643 = vmatmul.mubr.msk.f32.gmra.mrb[2].mxu0 %vm297_vm0, %v16642_v56  ;;  %v16849_v56 = vld [vmem:[#allocation2 + $0xa9] sm:$0xff] }
 0x111   : > { %13645 = vmatprep.mubr.msk.f32.mxu0 %vm297_vm0, %v16644_v57  ;;  %14822 = vmatpush3.bf16.msra.mxu0 %v14819_v53  ;;  %v16835_v53 = vld [vmem:[#allocation2 + $0x81] sm:$0xff]  ;;  %v16859_v57 = vld [vmem:[#allocation2 + $0xb1] sm:$0xff] }
 0x112   : > { %14824 = vmatprep.subr.bf16.mxu0 %v16646_v58  ;;  %13266 = vmatmul.mubr.msk.f32.gmra.mrb[12].mxu1 %vm297_vm0, %v16677_v1 }
 0x113   : > { %13268 = vmatprep.mubr.msk.f32.mxu1 %vm297_vm0, %v16679_v2 }
 0x114   : > { %13646 = vmatmul.mubr.msk.f32.gmra.mrb[4].mxu0 %vm297_vm0, %v16652_v59  ;;  %v16871_v59 = vld [vmem:[#allocation2 + $0xc9] sm:$0xff] }
 0x115   : > { %13648 = vmatprep.mubr.msk.f32.mxu0 %vm297_vm0, %v16654_v60  ;;  %v16873_v60 = vld [vmem:[#allocation2 + $0xd9] sm:$0xff] }
 0x116   : > { %13269 = vmatmul.mubr.msk.f32.gmra.mrb[14].mxu1 %vm297_vm0, %v16685_v4 }
 0x117   : > { %13271 = vmatprep.mubr.msk.f32.mxu1 %vm297_vm0, %v16687_v5 }
 0x118   : > { %13649 = vmatmul.mubr.msk.f32.gmra.mrb[6].mxu0 %vm297_vm0, %v16661_v61  ;;  %v16883_v61 = vld [vmem:[#allocation2 + $0xe1] sm:$0xff] }
 0x119   : > { %13651 = vmatprep.mubr.msk.f32.mxu0 %vm297_vm0, %v16663_v62  ;;  %v16885_v62 = vld [vmem:[#allocation2 + $0xf1] sm:$0xff] }
 0x11a   : > { %13272 = vmatmul.mubr.msk.f32.gmra.mrb[16].mxu1 %vm297_vm0, %v16693_v7 }
 0x11b   : > { %13274 = vmatprep.mubr.msk.f32.mxu1 %vm297_vm0, %v16695_v8 }
 0x11c   : > { %13652 = vmatmul.mubr.msk.f32.gmra.mrb[8].mxu0 %vm297_vm0, %v16669_v63  ;;  %v16895_v63 = vld [vmem:[#allocation2 + $0xf9] sm:$0xff] }
 0x11d   : > { %13654 = vmatprep.mubr.msk.f32.mxu0 %vm297_vm0, %v16671_v0  ;;  %v16897_v0 = vld [vmem:[#allocation2 + $0x109] sm:$0xff] }
 0x11e   : > { %13275 = vmatmul.mubr.msk.f32.gmra.mrb[18].mxu1 %vm297_vm0, %v16701_v9 }
 0x11f   : > { %13277 = vmatprep.mubr.msk.f32.mxu1 %vm297_vm0, %v16703_v11 }
 0x120   : > { %13655 = vmatmul.mubr.msk.f32.gmra.mrb[10].mxu0 %vm297_vm0, %v16677_v1  ;;  %v16907_v1 = vld [vmem:[#allocation2 + $0x111] sm:$0xff] }
 0x121   : > { %13657 = vmatprep.mubr.msk.f32.mxu0 %vm297_vm0, %v16679_v2  ;;  %v16909_v2 = vld [vmem:[#allocation2 + $0x121] sm:$0xff] }
 0x122   : > { %13278 = vmatmul.mubr.msk.f32.gmra.mrb[20].mxu1 %vm297_vm0, %v16709_v12 }
 0x123   : > { %13280 = vmatprep.mubr.msk.f32.mxu1 %vm297_vm0, %v16711_v15 }
 0x124   : > { %13658 = vmatmul.mubr.msk.f32.gmra.mrb[12].mxu0 %vm297_vm0, %v16685_v4  ;;  %v16919_v4 = vld [vmem:[#allocation2 + $0x129] sm:$0xff] }
 0x125   : > { %13660 = vmatprep.mubr.msk.f32.mxu0 %vm297_vm0, %v16687_v5  ;;  %v16921_v5 = vld [vmem:[#allocation2 + $0x139] sm:$0xff] }
 0x126   : > { %13281 = vmatmul.mubr.msk.f32.gmra.mrb[22].mxu1 %vm297_vm0, %v16717_v16 }
 0x127   : > { %13283 = vmatprep.mubr.msk.f32.mxu1 %vm297_vm0, %v16719_v17 }
 0x128   : > { %13661 = vmatmul.mubr.msk.f32.gmra.mrb[14].mxu0 %vm297_vm0, %v16693_v7  ;;  %v16931_v7 = vld [vmem:[#allocation2 + $0x141] sm:$0xff] }
 0x129   : > { %13663 = vmatprep.mubr.msk.f32.mxu0 %vm297_vm0, %v16695_v8  ;;  %v3617_v8 = vld [vmem:[#allocation2 + $0x151] sm:$0xff] }
 0x12a   : > { %13284 = vmatmul.mubr.msk.f32.gmra.mrb[24].mxu1 %vm297_vm0, %v16725_v20 }
 0x12b   : > { %13286 = vmatprep.mubr.msk.f32.mxu1 %vm297_vm0, %v16727_v22 }
 0x12c   : > { %13664 = vmatmul.mubr.msk.f32.gmra.mrb[16].mxu0 %vm297_vm0, %v16701_v9  ;;  %v3618_v9 = vld [vmem:[#allocation2 + $0x159] sm:$0xff] }
 0x12d   : > { %13666 = vmatprep.mubr.msk.f32.mxu0 %vm297_vm0, %v16703_v11  ;;  %v3619_v11 = vld [vmem:[#allocation2 + $0x169] sm:$0xff] }
 0x12e   : > { %13287 = vmatmul.mubr.msk.f32.gmra.mrb[26].mxu1 %vm297_vm0, %v16733_v23 }
 0x12f   : > { %13289 = vmatprep.mubr.msk.f32.mxu1 %vm297_vm0, %v16735_v24 }
 0x130   : > { %13667 = vmatmul.mubr.msk.f32.gmra.mrb[18].mxu0 %vm297_vm0, %v16709_v12  ;;  %v569_v12 = vld [vmem:[%s19014_s2] sm:$0xff] }
 0x131   : > { %13669 = vmatprep.mubr.msk.f32.mxu0 %vm297_vm0, %v16711_v15  ;;  %v570_v15 = vld [vmem:[%s19014_s2 + $0x8] sm:$0xff] }
 0x132   : > { %13290 = vmatmul.mubr.msk.f32.gmra.mrb[28].mxu1 %vm297_vm0, %v16741_v25 }
 0x133   : > { %13292 = vmatprep.mubr.msk.f32.mxu1 %vm297_vm0, %v16743_v26 }
 0x134   : > { %13670 = vmatmul.mubr.msk.f32.gmra.mrb[20].mxu0 %vm297_vm0, %v16717_v16  ;;  %v3620_v16 = vld [vmem:[#allocation2 + $0x171] sm:$0xff] }
 0x135   : > { %13672 = vmatprep.mubr.msk.f32.mxu0 %vm297_vm0, %v16719_v17  ;;  %v14759_v17 = vpack.c.bf16 %v570_v15, %v569_v12  ;;  %v3994_v12 = vld [vmem:[#allocation3 + $0xb1] sm:$0xff]  ;;  %v3995_v15 = vld [vmem:[#allocation3 + $0xc1] sm:$0xff] }
 0x136   : > { %13293 = vmatmul.mubr.msk.f32.gmra.mrb[30].mxu1 %vm297_vm0, %v16755_v29 }
 0x137   : > { %14760 = vmatprep.subr.bf16.mxu1 %v14759_v17 }
 0x138   : > { %13673 = vmatmul.mubr.msk.f32.gmra.mrb[22].mxu0 %vm297_vm0, %v16725_v20  ;;  %v3621_v20 = vld [vmem:[#allocation2 + $0x181] sm:$0xff]  ;;  %14762 = vmatpush3.bf16.msra.mxu1 %v14759_v17  ;;  %v17037_v17 = vld [vmem:[#allocation2 + $0xb0] sm:$0xff] }
 0x139   : > { %13675 = vmatprep.mubr.msk.f32.mxu0 %vm297_vm0, %v16727_v22  ;;  %v571_v22 = vld [vmem:[%s19014_s2 + $0x10] sm:$0xff] }
 0x13c   : > { %13676 = vmatmul.mubr.msk.f32.gmra.mrb[24].mxu0 %vm297_vm0, %v16733_v23  ;;  %v572_v23 = vld [vmem:[%s19014_s2 + $0x18] sm:$0xff] }
 0x13d   : > { %13678 = vmatprep.mubr.msk.f32.mxu0 %vm297_vm0, %v16735_v24  ;;  %v3622_v24 = vld [vmem:[#allocation2 + $0x189] sm:$0xff]  ;;  %v14763_v27 = vpack.c.bf16 %v572_v23, %v571_v22  ;;  %v17045_v23 = vld [vmem:[#allocation2 + $0xc0] sm:$0xff] }
 0x13e   : > { %v3997_v22 = vld [vmem:[#allocation3 + $0xd9] sm:$0xff] }
 0x13f   : > { %14764 = vmatprep.subr.bf16.mxu1 %v14763_v27 }
 0x140   : > { %13679 = vmatmul.mubr.msk.f32.gmra.mrb[26].mxu0 %vm297_vm0, %v16741_v25  ;;  %v3981_v25 = vld [vmem:[#allocation3 + $0x19] sm:$0xff]  ;;  %14766 = vmatpush3.bf16.msra.mxu1 %v14763_v27  ;;  %v3998_v27 = vld [vmem:[#allocation3 + $0xe1] sm:$0xff] }
 0x141   : > { %13681 = vmatprep.mubr.msk.f32.mxu0 %vm297_vm0, %v16743_v26  ;;  %v3982_v26 = vld [vmem:[#allocation3 + $0x21] sm:$0xff] }
 0x144   : > { %13682 = vmatmul.mubr.msk.f32.gmra.mrb[28].mxu0 %vm297_vm0, %v16755_v29  ;;  %v11686_v29 = vld [vmem:[%s19015_s3 + $0xa8] sm:$0xff] }
 0x145   : > { %13684 = vmatprep.mubr.msk.f32.mxu0 %vm297_vm0, %v3231_v32  ;;  %v537_v32 = vld [vmem:[#allocation2] sm:$0xff]  ;;  %v16987_v39 = vpack.c.bf16 %v11686_v29, %v11685_v36  ;;  %v4003_v36 = vld [vmem:[#allocation3 + $0x121] sm:$0xff]  ;;  %v17075_v29 = vld [vmem:[#allocation2 + $0x108] sm:$0xff] }
 0x146   : > { %13303 = vmatprep.mubr.msk.f32.mxu1 %vm297_vm0, %v537_v32  ;;  %v4000_v32 = vld [vmem:[#allocation3 + $0xf9] sm:$0xff] }
 0x147   : > { %13304 = vmatmul.mubr.msk.f32.vlgmr.msra.gmra.mrb[0].mxu1 %vm297_vm0, %v538_v33  ;;  %v4001_v33 = vld [vmem:[#allocation3 + $0x109] sm:$0xff] }
 0x148   : > { %13685 = vmatmul.mubr.msk.f32.gmra.mrb[30].mxu0 %vm297_vm0, %v3232_v35  ;;  %v14835_v35 = vpack.c.bf16 %v11652_v30, %v11651_v28  ;;  %13306 = vmatprep.mubr.msk.f32.mxu1 %vm297_vm0, %v16550_v10  ;;  %v3986_v10 = vld [vmem:[#allocation3 + $0x51] sm:$0xff]  ;;  %v17055_v28 = vld [vmem:[#allocation2 + $0xd8] sm:$0xff] }
 0x149   : > { %13695 = vmatprep.mubr.msk.f32.mxu0 %vm297_vm0, %v16766_v37  ;;  %v17057_v30 = vld [vmem:[#allocation2 + $0xe0] sm:$0xff] }
 0x14b   : > { %13307 = vmatmul.mubr.msk.f32.gmra.mrb[2].mxu1 %vm297_vm0, %v16561_v13  ;;  %v3988_v13 = vld [vmem:[#allocation3 + $0x69] sm:$0xff] }
 0x14c   : > { %13696 = vmatmul.mubr.msk.f32.vlgmr.msra.gmra.mrb[0].mxu0 %vm297_vm0, %v16777_v41  ;;  %13309 = vmatprep.mubr.msk.f32.mxu1 %vm297_vm0, %v16563_v14  ;;  %v17005_v14 = vld [vmem:[#allocation2 + $0x60] sm:$0xff] }
 0x14d   : > { %14826 = vmatpush3.bf16.msra.mxu0 %v16646_v58  ;;  %13698 = vmatprep.mubr.msk.f32.mxu0 %vm297_vm0, %v16780_v42  ;;  %v16861_v58 = vld [vmem:[#allocation2 + $0xc1] sm:$0xff] }
 0x14e   : > { %14828 = vmatprep.subr.bf16.mxu0 %v14827_v43 }
 0x14f   : > { %13310 = vmatmul.mubr.msk.f32.gmra.mrb[4].mxu1 %vm297_vm0, %v16576_v18  ;;  %v3990_v18 = vld [vmem:[#allocation3 + $0x81] sm:$0xff] }
 0x150   : > { %13699 = vmatmul.mubr.msk.f32.gmra.mrb[2].mxu0 %vm297_vm0, %v16796_v46  ;;  %13312 = vmatprep.mubr.msk.f32.mxu1 %vm297_vm0, %v16578_v19  ;;  %v3991_v19 = vld [vmem:[#allocation3 + $0x91] sm:$0xff] }
 0x151   : > { %13701 = vmatprep.mubr.msk.f32.mxu0 %vm297_vm0, %v16798_v47  ;;  %14830 = vmatpush3.bf16.msra.mxu0 %v14827_v43  ;;  %v3989_v43 = vld [vmem:[#allocation3 + $0x79] sm:$0xff] }
 0x152   : > { %14832 = vmatprep.subr.bf16.mxu0 %v16800_v49 }
 0x153   : > { %13313 = vmatmul.mubr.msk.f32.gmra.mrb[6].mxu1 %vm297_vm0, %v16586_v21  ;;  %v17017_v21 = vld [vmem:[#allocation2 + $0x80] sm:$0xff] }
 0x154   : > { %13702 = vmatmul.mubr.msk.f32.gmra.mrb[4].mxu0 %vm297_vm0, %v16810_v48  ;;  %13315 = vmatprep.mubr.msk.f32.mxu1 %vm297_vm0, %v17005_v14 }
 0x155   : > { %13704 = vmatprep.mubr.msk.f32.mxu0 %vm297_vm0, %v16812_v50 }
 0x157   : > { %13316 = vmatmul.mubr.msk.f32.gmra.mrb[8].mxu1 %vm297_vm0, %v17007_v44 }
 0x158   : > { %13705 = vmatmul.mubr.msk.f32.gmra.mrb[6].mxu0 %vm297_vm0, %v16823_v51  ;;  %13318 = vmatprep.mubr.msk.f32.mxu1 %vm297_vm0, %v17015_v45 }
 0x159   : > { %13707 = vmatprep.mubr.msk.f32.mxu0 %vm297_vm0, %v16825_v52 }
 0x15b   : > { %13319 = vmatmul.mubr.msk.f32.gmra.mrb[10].mxu1 %vm297_vm0, %v17017_v21 }
 0x15c   : > { %13708 = vmatmul.mubr.msk.f32.gmra.mrb[8].mxu0 %vm297_vm0, %v16835_v53 }
 0x15d   : > { %13710 = vmatprep.mubr.msk.f32.mxu0 %vm297_vm0, %v16837_v54 }
 0x160   : > { %13711 = vmatmul.mubr.msk.f32.gmra.mrb[10].mxu0 %vm297_vm0, %v16847_v55 }
 0x161   : > { %13713 = vmatprep.mubr.msk.f32.mxu0 %vm297_vm0, %v16849_v56 }
 0x164   : > { %13714 = vmatmul.mubr.msk.f32.gmra.mrb[12].mxu0 %vm297_vm0, %v16859_v57 }
 0x165   : > { %13716 = vmatprep.mubr.msk.f32.mxu0 %vm297_vm0, %v16861_v58 }
 0x168   : > { %13717 = vmatmul.mubr.msk.f32.gmra.mrb[14].mxu0 %vm297_vm0, %v16871_v59 }
 0x169   : > { %13719 = vmatprep.mubr.msk.f32.mxu0 %vm297_vm0, %v16873_v60 }
 0x16c   : > { %13720 = vmatmul.mubr.msk.f32.gmra.mrb[16].mxu0 %vm297_vm0, %v16883_v61 }
 0x16d   : > { %13722 = vmatprep.mubr.msk.f32.mxu0 %vm297_vm0, %v16885_v62 }
 0x170   : > { %13723 = vmatmul.mubr.msk.f32.gmra.mrb[18].mxu0 %vm297_vm0, %v16895_v63 }
 0x171   : > { %13725 = vmatprep.mubr.msk.f32.mxu0 %vm297_vm0, %v16897_v0 }
 0x174   : > { %13726 = vmatmul.mubr.msk.f32.gmra.mrb[20].mxu0 %vm297_vm0, %v16907_v1 }
 0x175   : > { %13728 = vmatprep.mubr.msk.f32.mxu0 %vm297_vm0, %v16909_v2 }
 0x178   : > { %13729 = vmatmul.mubr.msk.f32.gmra.mrb[22].mxu0 %vm297_vm0, %v16919_v4 }
 0x179   : > { %13731 = vmatprep.mubr.msk.f32.mxu0 %vm297_vm0, %v16921_v5 }
 0x17c   : > { %13732 = vmatmul.mubr.msk.f32.gmra.mrb[24].mxu0 %vm297_vm0, %v16931_v7 }
 0x17d   : > { %13734 = vmatprep.mubr.msk.f32.mxu0 %vm297_vm0, %v3617_v8  ;;  %v3993_v8 = vld [vmem:[#allocation3 + $0xa9] sm:$0xff] }
 0x180   : > { %13735 = vmatmul.mubr.msk.f32.gmra.mrb[26].mxu0 %vm297_vm0, %v3618_v9  ;;  %v17025_v9 = vld [vmem:[#allocation2 + $0x90] sm:$0xff] }
 0x181   : > { %13737 = vmatprep.mubr.msk.f32.mxu0 %vm297_vm0, %v3619_v11  ;;  %v17027_v11 = vld [vmem:[#allocation2 + $0x98] sm:$0xff]  ;;  %13321 = vmatprep.mubr.msk.f32.mxu1 %vm297_vm0, %v17025_v9 }
 0x182   : > { %13322 = vmatmul.mubr.msk.f32.gmra.mrb[12].mxu1 %vm297_vm0, %v17027_v11 }
 0x184   : > { %13738 = vmatmul.mubr.msk.f32.gmra.mrb[28].mxu0 %vm297_vm0, %v3620_v16  ;;  %v17035_v16 = vld [vmem:[#allocation2 + $0xa8] sm:$0xff] }
 0x185   : > { %13740 = vmatprep.mubr.msk.f32.mxu0 %vm297_vm0, %v3621_v20  ;;  %v3996_v20 = vld [vmem:[#allocation3 + $0xc9] sm:$0xff]  ;;  %13324 = vmatprep.mubr.msk.f32.mxu1 %vm297_vm0, %v17035_v16 }
 0x186   : > { %13325 = vmatmul.mubr.msk.f32.gmra.mrb[14].mxu1 %vm297_vm0, %v17037_v17 }
 0x187   : > { %13327 = vmatprep.mubr.msk.f32.mxu1 %vm297_vm0, %v17045_v23 }
 0x188   : > { %13741 = vmatmul.mubr.msk.f32.gmra.mrb[30].mxu0 %vm297_vm0, %v3622_v24  ;;  %v17047_v24 = vld [vmem:[#allocation2 + $0xc8] sm:$0xff] }
 0x189   : > { %13751 = vmatprep.mubr.msk.f32.mxu0 %vm297_vm0, %v3981_v25  ;;  %v3999_v25 = vld [vmem:[#allocation3 + $0xf1] sm:$0xff] }
 0x18a   : > { %13328 = vmatmul.mubr.msk.f32.gmra.mrb[16].mxu1 %vm297_vm0, %v17047_v24 }
 0x18b   : > { %13330 = vmatprep.mubr.msk.f32.mxu1 %vm297_vm0, %v17055_v28 }
 0x18c   : > { %13752 = vmatmul.mubr.msk.f32.vlgmr.msra.gmra.mrb[0].mxu0 %vm297_vm0, %v3982_v26  ;;  %v17065_v26 = vld [vmem:[#allocation2 + $0xf0] sm:$0xff] }
 0x18d   : > { %14834 = vmatpush3.bf16.msra.mxu0 %v16800_v49  ;;  %13754 = vmatprep.mubr.msk.f32.mxu0 %vm297_vm0, %v3983_v34  ;;  %v3992_v49 = vld [vmem:[#allocation3 + $0x99] sm:$0xff]  ;;  %v17067_v34 = vld [vmem:[#allocation2 + $0xf8] sm:$0xff] }
 0x18e   : > { %14836 = vmatprep.subr.bf16.mxu0 %v14835_v35  ;;  %13331 = vmatmul.mubr.msk.f32.gmra.mrb[18].mxu1 %vm297_vm0, %v17057_v30 }
 0x18f   : > { %13333 = vmatprep.mubr.msk.f32.mxu1 %vm297_vm0, %v17065_v26 }
 0x190   : > { %13755 = vmatmul.mubr.msk.f32.gmra.mrb[2].mxu0 %vm297_vm0, %v3984_v31  ;;  %v17077_v31 = vld [vmem:[#allocation2 + $0x110] sm:$0xff] }
 0x191   : > { %13757 = vmatprep.mubr.msk.f32.mxu0 %vm297_vm0, %v3985_v38  ;;  %14838 = vmatpush3.bf16.msra.mxu0 %v14835_v35  ;;  %v4002_v35 = vld [vmem:[#allocation3 + $0x111] sm:$0xff]  ;;  %v4004_v38 = vld [vmem:[#allocation3 + $0x129] sm:$0xff] }
 0x192   : > { %14840 = vmatprep.subr.bf16.mxu0 %v16987_v39  ;;  %13334 = vmatmul.mubr.msk.f32.gmra.mrb[20].mxu1 %vm297_vm0, %v17067_v34 }
 0x193   : > { %13336 = vmatprep.mubr.msk.f32.mxu1 %vm297_vm0, %v17075_v29 }
 0x194   : > { %13758 = vmatmul.mubr.msk.f32.gmra.mrb[4].mxu0 %vm297_vm0, %v3986_v10  ;;  %v4005_v10 = vld [vmem:[#allocation3 + $0x139] sm:$0xff] }
 0x195   : > { %13760 = vmatprep.mubr.msk.f32.mxu0 %vm297_vm0, %v3987_v40  ;;  %v17085_v40 = vld [vmem:[#allocation2 + $0x120] sm:$0xff] }
 0x196   : > { %13337 = vmatmul.mubr.msk.f32.gmra.mrb[22].mxu1 %vm297_vm0, %v17077_v31 }
 0x197   : > { %13339 = vmatprep.mubr.msk.f32.mxu1 %vm297_vm0, %v17085_v40 }
 0x198   : > { %13761 = vmatmul.mubr.msk.f32.gmra.mrb[6].mxu0 %vm297_vm0, %v3988_v13  ;;  %v17087_v13 = vld [vmem:[#allocation2 + $0x128] sm:$0xff] }
 0x199   : > { %13763 = vmatprep.mubr.msk.f32.mxu0 %vm297_vm0, %v3989_v43  ;;  %v4006_v43 = vld [vmem:[#allocation3 + $0x141] sm:$0xff] }
 0x19a   : > { %13340 = vmatmul.mubr.msk.f32.gmra.mrb[24].mxu1 %vm297_vm0, %v17087_v13 }
 0x19c   : > { %13764 = vmatmul.mubr.msk.f32.gmra.mrb[8].mxu0 %vm297_vm0, %v3990_v18  ;;  %v4007_v18 = vld [vmem:[#allocation3 + $0x151] sm:$0xff] }
 0x19d   : > { %13766 = vmatprep.mubr.msk.f32.mxu0 %vm297_vm0, %v3991_v19  ;;  %v17095_v19 = vld [vmem:[#allocation2 + $0x138] sm:$0xff] }
 0x19e   : > { %13342 = vmatprep.mubr.msk.f32.mxu1 %vm297_vm0, %v17095_v19 }
 0x1a0   : > { %13767 = vmatmul.mubr.msk.f32.gmra.mrb[10].mxu0 %vm297_vm0, %v3992_v49  ;;  %v17097_v49 = vld [vmem:[#allocation2 + $0x140] sm:$0xff] }
 0x1a1   : > { %13769 = vmatprep.mubr.msk.f32.mxu0 %vm297_vm0, %v3993_v8  ;;  %v4008_v8 = vld [vmem:[#allocation3 + $0x159] sm:$0xff]  ;;  %13343 = vmatmul.mubr.msk.f32.gmra.mrb[26].mxu1 %vm297_vm0, %v17097_v49 }
 0x1a4   : > { %13770 = vmatmul.mubr.msk.f32.gmra.mrb[12].mxu0 %vm297_vm0, %v3994_v12  ;;  %v4009_v12 = vld [vmem:[#allocation3 + $0x169] sm:$0xff] }
 0x1a5   : > { %13772 = vmatprep.mubr.msk.f32.mxu0 %vm297_vm0, %v3995_v15  ;;  %v17105_v15 = vld [vmem:[#allocation2 + $0x150] sm:$0xff] }
 0x1a6   : > { %13345 = vmatprep.mubr.msk.f32.mxu1 %vm297_vm0, %v17105_v15 }
 0x1a8   : > { %13773 = vmatmul.mubr.msk.f32.gmra.mrb[14].mxu0 %vm297_vm0, %v3996_v20  ;;  %v17107_v20 = vld [vmem:[#allocation2 + $0x158] sm:$0xff] }
 0x1a9   : > { %13775 = vmatprep.mubr.msk.f32.mxu0 %vm297_vm0, %v3997_v22  ;;  %v11361_v22 = vld [vmem:[%s19014_s2 + $0x20] sm:$0xff]  ;;  %13346 = vmatmul.mubr.msk.f32.gmra.mrb[28].mxu1 %vm297_vm0, %v17107_v20 }
 0x1ac   : > { %13776 = vmatmul.mubr.msk.f32.gmra.mrb[16].mxu0 %vm297_vm0, %v3998_v27  ;;  %v4010_v27 = vld [vmem:[#allocation3 + $0x171] sm:$0xff] }
 0x1ad   : > { %13778 = vmatprep.mubr.msk.f32.mxu0 %vm297_vm0, %v3999_v25  ;;  %v11362_v25 = vld [vmem:[%s19014_s2 + $0x28] sm:$0xff] }
 0x1b0   : > { %13779 = vmatmul.mubr.msk.f32.gmra.mrb[18].mxu0 %vm297_vm0, %v4000_v32  ;;  %v4011_v32 = vld [vmem:[#allocation3 + $0x181] sm:$0xff] }
 0x1b1   : > { %13781 = vmatprep.mubr.msk.f32.mxu0 %vm297_vm0, %v4001_v33  ;;  %v14767_v33 = vpack.c.bf16 %v11362_v25, %v11361_v22  ;;  %v11688_v22 = vld [vmem:[%s19015_s3 + $0xb8] sm:$0xff]  ;;  %v4372_v25 = vld [vmem:[#allocation2 + $0x22] sm:$0xff] }
 0x1b3   : > { %14768 = vmatprep.subr.bf16.mxu1 %v14767_v33 }
 0x1b4   : > { %13782 = vmatmul.mubr.msk.f32.gmra.mrb[20].mxu0 %vm297_vm0, %v4002_v35  ;;  %v17121_v35 = vld [vmem:[#allocation2 + $0x168] sm:$0xff]  ;;  %14770 = vmatpush3.bf16.msra.mxu1 %v14767_v33  ;;  %v4373_v33 = vld [vmem:[#allocation2 + $0x32] sm:$0xff] }
 0x1b5   : > { %13784 = vmatprep.mubr.msk.f32.mxu0 %vm297_vm0, %v4003_v36  ;;  %v17123_v36 = vld [vmem:[#allocation2 + $0x170] sm:$0xff]  ;;  %13348 = vmatprep.mubr.msk.f32.mxu1 %vm297_vm0, %v17121_v35 }
 0x1b6   : > { %19094 = vst [vmem:[#allocation8_spill] sm:$0xff] %v17123_v36  ;;  %13349 = vmatmul.mubr.msk.f32.gmra.mrb[30].mxu1 %vm297_vm0, %v17123_v36  ;;  %v11722_v36 = vld [vmem:[%s19014_s2 + $0xc8] sm:$0xff] }
 0x1b8   : > { %13785 = vmatmul.mubr.msk.f32.gmra.mrb[22].mxu0 %vm297_vm0, %v4004_v38  ;;  %v11363_v38 = vld [vmem:[%s19014_s2 + $0x30] sm:$0xff] }
 0x1b9   : > { %13787 = vmatprep.mubr.msk.f32.mxu0 %vm297_vm0, %v4005_v10  ;;  %v4012_v10 = vld [vmem:[#allocation3 + $0x189] sm:$0xff] }
 0x1bc   : > { %13788 = vmatmul.mubr.msk.f32.gmra.mrb[24].mxu0 %vm297_vm0, %v4006_v43  ;;  %v11364_v43 = vld [vmem:[%s19014_s2 + $0x38] sm:$0xff] }
 0x1bd   : > { %13790 = vmatprep.mubr.msk.f32.mxu0 %vm297_vm0, %v4007_v18  ;;  %v4371_v18 = vld [vmem:[#allocation2 + $0x1a] sm:$0xff] }
 0x1c0   : > { %13791 = vmatmul.mubr.msk.f32.gmra.mrb[26].mxu0 %vm297_vm0, %v4008_v8  ;;  %v14771_v8 = vpack.c.bf16 %v11364_v43, %v11363_v38  ;;  %v11721_v43 = vld [vmem:[%s19014_s2 + $0xc0] sm:$0xff] }
 0x1c1   : > { %13793 = vmatprep.mubr.msk.f32.mxu0 %vm297_vm0, %v4009_v12  ;;  %v11687_v12 = vld [vmem:[%s19015_s3 + $0xb0] sm:$0xff] }
 0x1c2   : > { %14772 = vmatprep.subr.bf16.mxu1 %v14771_v8  ;;  %v14843_v38 = vpack.c.bf16 %v11688_v22, %v11687_v12  ;;  %v4376_v12 = vld [vmem:[#allocation2 + $0x52] sm:$0xff] }
 0x1c3   : > { %14774 = vmatpush3.bf16.msra.mxu1 %v14771_v8  ;;  %v17155_v8 = vpack.c.bf16 %v11722_v36, %v11721_v43  ;;  %v4381_v36 = vld [vmem:[#allocation2 + $0x92] sm:$0xff] }
 0x1c4   : > { %13794 = vmatmul.mubr.msk.f32.gmra.mrb[28].mxu0 %vm297_vm0, %v4010_v27  ;;  %v1251_v27 = vld [vmem:[#allocation2 + $0x1] sm:$0xff]  ;;  %v17243_v22 = vld [vmem:[#allocation2 + $0x159] sm:$0xff] }
 0x1c5   : > { %13796 = vmatprep.mubr.msk.f32.mxu0 %vm297_vm0, %v4011_v32  ;;  %v1252_v32 = vld [vmem:[#allocation2 + $0x9] sm:$0xff]  ;;  %13359 = vmatprep.mubr.msk.f32.mxu1 %vm297_vm0, %v1251_v27  ;;  %v11400_v43 = vld [vmem:[%s19015_s3 + $0x38] sm:$0xff] }
 0x1c6   : > { %13360 = vmatmul.mubr.msk.f32.vlgmr.msra.gmra.mrb[0].mxu1 %vm297_vm0, %v1252_v32  ;;  %v4401_v27 = vld [vmem:[#allocation2 + $0x182] sm:$0xff]  ;;  %v11399_v32 = vld [vmem:[%s19015_s3 + $0x30] sm:$0xff] }
 0x1c7   : > { %13362 = vmatprep.mubr.msk.f32.mxu1 %vm297_vm0, %v16766_v37  ;;  %v4378_v37 = vld [vmem:[#allocation2 + $0x6a] sm:$0xff] }
 0x1c8   : > { %13797 = vmatmul.mubr.msk.f32.gmra.mrb[30].mxu0 %vm297_vm0, %v4012_v10  ;;  %v4374_v10 = vld [vmem:[#allocation2 + $0x3a] sm:$0xff] }
 0x1c9   : > { %13807 = vmatprep.mubr.msk.f32.mxu0 %vm297_vm0, %v4371_v18  ;;  %v4375_v18 = vld [vmem:[#allocation2 + $0x4a] sm:$0xff] }
 0x1ca   : > { %13363 = vmatmul.mubr.msk.f32.gmra.mrb[2].mxu1 %vm297_vm0, %v16777_v41  ;;  %v4379_v41 = vld [vmem:[#allocation2 + $0x7a] sm:$0xff] }
 0x1cb   : > { %13365 = vmatprep.mubr.msk.f32.mxu1 %vm297_vm0, %v16780_v42  ;;  %v4380_v42 = vld [vmem:[#allocation2 + $0x82] sm:$0xff] }
 0x1cc   : > { %13808 = vmatmul.mubr.msk.f32.vlgmr.msra.gmra.mrb[0].mxu0 %vm297_vm0, %v4372_v25  ;;  %v17251_v25 = vld [vmem:[#allocation2 + $0x169] sm:$0xff] }
 0x1cd   : > { %14842 = vmatpush3.bf16.msra.mxu0 %v16987_v39  ;;  %13810 = vmatprep.mubr.msk.f32.mxu0 %vm297_vm0, %v4373_v33  ;;  %v4377_v39 = vld [vmem:[#allocation2 + $0x62] sm:$0xff]  ;;  %v4402_v33 = vld [vmem:[#allocation2 + $0x18a] sm:$0xff] }
 0x1ce   : > { %14844 = vmatprep.subr.bf16.mxu0 %v14843_v38  ;;  %13366 = vmatmul.mubr.msk.f32.gmra.mrb[4].mxu1 %vm297_vm0, %v16796_v46  ;;  %v4382_v46 = vld [vmem:[#allocation2 + $0x9a] sm:$0xff] }
 0x1cf   : > { %13368 = vmatprep.mubr.msk.f32.mxu1 %vm297_vm0, %v16798_v47  ;;  %v4383_v47 = vld [vmem:[#allocation2 + $0xaa] sm:$0xff] }
 0x1d0   : > { %13811 = vmatmul.mubr.msk.f32.gmra.mrb[2].mxu0 %vm297_vm0, %v4374_v10  ;;  %v4761_v10 = vld [vmem:[#allocation3 + $0x1a] sm:$0xff] }
 0x1d1   : > { %13813 = vmatprep.mubr.msk.f32.mxu0 %vm297_vm0, %v4375_v18  ;;  %14846 = vmatpush3.bf16.msra.mxu0 %v14843_v38  ;;  %v17257_v38 = vld [vmem:[#allocation2 + $0x171] sm:$0xff]  ;;  %v14779_v18 = vpack.c.bf16 %v11400_v43, %v11399_v32  ;;  %v17343_v43 = vld [vmem:[#allocation3 + $0xa9] sm:$0xff] }
 0x1d2   : > { %14848 = vmatprep.subr.bf16.mxu0 %v17155_v8  ;;  %13369 = vmatmul.mubr.msk.f32.gmra.mrb[6].mxu1 %vm297_vm0, %v16810_v48  ;;  %v4384_v48 = vld [vmem:[#allocation2 + $0xb2] sm:$0xff] }
 0x1d3   : > { %13371 = vmatprep.mubr.msk.f32.mxu1 %vm297_vm0, %v16812_v50  ;;  %v4385_v50 = vld [vmem:[#allocation2 + $0xc2] sm:$0xff]  ;;  %v4775_v32 = vld [vmem:[#allocation3 + $0xc2] sm:$0xff] }
 0x1d4   : > { %13814 = vmatmul.mubr.msk.f32.gmra.mrb[4].mxu0 %vm297_vm0, %v4376_v12  ;;  %v11723_v12 = vld [vmem:[%s19014_s2 + $0xd0] sm:$0xff] }
 0x1d5   : > { %13816 = vmatprep.mubr.msk.f32.mxu0 %vm297_vm0, %v4377_v39  ;;  %v11724_v39 = vld [vmem:[%s19014_s2 + $0xd8] sm:$0xff] }
 0x1d6   : > { %13372 = vmatmul.mubr.msk.f32.gmra.mrb[8].mxu1 %vm297_vm0, %v16823_v51  ;;  %v4386_v51 = vld [vmem:[#allocation2 + $0xca] sm:$0xff] }
 0x1d7   : > { %13374 = vmatprep.mubr.msk.f32.mxu1 %vm297_vm0, %v16825_v52  ;;  %v4387_v52 = vld [vmem:[#allocation2 + $0xda] sm:$0xff] }
 0x1d8   : > { %13817 = vmatmul.mubr.msk.f32.gmra.mrb[6].mxu0 %vm297_vm0, %v4378_v37  ;;  %v1641_v37 = vld [vmem:[#allocation3 + $0x1] sm:$0xff] }
 0x1d9   : > { %13819 = vmatprep.mubr.msk.f32.mxu0 %vm297_vm0, %v4379_v41  ;;  %v4762_v41 = vld [vmem:[#allocation3 + $0x22] sm:$0xff] }
 0x1da   : > { %13375 = vmatmul.mubr.msk.f32.gmra.mrb[10].mxu1 %vm297_vm0, %v16835_v53  ;;  %v4388_v53 = vld [vmem:[#allocation2 + $0xe2] sm:$0xff] }
 0x1db   : > { %13377 = vmatprep.mubr.msk.f32.mxu1 %vm297_vm0, %v16837_v54  ;;  %v4389_v54 = vld [vmem:[#allocation2 + $0xf2] sm:$0xff] }
 0x1dc   : > { %13820 = vmatmul.mubr.msk.f32.gmra.mrb[8].mxu0 %vm297_vm0, %v4380_v42  ;;  %v4763_v42 = vld [vmem:[#allocation3 + $0x32] sm:$0xff] }
 0x1dd   : > { %13822 = vmatprep.mubr.msk.f32.mxu0 %vm297_vm0, %v4381_v36  ;;  %v14851_v36 = vpack.c.bf16 %v11724_v39, %v11723_v12  ;;  %v17350_v12 = vld [vmem:[#allocation3 + $0xb1] sm:$0xff]  ;;  %v17353_v39 = vld [vmem:[#allocation3 + $0xc1] sm:$0xff] }
 0x1de   : > { %13378 = vmatmul.mubr.msk.f32.gmra.mrb[12].mxu1 %vm297_vm0, %v16847_v55  ;;  %v4390_v55 = vld [vmem:[#allocation2 + $0xfa] sm:$0xff] }
 0x1df   : > { %13380 = vmatprep.mubr.msk.f32.mxu1 %vm297_vm0, %v16849_v56  ;;  %v4391_v56 = vld [vmem:[#allocation2 + $0x10a] sm:$0xff] }
 0x1e0   : > { %13823 = vmatmul.mubr.msk.f32.gmra.mrb[10].mxu0 %vm297_vm0, %v4382_v46  ;;  %v11757_v46 = vld [vmem:[%s19015_s3 + $0xc0] sm:$0xff] }
 0x1e1   : > { %13825 = vmatprep.mubr.msk.f32.mxu0 %vm297_vm0, %v4383_v47  ;;  %v11758_v47 = vld [vmem:[%s19015_s3 + $0xc8] sm:$0xff] }
 0x1e2   : > { %13381 = vmatmul.mubr.msk.f32.gmra.mrb[14].mxu1 %vm297_vm0, %v16859_v57  ;;  %v4392_v57 = vld [vmem:[#allocation2 + $0x112] sm:$0xff] }
 0x1e3   : > { %13383 = vmatprep.mubr.msk.f32.mxu1 %vm297_vm0, %v16861_v58  ;;  %v4393_v58 = vld [vmem:[#allocation2 + $0x122] sm:$0xff] }
 0x1e4   : > { %13826 = vmatmul.mubr.msk.f32.gmra.mrb[12].mxu0 %vm297_vm0, %v4384_v48  ;;  %v1642_v48 = vld [vmem:[#allocation3 + $0x9] sm:$0xff] }
 0x1e5   : > { %13828 = vmatprep.mubr.msk.f32.mxu0 %vm297_vm0, %v4385_v50  ;;  %v4764_v50 = vld [vmem:[#allocation3 + $0x3a] sm:$0xff] }
 0x1e6   : > { %13384 = vmatmul.mubr.msk.f32.gmra.mrb[16].mxu1 %vm297_vm0, %v16871_v59  ;;  %v4394_v59 = vld [vmem:[#allocation2 + $0x12a] sm:$0xff] }
 0x1e7   : > { %13386 = vmatprep.mubr.msk.f32.mxu1 %vm297_vm0, %v16873_v60  ;;  %v4395_v60 = vld [vmem:[#allocation2 + $0x13a] sm:$0xff] }
 0x1e8   : > { %13829 = vmatmul.mubr.msk.f32.gmra.mrb[14].mxu0 %vm297_vm0, %v4386_v51  ;;  %v1643_v51 = vld [vmem:[#allocation3 + $0x19] sm:$0xff] }
 0x1e9   : > { %13831 = vmatprep.mubr.msk.f32.mxu0 %vm297_vm0, %v4387_v52  ;;  %v4765_v52 = vld [vmem:[#allocation3 + $0x4a] sm:$0xff] }
 0x1ea   : > { %13387 = vmatmul.mubr.msk.f32.gmra.mrb[18].mxu1 %vm297_vm0, %v16883_v61  ;;  %v4396_v61 = vld [vmem:[#allocation2 + $0x142] sm:$0xff] }
 0x1eb   : > { %13389 = vmatprep.mubr.msk.f32.mxu1 %vm297_vm0, %v16885_v62  ;;  %v4397_v62 = vld [vmem:[#allocation2 + $0x152] sm:$0xff] }
 0x1ec   : > { %13832 = vmatmul.mubr.msk.f32.gmra.mrb[16].mxu0 %vm297_vm0, %v4388_v53  ;;  %v17285_v53 = vpack.c.bf16 %v11758_v47, %v11757_v46  ;;  %v4780_v46 = vld [vmem:[#allocation3 + $0xfa] sm:$0xff]  ;;  %v4781_v47 = vld [vmem:[#allocation3 + $0x10a] sm:$0xff] }
 0x1ed   : > { %13834 = vmatprep.mubr.msk.f32.mxu0 %vm297_vm0, %v4389_v54  ;;  %v1644_v54 = vld [vmem:[#allocation3 + $0x21] sm:$0xff] }
 0x1ee   : > { %13390 = vmatmul.mubr.msk.f32.gmra.mrb[20].mxu1 %vm297_vm0, %v16895_v63  ;;  %v4398_v63 = vld [vmem:[#allocation2 + $0x15a] sm:$0xff] }
 0x1ef   : > { %13392 = vmatprep.mubr.msk.f32.mxu1 %vm297_vm0, %v16897_v0  ;;  %v4399_v0 = vld [vmem:[#allocation2 + $0x16a] sm:$0xff] }
 0x1f0   : > { %13835 = vmatmul.mubr.msk.f32.gmra.mrb[18].mxu0 %vm297_vm0, %v4390_v55  ;;  %v17291_v55 = vld [vmem:[#allocation3 + $0x31] sm:$0xff] }
 0x1f1   : > { %13837 = vmatprep.mubr.msk.f32.mxu0 %vm297_vm0, %v4391_v56  ;;  %v4767_v56 = vld [vmem:[#allocation3 + $0x62] sm:$0xff] }
 0x1f2   : > { %13393 = vmatmul.mubr.msk.f32.gmra.mrb[22].mxu1 %vm297_vm0, %v16907_v1  ;;  %v17235_v1 = vld [vmem:[#allocation2 + $0x151] sm:$0xff] }
 0x1f3   : > { %13395 = vmatprep.mubr.msk.f32.mxu1 %vm297_vm0, %v16909_v2  ;;  %v11397_v2 = vld [vmem:[%s19015_s3 + $0x20] sm:$0xff] }
 0x1f4   : > { %13838 = vmatmul.mubr.msk.f32.gmra.mrb[20].mxu0 %vm297_vm0, %v4392_v57  ;;  %v17299_v57 = vld [vmem:[#allocation3 + $0x39] sm:$0xff] }
 0x1f5   : > { %13840 = vmatprep.mubr.msk.f32.mxu0 %vm297_vm0, %v4393_v58  ;;  %v4768_v58 = vld [vmem:[#allocation3 + $0x6a] sm:$0xff] }
 0x1f6   : > { %13396 = vmatmul.mubr.msk.f32.gmra.mrb[24].mxu1 %vm297_vm0, %v16919_v4  ;;  %v4400_v4 = vld [vmem:[#allocation2 + $0x172] sm:$0xff] }
 0x1f7   : > { %13398 = vmatprep.mubr.msk.f32.mxu1 %vm297_vm0, %v16921_v5  ;;  %v11398_v5 = vld [vmem:[%s19015_s3 + $0x28] sm:$0xff] }
 0x1f8   : > { %13841 = vmatmul.mubr.msk.f32.gmra.mrb[22].mxu0 %vm297_vm0, %v4394_v59  ;;  %v4769_v59 = vld [vmem:[#allocation3 + $0x7a] sm:$0xff] }
 0x1f9   : > { %13843 = vmatprep.mubr.msk.f32.mxu0 %vm297_vm0, %v4395_v60  ;;  %v17310_v60 = vld [vmem:[#allocation3 + $0x51] sm:$0xff] }
 0x1fa   : > { %13399 = vmatmul.mubr.msk.f32.gmra.mrb[26].mxu1 %vm297_vm0, %v16931_v7  ;;  %v14775_v7 = vpack.c.bf16 %v11398_v5, %v11397_v2  ;;  %v4772_v2 = vld [vmem:[#allocation3 + $0x9a] sm:$0xff] }
 0x1fb   : > { %13401 = vmatprep.mubr.msk.f32.mxu1 %vm297_vm0, %v17235_v1  ;;  %v17330_v5 = vld [vmem:[#allocation3 + $0x81] sm:$0xff] }
 0x1fc   : > { %13844 = vmatmul.mubr.msk.f32.gmra.mrb[24].mxu0 %vm297_vm0, %v4396_v61  ;;  %14776 = vmatprep.subr.bf16.mxu1 %v14775_v7  ;;  %v17313_v61 = vld [vmem:[#allocation3 + $0x61] sm:$0xff] }
 0x1fd   : > { %13846 = vmatprep.mubr.msk.f32.mxu0 %vm297_vm0, %v4397_v62  ;;  %14778 = vmatpush3.bf16.msra.mxu1 %v14775_v7  ;;  %v4771_v62 = vld [vmem:[#allocation3 + $0x92] sm:$0xff] }
 0x1fe   : > { %13402 = vmatmul.mubr.msk.f32.gmra.mrb[28].mxu1 %vm297_vm0, %v17243_v22  ;;  %14780 = vmatprep.subr.bf16.mxu1 %v14779_v18  ;;  %v4774_v7 = vld [vmem:[#allocation3 + $0xb2] sm:$0xff] }
 0x1ff   : > { %13404 = vmatprep.mubr.msk.f32.mxu1 %vm297_vm0, %v17251_v25 }
 0x200   : > { %13847 = vmatmul.mubr.msk.f32.gmra.mrb[26].mxu0 %vm297_vm0, %v4398_v63  ;;  %v17320_v63 = vld [vmem:[#allocation3 + $0x69] sm:$0xff] }
 0x201   : > { %13849 = vmatprep.mubr.msk.f32.mxu0 %vm297_vm0, %v4399_v0  ;;  %14782 = vmatpush3.bf16.msra.mxu1 %v14779_v18  ;;  %v17323_v0 = vld [vmem:[#allocation3 + $0x79] sm:$0xff] }
 0x202   : > { %13405 = vmatmul.mubr.msk.f32.gmra.mrb[30].mxu1 %vm297_vm0, %v17257_v38  ;;  %14967 = vmatprep.subr.bf16.mxu1 %v15980_v3  ;;  %v4777_v18 = vld [vmem:[#allocation3 + $0xda] sm:$0xff] }
 0x203   : > { %13415 = vmatprep.mubr.msk.f32.mxu1 %vm297_vm0, %v1641_v37  ;;  %v4778_v37 = vld [vmem:[#allocation3 + $0xe2] sm:$0xff] }
 0x204   : > { %13850 = vmatmul.mubr.msk.f32.gmra.mrb[28].mxu0 %vm297_vm0, %v4400_v4  ;;  %v4773_v4 = vld [vmem:[#allocation3 + $0xaa] sm:$0xff] }
 0x205   : > { %13852 = vmatprep.mubr.msk.f32.mxu0 %vm297_vm0, %v4401_v27  ;;  %v17333_v27 = vld [vmem:[#allocation3 + $0x91] sm:$0xff] }
 0x206   : > { %13416 = vmatmul.mubr.msk.f32.vlgmr.msra.gmra.mrb[0].mxu1 %vm297_vm0, %v1642_v48  ;;  %v17370_v48 = vld [vmem:[#allocation3 + $0xe1] sm:$0xff] }
 0x207   : > { %13418 = vmatprep.mubr.msk.f32.mxu1 %vm297_vm0, %v1643_v51  ;;  %14969 = vmatpush3.bf16.msra.mxu1 %v15980_v3  ;;  %v17303_v3 = vld [vmem:[#allocation3 + $0x49] sm:$0xff]  ;;  %v4782_v51 = vld [vmem:[#allocation3 + $0x112] sm:$0xff] }
 0x208   : > { %13853 = vmatmul.mubr.msk.f32.gmra.mrb[30].mxu0 %vm297_vm0, %v4402_v33  ;;  %14968 = vmatprep.subr.bf16.mxu1 %v16314_v6  ;;  %v17340_v33 = vld [vmem:[#allocation3 + $0x99] sm:$0xff] }
 0x209   : > { %13863 = vmatprep.mubr.msk.f32.mxu0 %vm297_vm0, %v4761_v10  ;;  %v4776_v10 = vld [vmem:[#allocation3 + $0xca] sm:$0xff] }
 0x20a   : > { %13419 = vmatmul.mubr.msk.f32.gmra.mrb[2].mxu1 %vm297_vm0, %v1644_v54  ;;  %v17380_v54 = vld [vmem:[#allocation3 + $0xf9] sm:$0xff] }
 0x20b   : > { %13421 = vmatprep.mubr.msk.f32.mxu1 %vm297_vm0, %v17291_v55  ;;  %14970 = vmatpush3.bf16.msra.mxu1 %v16314_v6  ;;  %v4770_v6 = vld [vmem:[#allocation3 + $0x82] sm:$0xff] }
 0x20c   : > { %13864 = vmatmul.mubr.msk.f32.vlgmr.msra.gmra.mrb[0].mxu0 %vm297_vm0, %v4762_v41  ;;  %v4779_v41 = vld [vmem:[#allocation3 + $0xf2] sm:$0xff] }
 0x20d   : > { %14850 = vmatpush3.bf16.msra.mxu0 %v17155_v8  ;;  %13866 = vmatprep.mubr.msk.f32.mxu0 %vm297_vm0, %v4763_v42  ;;  %v4766_v8 = vld [vmem:[#allocation3 + $0x52] sm:$0xff]  ;;  %v17360_v42 = vld [vmem:[#allocation3 + $0xc9] sm:$0xff] }
 0x20e   : > { %14852 = vmatprep.subr.bf16.mxu0 %v14851_v36  ;;  %13422 = vmatmul.mubr.msk.f32.gmra.mrb[4].mxu1 %vm297_vm0, %v17299_v57 }
 0x20f   : > { %13424 = vmatprep.mubr.msk.f32.mxu1 %vm297_vm0, %v17303_v3 }
 0x210   : > { %13867 = vmatmul.mubr.msk.f32.gmra.mrb[2].mxu0 %vm297_vm0, %v4764_v50  ;;  %v17373_v50 = vld [vmem:[#allocation3 + $0xf1] sm:$0xff] }
 0x211   : > { %13869 = vmatprep.mubr.msk.f32.mxu0 %vm297_vm0, %v4765_v52  ;;  %14854 = vmatpush3.bf16.msra.mxu0 %v14851_v36  ;;  %v17363_v36 = vld [vmem:[#allocation3 + $0xd9] sm:$0xff]  ;;  %v4783_v52 = vld [vmem:[#allocation3 + $0x122] sm:$0xff] }
 0x212   : > { %14856 = vmatprep.subr.bf16.mxu0 %v17285_v53  ;;  %13425 = vmatmul.mubr.msk.f32.gmra.mrb[6].mxu1 %vm297_vm0, %v17310_v60 }
 0x213   : > { %13427 = vmatprep.mubr.msk.f32.mxu1 %vm297_vm0, %v17313_v61 }
 0x214   : > { %13870 = vmatmul.mubr.msk.f32.gmra.mrb[4].mxu0 %vm297_vm0, %v4766_v8  ;;  %v17383_v8 = vld [vmem:[#allocation3 + $0x109] sm:$0xff] }
 0x215   : > { %13872 = vmatprep.mubr.msk.f32.mxu0 %vm297_vm0, %v4767_v56  ;;  %v4784_v56 = vld [vmem:[#allocation3 + $0x12a] sm:$0xff] }
 0x216   : > { %13428 = vmatmul.mubr.msk.f32.gmra.mrb[8].mxu1 %vm297_vm0, %v17320_v63 }
 0x217   : > { %13430 = vmatprep.mubr.msk.f32.mxu1 %vm297_vm0, %v17323_v0 }
 0x218   : > { %13873 = vmatmul.mubr.msk.f32.gmra.mrb[6].mxu0 %vm297_vm0, %v4768_v58  ;;  %v4785_v58 = vld [vmem:[#allocation3 + $0x13a] sm:$0xff] }
 0x219   : > { %13875 = vmatprep.mubr.msk.f32.mxu0 %vm297_vm0, %v4769_v59  ;;  %v17390_v59 = vld [vmem:[#allocation3 + $0x111] sm:$0xff] }
 0x21a   : > { %13431 = vmatmul.mubr.msk.f32.gmra.mrb[10].mxu1 %vm297_vm0, %v17330_v5 }
 0x21b   : > { %13433 = vmatprep.mubr.msk.f32.mxu1 %vm297_vm0, %v17333_v27 }
 0x21c   : > { %13876 = vmatmul.mubr.msk.f32.gmra.mrb[8].mxu0 %vm297_vm0, %v4770_v6  ;;  %v17393_v6 = vld [vmem:[#allocation3 + $0x121] sm:$0xff] }
 0x21d   : > { %13878 = vmatprep.mubr.msk.f32.mxu0 %vm297_vm0, %v4771_v62  ;;  %v4786_v62 = vld [vmem:[#allocation3 + $0x142] sm:$0xff] }
 0x21e   : > { %13434 = vmatmul.mubr.msk.f32.gmra.mrb[12].mxu1 %vm297_vm0, %v17340_v33 }
 0x21f   : > { %13436 = vmatprep.mubr.msk.f32.mxu1 %vm297_vm0, %v17343_v43 }
 0x220   : > { %13879 = vmatmul.mubr.msk.f32.gmra.mrb[10].mxu0 %vm297_vm0, %v4772_v2  ;;  %v4787_v2 = vld [vmem:[#allocation3 + $0x152] sm:$0xff] }
 0x221   : > { %13881 = vmatprep.mubr.msk.f32.mxu0 %vm297_vm0, %v4773_v4  ;;  %v17400_v4 = vld [vmem:[#allocation3 + $0x129] sm:$0xff] }
 0x222   : > { %13437 = vmatmul.mubr.msk.f32.gmra.mrb[14].mxu1 %vm297_vm0, %v17350_v12 }
 0x223   : > { %13439 = vmatprep.mubr.msk.f32.mxu1 %vm297_vm0, %v17353_v39 }
 0x224   : > { %13882 = vmatmul.mubr.msk.f32.gmra.mrb[12].mxu0 %vm297_vm0, %v4774_v7  ;;  %v17403_v7 = vld [vmem:[#allocation3 + $0x139] sm:$0xff] }
 0x225   : > { %13884 = vmatprep.mubr.msk.f32.mxu0 %vm297_vm0, %v4775_v32  ;;  %v4788_v32 = vld [vmem:[#allocation3 + $0x15a] sm:$0xff] }
 0x226   : > { %13440 = vmatmul.mubr.msk.f32.gmra.mrb[16].mxu1 %vm297_vm0, %v17360_v42 }
 0x227   : > { %13442 = vmatprep.mubr.msk.f32.mxu1 %vm297_vm0, %v17363_v36 }
 0x228   : > { %13885 = vmatmul.mubr.msk.f32.gmra.mrb[14].mxu0 %vm297_vm0, %v4776_v10  ;;  %v4789_v10 = vld [vmem:[#allocation3 + $0x16a] sm:$0xff] }
 0x229   : > { %13887 = vmatprep.mubr.msk.f32.mxu0 %vm297_vm0, %v4777_v18  ;;  %v17410_v18 = vld [vmem:[#allocation3 + $0x141] sm:$0xff] }
 0x22a   : > { %13443 = vmatmul.mubr.msk.f32.gmra.mrb[18].mxu1 %vm297_vm0, %v17370_v48 }
 0x22b   : > { %13445 = vmatprep.mubr.msk.f32.mxu1 %vm297_vm0, %v17373_v50 }
 0x22c   : > { %13888 = vmatmul.mubr.msk.f32.gmra.mrb[16].mxu0 %vm297_vm0, %v4778_v37  ;;  %v17413_v37 = vld [vmem:[#allocation3 + $0x151] sm:$0xff] }
 0x22d   : > { %13890 = vmatprep.mubr.msk.f32.mxu0 %vm297_vm0, %v4779_v41  ;;  %v4790_v41 = vld [vmem:[#allocation3 + $0x172] sm:$0xff] }
 0x22e   : > { %13446 = vmatmul.mubr.msk.f32.gmra.mrb[20].mxu1 %vm297_vm0, %v17380_v54 }
 0x22f   : > { %13448 = vmatprep.mubr.msk.f32.mxu1 %vm297_vm0, %v17383_v8 }
 0x230   : > { %13891 = vmatmul.mubr.msk.f32.gmra.mrb[18].mxu0 %vm297_vm0, %v4780_v46  ;;  %v4791_v46 = vld [vmem:[#allocation3 + $0x182] sm:$0xff] }
 0x231   : > { %13893 = vmatprep.mubr.msk.f32.mxu0 %vm297_vm0, %v4781_v47  ;;  %v17420_v47 = vld [vmem:[#allocation3 + $0x159] sm:$0xff] }
 0x232   : > { %13449 = vmatmul.mubr.msk.f32.gmra.mrb[22].mxu1 %vm297_vm0, %v17390_v59  ;;  %19095 = vst [vmem:[#allocation9_spill] sm:$0xff] %v17420_v47 }
 0x233   : > { %13451 = vmatprep.mubr.msk.f32.mxu1 %vm297_vm0, %v17393_v6 }
 0x234   : > { %13894 = vmatmul.mubr.msk.f32.gmra.mrb[20].mxu0 %vm297_vm0, %v4782_v51  ;;  %v17423_v51 = vld [vmem:[#allocation3 + $0x169] sm:$0xff] }
 0x235   : > { %13896 = vmatprep.mubr.msk.f32.mxu0 %vm297_vm0, %v4783_v52  ;;  %19096 = vst [vmem:[#allocation10_spill] sm:$0xff] %v17423_v51  ;;  %v4792_v52 = vld [vmem:[#allocation3 + $0x18a] sm:$0xff] }
 0x236   : > { %13452 = vmatmul.mubr.msk.f32.gmra.mrb[24].mxu1 %vm297_vm0, %v17400_v4 }
 0x237   : > { %13454 = vmatprep.mubr.msk.f32.mxu1 %vm297_vm0, %v17403_v7 }
 0x238   : > { %13897 = vmatmul.mubr.msk.f32.gmra.mrb[22].mxu0 %vm297_vm0, %v4784_v56  ;;  %v5152_v56 = vld [vmem:[#allocation2 + $0x30] sm:$0xff] }
 0x239   : > { %13899 = vmatprep.mubr.msk.f32.mxu0 %vm297_vm0, %v4785_v58  ;;  %v11759_v58 = vld [vmem:[%s19015_s3 + $0xd0] sm:$0xff] }
 0x23a   : > { %13455 = vmatmul.mubr.msk.f32.gmra.mrb[26].mxu1 %vm297_vm0, %v17410_v18 }
 0x23b   : > { %13457 = vmatprep.mubr.msk.f32.mxu1 %vm297_vm0, %v17413_v37 }
 0x23c   : > { %13900 = vmatmul.mubr.msk.f32.gmra.mrb[24].mxu0 %vm297_vm0, %v4786_v62  ;;  %v11760_v62 = vld [vmem:[%s19015_s3 + $0xd8] sm:$0xff] }
 0x23d   : > { %13902 = vmatprep.mubr.msk.f32.mxu0 %vm297_vm0, %v4787_v2  ;;  %v17436_v2 = vld [vmem:[#allocation3 + $0x171] sm:$0xff] }
 0x23e   : > { %13458 = vmatmul.mubr.msk.f32.gmra.mrb[28].mxu1 %vm297_vm0, %v17420_v47  ;;  %v11793_v47 = vld [vmem:[%s19014_s2 + $0xe0] sm:$0xff] }
 0x23f   : > { %13460 = vmatprep.mubr.msk.f32.mxu1 %vm297_vm0, %v17423_v51  ;;  %v11794_v51 = vld [vmem:[%s19014_s2 + $0xe8] sm:$0xff] }
 0x240   : > { %13903 = vmatmul.mubr.msk.f32.gmra.mrb[26].mxu0 %vm297_vm0, %v4788_v32  ;;  %v17439_v32 = vld [vmem:[#allocation2 + $0xc2] sm:$0xff] }
 0x241   : > { %13905 = vmatprep.mubr.msk.f32.mxu0 %vm297_vm0, %v4789_v10  ;;  %19097 = vst [vmem:[#allocation11_spill] sm:$0xff] %v17439_v32  ;;  %v5153_v10 = vld [vmem:[#allocation2 + $0x38] sm:$0xff] }
 0x242   : > { %13461 = vmatmul.mubr.msk.f32.gmra.mrb[30].mxu1 %vm297_vm0, %v17436_v2 }
 0x243   : > { %13495 = vmatprep.mubr.msk.f32.mxu1 %vm297_vm0, %v17439_v32  ;;  %v17465_v32 = vld [vmem:[#allocation2 + $0xe2] sm:$0xff] }
 0x244   : > { %13906 = vmatmul.mubr.msk.f32.gmra.mrb[28].mxu0 %vm297_vm0, %v4790_v41  ;;  %v5154_v41 = vld [vmem:[#allocation2 + $0x48] sm:$0xff] }
 0x245   : > { %13908 = vmatprep.mubr.msk.f32.mxu0 %vm297_vm0, %v4791_v46  ;;  %v14859_v46 = vpack.c.bf16 %v11760_v62, %v11759_v58  ;;  %v17457_v58 = vld [vmem:[#allocation2 + $0xda] sm:$0xff]  ;;  %v17459_v62 = vpack.c.bf16 %v11794_v51, %v11793_v47  ;;  %v17481_v47 = vld [vmem:[#allocation2 + $0x10a] sm:$0xff]  ;;  %v17493_v51 = vld [vmem:[#allocation2 + $0x122] sm:$0xff] }
 0x248   : > { %13909 = vmatmul.mubr.msk.f32.gmra.mrb[30].mxu0 %vm297_vm0, %v4792_v52  ;;  %v17452_v52 = vld [vmem:[#allocation2 + $0xca] sm:$0xff] }
 0x249   : > { %13919 = vmatprep.mubr.msk.f32.mxu0 %vm297_vm0, %v5152_v56  ;;  %v5155_v56 = vld [vmem:[#allocation2 + $0x50] sm:$0xff]  ;;  %13496 = vmatmul.mubr.msk.f32.vlgmr.msra.gmra.mrb[16].mxu1 %vm297_vm0, %v17452_v52 }
 0x24a   : > { %13498 = vmatprep.mubr.msk.f32.mxu1 %vm297_vm0, %v17457_v58 }
 0x24c   : > { %13920 = vmatmul.mubr.msk.f32.vlgmr.msra.gmra.mrb[0].mxu0 %vm297_vm0, %v5153_v10  ;;  %v17468_v10 = vld [vmem:[#allocation2 + $0xf2] sm:$0xff] }
 0x24d   : > { %14858 = vmatpush3.bf16.msra.mxu0 %v17285_v53  ;;  %13922 = vmatprep.mubr.msk.f32.mxu0 %vm297_vm0, %v5154_v41  ;;  %v17477_v53 = vld [vmem:[#allocation2 + $0xfa] sm:$0xff] }
 0x24e   : > { %14860 = vmatprep.subr.bf16.mxu0 %v14859_v46  ;;  %13499 = vmatmul.mubr.msk.f32.gmra.mrb[18].mxu1 %vm297_vm0, %v17465_v32 }
 0x24f   : > { %13501 = vmatprep.mubr.msk.f32.mxu1 %vm297_vm0, %v17468_v10 }
 0x250   : > { %13923 = vmatmul.mubr.msk.f32.gmra.mrb[2].mxu0 %vm297_vm0, %v5155_v56  ;;  %v5549_v56 = vld [vmem:[#allocation3 + $0x78] sm:$0xff] }
 0x251   : > { %13925 = vmatprep.mubr.msk.f32.mxu0 %vm297_vm0, %v17005_v14  ;;  %14862 = vmatpush3.bf16.msra.mxu0 %v14859_v46  ;;  %v17489_v14 = vld [vmem:[#allocation2 + $0x112] sm:$0xff] }
 0x252   : > { %14864 = vmatprep.subr.bf16.mxu0 %v17459_v62  ;;  %13502 = vmatmul.mubr.msk.f32.gmra.mrb[20].mxu1 %vm297_vm0, %v17477_v53  ;;  %v5548_v46 = vld [vmem:[#allocation3 + $0x68] sm:$0xff] }
 0x253   : > { %13504 = vmatprep.mubr.msk.f32.mxu1 %vm297_vm0, %v17481_v47 }
 0x254   : > { %13926 = vmatmul.mubr.msk.f32.gmra.mrb[4].mxu0 %vm297_vm0, %v17007_v44  ;;  %v17501_v44 = vld [vmem:[#allocation2 + $0x12a] sm:$0xff] }
 0x255   : > { %13928 = vmatprep.mubr.msk.f32.mxu0 %vm297_vm0, %v17015_v45  ;;  %v17505_v45 = vld [vmem:[#allocation2 + $0x13a] sm:$0xff] }
 0x256   : > { %13505 = vmatmul.mubr.msk.f32.gmra.mrb[22].mxu1 %vm297_vm0, %v17489_v14 }
 0x257   : > { %13507 = vmatprep.mubr.msk.f32.mxu1 %vm297_vm0, %v17493_v51 }
 0x258   : > { %13929 = vmatmul.mubr.msk.f32.gmra.mrb[6].mxu0 %vm297_vm0, %v17017_v21  ;;  %v17513_v21 = vld [vmem:[#allocation2 + $0x142] sm:$0xff] }
 0x259   : > { %13931 = vmatprep.mubr.msk.f32.mxu0 %vm297_vm0, %v17025_v9  ;;  %v17517_v9 = vld [vmem:[#allocation2 + $0x152] sm:$0xff] }
 0x25a   : > { %13508 = vmatmul.mubr.msk.f32.gmra.mrb[24].mxu1 %vm297_vm0, %v17501_v44 }
 0x25b   : > { %13510 = vmatprep.mubr.msk.f32.mxu1 %vm297_vm0, %v17505_v45 }
 0x25c   : > { %13932 = vmatmul.mubr.msk.f32.gmra.mrb[8].mxu0 %vm297_vm0, %v17027_v11  ;;  %v17525_v11 = vld [vmem:[#allocation2 + $0x15a] sm:$0xff] }
 0x25d   : > { %13934 = vmatprep.mubr.msk.f32.mxu0 %vm297_vm0, %v17035_v16  ;;  %v17529_v16 = vld [vmem:[#allocation2 + $0x16a] sm:$0xff] }
 0x25e   : > { %13511 = vmatmul.mubr.msk.f32.gmra.mrb[26].mxu1 %vm297_vm0, %v17513_v21 }
 0x25f   : > { %13513 = vmatprep.mubr.msk.f32.mxu1 %vm297_vm0, %v17517_v9 }
 0x260   : > { %13935 = vmatmul.mubr.msk.f32.gmra.mrb[10].mxu0 %vm297_vm0, %v17037_v17  ;;  %v17537_v17 = vld [vmem:[#allocation2 + $0x172] sm:$0xff] }
 0x261   : > { %13937 = vmatprep.mubr.msk.f32.mxu0 %vm297_vm0, %v17045_v23  ;;  %v5180_v23 = vld [vmem:[#allocation2 + $0x180] sm:$0xff] }
 0x262   : > { %13514 = vmatmul.mubr.msk.f32.gmra.mrb[28].mxu1 %vm297_vm0, %v17525_v11 }
 0x263   : > { %13516 = vmatprep.mubr.msk.f32.mxu1 %vm297_vm0, %v17529_v16 }
 0x264   : > { %13938 = vmatmul.mubr.msk.f32.gmra.mrb[12].mxu0 %vm297_vm0, %v17047_v24  ;;  %v19098_v24 = vld [vmem:[#allocation8_spill] sm:$0xff] }
 0x265   : > { %13940 = vmatprep.mubr.msk.f32.mxu0 %vm297_vm0, %v17055_v28  ;;  %v5181_v28 = vld [vmem:[#allocation2 + $0x188] sm:$0xff] }
 0x266   : > { %13517 = vmatmul.mubr.msk.f32.gmra.mrb[30].mxu1 %vm297_vm0, %v17537_v17 }
 0x268   : > { %13941 = vmatmul.mubr.msk.f32.gmra.mrb[14].mxu0 %vm297_vm0, %v17057_v30  ;;  %v5182_v30 = vld [vmem:[#allocation2 + $0x198] sm:$0xff] }
 0x269   : > { %13943 = vmatprep.mubr.msk.f32.mxu0 %vm297_vm0, %v17065_v26  ;;  %v5183_v26 = vld [vmem:[#allocation2 + $0x1a0] sm:$0xff] }
 0x26c   : > { %13944 = vmatmul.mubr.msk.f32.gmra.mrb[16].mxu0 %vm297_vm0, %v17067_v34  ;;  %v5543_v34 = vld [vmem:[#allocation3 + $0x30] sm:$0xff] }
 0x26d   : > { %13946 = vmatprep.mubr.msk.f32.mxu0 %vm297_vm0, %v17075_v29  ;;  %v11795_v29 = vld [vmem:[%s19014_s2 + $0xf0] sm:$0xff] }
 0x270   : > { %13947 = vmatmul.mubr.msk.f32.gmra.mrb[18].mxu0 %vm297_vm0, %v17077_v31  ;;  %v11796_v31 = vld [vmem:[%s19014_s2 + $0xf8] sm:$0xff] }
 0x271   : > { %13949 = vmatprep.mubr.msk.f32.mxu0 %vm297_vm0, %v17085_v40  ;;  %v5544_v40 = vld [vmem:[#allocation3 + $0x38] sm:$0xff] }
 0x274   : > { %13950 = vmatmul.mubr.msk.f32.gmra.mrb[20].mxu0 %vm297_vm0, %v17087_v13  ;;  %v5545_v13 = vld [vmem:[#allocation3 + $0x48] sm:$0xff] }
 0x275   : > { %13952 = vmatprep.mubr.msk.f32.mxu0 %vm297_vm0, %v17095_v19  ;;  %v14867_v19 = vpack.c.bf16 %v11796_v31, %v11795_v29  ;;  %v5557_v29 = vld [vmem:[#allocation3 + $0xd8] sm:$0xff]  ;;  %v5558_v31 = vld [vmem:[#allocation3 + $0xe0] sm:$0xff] }
 0x278   : > { %13953 = vmatmul.mubr.msk.f32.gmra.mrb[22].mxu0 %vm297_vm0, %v17097_v49  ;;  %v11829_v49 = vld [vmem:[%s19015_s3 + $0xe0] sm:$0xff] }
 0x279   : > { %13955 = vmatprep.mubr.msk.f32.mxu0 %vm297_vm0, %v17105_v15  ;;  %v11830_v15 = vld [vmem:[%s19015_s3 + $0xe8] sm:$0xff] }
 0x27a   : > { %v17587_v41 = vpack.c.bf16 %v11830_v15, %v11829_v49  ;;  %v5562_v49 = vld [vmem:[#allocation3 + $0x110] sm:$0xff]  ;;  %v5563_v15 = vld [vmem:[#allocation3 + $0x120] sm:$0xff] }
 0x27c   : > { %13956 = vmatmul.mubr.msk.f32.gmra.mrb[24].mxu0 %vm297_vm0, %v17107_v20  ;;  %v5546_v20 = vld [vmem:[#allocation3 + $0x50] sm:$0xff] }
 0x27d   : > { %13958 = vmatprep.mubr.msk.f32.mxu0 %vm297_vm0, %v17121_v35  ;;  %v5547_v35 = vld [vmem:[#allocation3 + $0x60] sm:$0xff] }
 0x280   : > { %13959 = vmatmul.mubr.msk.f32.gmra.mrb[26].mxu0 %vm297_vm0, %v19098_v24  ;;  %v5552_v24 = vld [vmem:[#allocation3 + $0x98] sm:$0xff] }
 0x281   : > { %13961 = vmatprep.mubr.msk.f32.mxu0 %vm297_vm0, %v5180_v23  ;;  %v5551_v23 = vld [vmem:[#allocation3 + $0x90] sm:$0xff] }
 0x284   : > { %13962 = vmatmul.mubr.msk.f32.gmra.mrb[28].mxu0 %vm297_vm0, %v5181_v28  ;;  %v5553_v28 = vld [vmem:[#allocation3 + $0xa8] sm:$0xff] }
 0x285   : > { %13964 = vmatprep.mubr.msk.f32.mxu0 %vm297_vm0, %v5182_v30  ;;  %v5554_v30 = vld [vmem:[#allocation3 + $0xb0] sm:$0xff] }
 0x288   : > { %13965 = vmatmul.mubr.msk.f32.gmra.mrb[30].mxu0 %vm297_vm0, %v5183_v26  ;;  %v5555_v26 = vld [vmem:[#allocation3 + $0xc0] sm:$0xff] }
 0x289   : > { %13975 = vmatprep.mubr.msk.f32.mxu0 %vm297_vm0, %v5543_v34  ;;  %v5556_v34 = vld [vmem:[#allocation3 + $0xc8] sm:$0xff] }
 0x28c   : > { %13976 = vmatmul.mubr.msk.f32.vlgmr.msra.gmra.mrb[0].mxu0 %vm297_vm0, %v5544_v40  ;;  %v5559_v40 = vld [vmem:[#allocation3 + $0xf0] sm:$0xff] }
 0x28d   : > { %14866 = vmatpush3.bf16.msra.mxu0 %v17459_v62  ;;  %13978 = vmatprep.mubr.msk.f32.mxu0 %vm297_vm0, %v5545_v13  ;;  %v5550_v62 = vld [vmem:[#allocation3 + $0x80] sm:$0xff]  ;;  %v5560_v13 = vld [vmem:[#allocation3 + $0xf8] sm:$0xff] }
 0x28e   : > { %14868 = vmatprep.subr.bf16.mxu0 %v14867_v19 }
 0x290   : > { %13979 = vmatmul.mubr.msk.f32.gmra.mrb[2].mxu0 %vm297_vm0, %v5546_v20  ;;  %v5564_v20 = vld [vmem:[#allocation3 + $0x128] sm:$0xff] }
 0x291   : > { %13981 = vmatprep.mubr.msk.f32.mxu0 %vm297_vm0, %v5547_v35  ;;  %14870 = vmatpush3.bf16.msra.mxu0 %v14867_v19  ;;  %v5561_v19 = vld [vmem:[#allocation3 + $0x108] sm:$0xff]  ;;  %v5565_v35 = vld [vmem:[#allocation3 + $0x138] sm:$0xff] }
 0x292   : > { %14872 = vmatprep.subr.bf16.mxu0 %v17587_v41 }
 0x294   : > { %13982 = vmatmul.mubr.msk.f32.gmra.mrb[4].mxu0 %vm297_vm0, %v5548_v46  ;;  %v5566_v46 = vld [vmem:[#allocation3 + $0x140] sm:$0xff] }
 0x295   : > { %13984 = vmatprep.mubr.msk.f32.mxu0 %vm297_vm0, %v5549_v56  ;;  %v5567_v56 = vld [vmem:[#allocation3 + $0x150] sm:$0xff] }
 0x298   : > { %13985 = vmatmul.mubr.msk.f32.gmra.mrb[6].mxu0 %vm297_vm0, %v5550_v62  ;;  %v5568_v62 = vld [vmem:[#allocation3 + $0x158] sm:$0xff] }
 0x299   : > { %13987 = vmatprep.mubr.msk.f32.mxu0 %vm297_vm0, %v5551_v23  ;;  %v5569_v23 = vld [vmem:[#allocation3 + $0x168] sm:$0xff] }
 0x29c   : > { %13988 = vmatmul.mubr.msk.f32.gmra.mrb[8].mxu0 %vm297_vm0, %v5552_v24  ;;  %v5570_v24 = vld [vmem:[#allocation3 + $0x170] sm:$0xff] }
 0x29d   : > { %13990 = vmatprep.mubr.msk.f32.mxu0 %vm297_vm0, %v5553_v28  ;;  %v5571_v28 = vld [vmem:[#allocation3 + $0x180] sm:$0xff] }
 0x2a0   : > { %13991 = vmatmul.mubr.msk.f32.gmra.mrb[10].mxu0 %vm297_vm0, %v5554_v30  ;;  %v5572_v30 = vld [vmem:[#allocation3 + $0x188] sm:$0xff] }
 0x2a1   : > { %13993 = vmatprep.mubr.msk.f32.mxu0 %vm297_vm0, %v5555_v26  ;;  %v5573_v26 = vld [vmem:[#allocation3 + $0x198] sm:$0xff] }
 0x2a4   : > { %13994 = vmatmul.mubr.msk.f32.gmra.mrb[12].mxu0 %vm297_vm0, %v5556_v34  ;;  %v5574_v34 = vld [vmem:[#allocation3 + $0x1a0] sm:$0xff] }
 0x2a5   : > { %13996 = vmatprep.mubr.msk.f32.mxu0 %vm297_vm0, %v5557_v29  ;;  %v5933_v29 = vld [vmem:[#allocation2 + $0x31] sm:$0xff] }
 0x2a8   : > { %13997 = vmatmul.mubr.msk.f32.gmra.mrb[14].mxu0 %vm297_vm0, %v5558_v31  ;;  %v11831_v31 = vld [vmem:[%s19015_s3 + $0xf0] sm:$0xff] }
 0x2a9   : > { %13999 = vmatprep.mubr.msk.f32.mxu0 %vm297_vm0, %v5559_v40  ;;  %v11832_v40 = vld [vmem:[%s19015_s3 + $0xf8] sm:$0xff] }
 0x2ac   : > { %14000 = vmatmul.mubr.msk.f32.gmra.mrb[16].mxu0 %vm297_vm0, %v5560_v13  ;;  %v5934_v13 = vld [vmem:[#allocation2 + $0x39] sm:$0xff] }
 0x2ad   : > { %14002 = vmatprep.mubr.msk.f32.mxu0 %vm297_vm0, %v5561_v19  ;;  %v5935_v19 = vld [vmem:[#allocation2 + $0x49] sm:$0xff] }
 0x2b0   : > { %14003 = vmatmul.mubr.msk.f32.gmra.mrb[18].mxu0 %vm297_vm0, %v5562_v49  ;;  %v14875_v49 = vpack.c.bf16 %v11832_v40, %v11831_v31  ;;  %v5947_v31 = vld [vmem:[#allocation2 + $0xd9] sm:$0xff]  ;;  %v5948_v40 = vld [vmem:[#allocation2 + $0xe1] sm:$0xff] }
 0x2b1   : > { %14005 = vmatprep.mubr.msk.f32.mxu0 %vm297_vm0, %v5563_v15  ;;  %v11865_v15 = vld [vmem:[%s19014_s2 + $0x100] sm:$0xff] }
 0x2b4   : > { %14006 = vmatmul.mubr.msk.f32.gmra.mrb[20].mxu0 %vm297_vm0, %v5564_v20  ;;  %v11866_v20 = vld [vmem:[%s19014_s2 + $0x108] sm:$0xff] }
 0x2b5   : > { %14008 = vmatprep.mubr.msk.f32.mxu0 %vm297_vm0, %v5565_v35  ;;  %v5936_v35 = vld [vmem:[#allocation2 + $0x51] sm:$0xff] }
 0x2b8   : > { %14009 = vmatmul.mubr.msk.f32.gmra.mrb[22].mxu0 %vm297_vm0, %v5566_v46  ;;  %v5937_v46 = vld [vmem:[#allocation2 + $0x61] sm:$0xff] }
 0x2b9   : > { %14011 = vmatprep.mubr.msk.f32.mxu0 %vm297_vm0, %v5567_v56  ;;  %v17635_v56 = vpack.c.bf16 %v11866_v20, %v11865_v15  ;;  %v5952_v15 = vld [vmem:[#allocation2 + $0x111] sm:$0xff]  ;;  %v5953_v20 = vld [vmem:[#allocation2 + $0x121] sm:$0xff] }
 0x2bc   : > { %14012 = vmatmul.mubr.msk.f32.gmra.mrb[24].mxu0 %vm297_vm0, %v5568_v62  ;;  %v5938_v62 = vld [vmem:[#allocation2 + $0x69] sm:$0xff] }
 0x2bd   : > { %14014 = vmatprep.mubr.msk.f32.mxu0 %vm297_vm0, %v5569_v23  ;;  %v5939_v23 = vld [vmem:[#allocation2 + $0x79] sm:$0xff] }
 0x2c0   : > { %14015 = vmatmul.mubr.msk.f32.gmra.mrb[26].mxu0 %vm297_vm0, %v5570_v24  ;;  %v5941_v24 = vld [vmem:[#allocation2 + $0x91] sm:$0xff] }
 0x2c1   : > { %14017 = vmatprep.mubr.msk.f32.mxu0 %vm297_vm0, %v5571_v28  ;;  %v5942_v28 = vld [vmem:[#allocation2 + $0x99] sm:$0xff] }
 0x2c4   : > { %14018 = vmatmul.mubr.msk.f32.gmra.mrb[28].mxu0 %vm297_vm0, %v5572_v30  ;;  %v5943_v30 = vld [vmem:[#allocation2 + $0xa9] sm:$0xff] }
 0x2c5   : > { %14020 = vmatprep.mubr.msk.f32.mxu0 %vm297_vm0, %v5573_v26  ;;  %v5944_v26 = vld [vmem:[#allocation2 + $0xb1] sm:$0xff] }
 0x2c8   : > { %14021 = vmatmul.mubr.msk.f32.gmra.mrb[30].mxu0 %vm297_vm0, %v5574_v34  ;;  %v5945_v34 = vld [vmem:[#allocation2 + $0xc1] sm:$0xff] }
 0x2c9   : > { %14031 = vmatprep.mubr.msk.f32.mxu0 %vm297_vm0, %v5933_v29  ;;  %v5946_v29 = vld [vmem:[#allocation2 + $0xc9] sm:$0xff] }
 0x2cc   : > { %14032 = vmatmul.mubr.msk.f32.vlgmr.msra.gmra.mrb[0].mxu0 %vm297_vm0, %v5934_v13  ;;  %v5949_v13 = vld [vmem:[#allocation2 + $0xf1] sm:$0xff] }
 0x2cd   : > { %14874 = vmatpush3.bf16.msra.mxu0 %v17587_v41  ;;  %14034 = vmatprep.mubr.msk.f32.mxu0 %vm297_vm0, %v5935_v19  ;;  %v5940_v41 = vld [vmem:[#allocation2 + $0x81] sm:$0xff]  ;;  %v5950_v19 = vld [vmem:[#allocation2 + $0xf9] sm:$0xff] }
 0x2ce   : > { %14876 = vmatprep.subr.bf16.mxu0 %v14875_v49 }
 0x2d0   : > { %14035 = vmatmul.mubr.msk.f32.gmra.mrb[2].mxu0 %vm297_vm0, %v5936_v35  ;;  %v5954_v35 = vld [vmem:[#allocation2 + $0x129] sm:$0xff] }
 0x2d1   : > { %14037 = vmatprep.mubr.msk.f32.mxu0 %vm297_vm0, %v5937_v46  ;;  %14878 = vmatpush3.bf16.msra.mxu0 %v14875_v49  ;;  %v5951_v49 = vld [vmem:[#allocation2 + $0x109] sm:$0xff]  ;;  %v5955_v46 = vld [vmem:[#allocation2 + $0x139] sm:$0xff] }
 0x2d2   : > { %14880 = vmatprep.subr.bf16.mxu0 %v17635_v56 }
 0x2d4   : > { %14038 = vmatmul.mubr.msk.f32.gmra.mrb[4].mxu0 %vm297_vm0, %v5938_v62  ;;  %v5956_v62 = vld [vmem:[#allocation2 + $0x141] sm:$0xff] }
 0x2d5   : > { %14040 = vmatprep.mubr.msk.f32.mxu0 %vm297_vm0, %v5939_v23 }
 0x2d8   : > { %14041 = vmatmul.mubr.msk.f32.gmra.mrb[6].mxu0 %vm297_vm0, %v5940_v41 }
 0x2d9   : > { %14043 = vmatprep.mubr.msk.f32.mxu0 %vm297_vm0, %v5941_v24  ;;  %v17663_v23 = vpop.f32.mrb[0].mxu1  ;;  %v5961_v24 = vld [vmem:[#allocation2 + $0x181] sm:$0xff] }
 0x2da   : > { %v17667_v41 = vpop.f32.mrb[1].mxu1 }
 0x2dc   : > { %14044 = vmatmul.mubr.msk.f32.gmra.mrb[8].mxu0 %vm297_vm0, %v5942_v28 }
 0x2dd   : > { %14046 = vmatprep.mubr.msk.f32.mxu0 %vm297_vm0, %v5943_v30  ;;  %v17671_v28 = vpop.f32.mrb[2].mxu1  ;;  %v5962_v30 = vld [vmem:[#allocation2 + $0x189] sm:$0xff] }
 0x2e0   : > { %14047 = vmatmul.mubr.msk.f32.gmra.mrb[10].mxu0 %vm297_vm0, %v5944_v26  ;;  %v5963_v26 = vld [vmem:[#allocation2 + $0x199] sm:$0xff] }
 0x2e1   : > { %14049 = vmatprep.mubr.msk.f32.mxu0 %vm297_vm0, %v5945_v34 }
 0x2e4   : > { %14050 = vmatmul.mubr.msk.f32.gmra.mrb[12].mxu0 %vm297_vm0, %v5946_v29  ;;  %v11868_v29 = vld [vmem:[%s19014_s2 + $0x118] sm:$0xff] }
 0x2e5   : > { %14052 = vmatprep.mubr.msk.f32.mxu0 %vm297_vm0, %v5947_v31 }
 0x2e8   : > { %14053 = vmatmul.mubr.msk.f32.gmra.mrb[14].mxu0 %vm297_vm0, %v5948_v40 }
 0x2e9   : > { %14055 = vmatprep.mubr.msk.f32.mxu0 %vm297_vm0, %v5949_v13 }
 0x2ec   : > { %14056 = vmatmul.mubr.msk.f32.gmra.mrb[16].mxu0 %vm297_vm0, %v5950_v19  ;;  %v11901_v19 = vld [vmem:[%s19015_s3 + $0x100] sm:$0xff] }
 0x2ed   : > { %14058 = vmatprep.mubr.msk.f32.mxu0 %vm297_vm0, %v5951_v49  ;;  %v11902_v49 = vld [vmem:[%s19015_s3 + $0x108] sm:$0xff] }
 0x2f0   : > { %14059 = vmatmul.mubr.msk.f32.gmra.mrb[18].mxu0 %vm297_vm0, %v5952_v15 }
 0x2f1   : > { %14061 = vmatprep.mubr.msk.f32.mxu0 %vm297_vm0, %v5953_v20  ;;  %v17710_v20 = vpack.c.bf16 %v11902_v49, %v11901_v19  ;;  %v11941_v19 = vld [vmem:[%s19017_s5 + $0x38] sm:$0xff]  ;;  %v6715_v49 = vld [vmem:[#allocation2 + $0x4a] sm:$0xff] }
 0x2f4   : > { %14062 = vmatmul.mubr.msk.f32.gmra.mrb[20].mxu0 %vm297_vm0, %v5954_v35 }
 0x2f5   : > { %14064 = vmatprep.mubr.msk.f32.mxu0 %vm297_vm0, %v5955_v46 }
 0x2f8   : > { %14065 = vmatmul.mubr.msk.f32.gmra.mrb[22].mxu0 %vm297_vm0, %v5956_v62  ;;  %v6354_v62 = vld [vmem:[#allocation3 + $0x1a1] sm:$0xff] }
 0x2f9   : > { %14067 = vmatprep.mubr.msk.f32.mxu0 %vm297_vm0, %v17235_v1  ;;  %v17674_v1 = vpop.f32.mrb[3].mxu1 }
 0x2fc   : > { %14068 = vmatmul.mubr.msk.f32.gmra.mrb[24].mxu0 %vm297_vm0, %v17243_v22  ;;  %v17677_v22 = vpop.f32.mrb[4].mxu1 }
 0x2fd   : > { %14070 = vmatprep.mubr.msk.f32.mxu0 %vm297_vm0, %v17251_v25  ;;  %v5964_v25 = vld [vmem:[#allocation2 + $0x1a1] sm:$0xff]  ;;  %v17680_v34 = vpop.f32.mrb[5].mxu1 }
 0x2fe   : > { %v17689_v31 = vpop.f32.mrb[6].mxu1 }
 0x2ff   : > { %v17693_v40 = vpop.f32.mrb[7].mxu1 }
 0x300   : > { %14071 = vmatmul.mubr.msk.f32.gmra.mrb[26].mxu0 %vm297_vm0, %v17257_v38  ;;  %v11867_v38 = vld [vmem:[%s19014_s2 + $0x110] sm:$0xff]  ;;  %v17703_v15 = vpop.f32.mrb[8].mxu1 }
 0x301   : > { %14073 = vmatprep.mubr.msk.f32.mxu0 %vm297_vm0, %v5961_v24  ;;  %v14883_v13 = vpack.c.bf16 %v11868_v29, %v11867_v38  ;;  %v6713_v24 = vld [vmem:[#allocation2 + $0x32] sm:$0xff]  ;;  %v6714_v29 = vld [vmem:[#allocation2 + $0x3a] sm:$0xff] }
 0x302   : > { %v11940_v38 = vld [vmem:[%s19017_s5 + $0x30] sm:$0xff] }
 0x304   : > { %14074 = vmatmul.mubr.msk.f32.gmra.mrb[28].mxu0 %vm297_vm0, %v5962_v30  ;;  %v11903_v30 = vld [vmem:[%s19015_s3 + $0x110] sm:$0xff] }
 0x305   : > { %14076 = vmatprep.mubr.msk.f32.mxu0 %vm297_vm0, %v5963_v26  ;;  %v11904_v26 = vld [vmem:[%s19015_s3 + $0x118] sm:$0xff] }
 0x308   : > { %14077 = vmatmul.mubr.msk.f32.gmra.mrb[30].mxu0 %vm297_vm0, %v5964_v25  ;;  %v11939_v25 = vld [vmem:[%s19017_s5 + $0x28] sm:$0xff] }
 0x309   : > { %14087 = vmatprep.mubr.msk.f32.mxu0 %vm297_vm0, %v17291_v55  ;;  %v17708_v55 = vpop.f32.mrb[9].mxu1 }
 0x30a   : > { %v17714_v35 = vpop.f32.mrb[10].mxu1 }
 0x30c   : > { %14088 = vmatmul.mubr.msk.f32.vlgmr.msra.gmra.mrb[0].mxu0 %vm297_vm0, %v17299_v57  ;;  %v17718_v57 = vpop.f32.mrb[11].mxu1 }
 0x30d   : > { %14882 = vmatpush3.bf16.msra.mxu0 %v17635_v56  ;;  %14090 = vmatprep.mubr.msk.f32.mxu0 %vm297_vm0, %v17303_v3  ;;  %v17723_v3 = vpop.f32.mrb[12].mxu1 }
 0x30e   : > { %14884 = vmatprep.subr.bf16.mxu0 %v14883_v13  ;;  %v17727_v56 = vpop.f32.mrb[13].mxu1 }
 0x310   : > { %14091 = vmatmul.mubr.msk.f32.gmra.mrb[2].mxu0 %vm297_vm0, %v17310_v60  ;;  %v17731_v60 = vpop.f32.mrb[14].mxu1 }
 0x311   : > { %14093 = vmatprep.mubr.msk.f32.mxu0 %vm297_vm0, %v17313_v61  ;;  %14886 = vmatpush3.bf16.msra.mxu0 %v14883_v13  ;;  %v17735_v61 = vpop.f32.mrb[15].mxu1 }
 0x312   : > { %14888 = vmatprep.subr.bf16.mxu0 %v17710_v20 }
 0x314   : > { %14094 = vmatmul.mubr.msk.f32.gmra.mrb[4].mxu0 %vm297_vm0, %v17320_v63 }
 0x315   : > { %14096 = vmatprep.mubr.msk.f32.mxu0 %vm297_vm0, %v17323_v0 }
 0x318   : > { %14097 = vmatmul.mubr.msk.f32.gmra.mrb[6].mxu0 %vm297_vm0, %v17330_v5 }
 0x319   : > { %14099 = vmatprep.mubr.msk.f32.mxu0 %vm297_vm0, %v17333_v27 }
 0x31c   : > { %14100 = vmatmul.mubr.msk.f32.gmra.mrb[8].mxu0 %vm297_vm0, %v17340_v33  ;;  %v17745_v63 = vpop.f32.mrb[16].mxu1 }
 0x31d   : > { %14102 = vmatprep.mubr.msk.f32.mxu0 %vm297_vm0, %v17343_v43  ;;  %v17747_v0 = vpop.f32.mrb[17].mxu1 }
 0x320   : > { %14103 = vmatmul.mubr.msk.f32.gmra.mrb[10].mxu0 %vm297_vm0, %v17350_v12 }
 0x321   : > { %14105 = vmatprep.mubr.msk.f32.mxu0 %vm297_vm0, %v17353_v39  ;;  %v17753_v5 = vpop.f32.mrb[18].mxu1 }
 0x322   : > { %v17755_v27 = vpop.f32.mrb[19].mxu1 }
 0x324   : > { %14106 = vmatmul.mubr.msk.f32.gmra.mrb[12].mxu0 %vm297_vm0, %v17360_v42 }
 0x325   : > { %14108 = vmatprep.mubr.msk.f32.mxu0 %vm297_vm0, %v17363_v36  ;;  %v17761_v33 = vpop.f32.mrb[20].mxu1 }
 0x326   : > { %v17763_v43 = vpop.f32.mrb[21].mxu1 }
 0x328   : > { %14109 = vmatmul.mubr.msk.f32.gmra.mrb[14].mxu0 %vm297_vm0, %v17370_v48 }
 0x329   : > { %14111 = vmatprep.mubr.msk.f32.mxu0 %vm297_vm0, %v17373_v50  ;;  %v17769_v12 = vpop.f32.mrb[22].mxu1 }
 0x32a   : > { %v17771_v39 = vpop.f32.mrb[23].mxu1 }
 0x32c   : > { %14112 = vmatmul.mubr.msk.f32.gmra.mrb[16].mxu0 %vm297_vm0, %v17380_v54 }
 0x32d   : > { %14114 = vmatprep.mubr.msk.f32.mxu0 %vm297_vm0, %v17383_v8  ;;  %v17777_v42 = vpop.f32.mrb[24].mxu1 }
 0x32e   : > { %v17779_v36 = vpop.f32.mrb[25].mxu1 }
 0x330   : > { %14115 = vmatmul.mubr.msk.f32.gmra.mrb[18].mxu0 %vm297_vm0, %v17390_v59  ;;  %v19099_v59 = vld [vmem:[#allocation9_spill] sm:$0xff] }
 0x331   : > { %14117 = vmatprep.mubr.msk.f32.mxu0 %vm297_vm0, %v17393_v6  ;;  %v17785_v48 = vpop.f32.mrb[26].mxu1  ;;  %v19100_v6 = vld [vmem:[#allocation10_spill] sm:$0xff] }
 0x332   : > { %v17787_v50 = vpop.f32.mrb[27].mxu1 }
 0x334   : > { %14118 = vmatmul.mubr.msk.f32.gmra.mrb[20].mxu0 %vm297_vm0, %v17400_v4 }
 0x335   : > { %14120 = vmatprep.mubr.msk.f32.mxu0 %vm297_vm0, %v17403_v7  ;;  %v17793_v54 = vpop.f32.mrb[28].mxu1  ;;  %v6351_v7 = vld [vmem:[#allocation3 + $0x181] sm:$0xff] }
 0x336   : > { %v17795_v8 = vpop.f32.mrb[29].mxu1 }
 0x338   : > { %14121 = vmatmul.mubr.msk.f32.gmra.mrb[22].mxu0 %vm297_vm0, %v17410_v18  ;;  %v6352_v18 = vld [vmem:[#allocation3 + $0x189] sm:$0xff] }
 0x339   : > { %14123 = vmatprep.mubr.msk.f32.mxu0 %vm297_vm0, %v17413_v37  ;;  %v17801_v4 = vpop.f32.mrb[30].mxu1  ;;  %v6353_v37 = vld [vmem:[#allocation3 + $0x199] sm:$0xff] }
 0x33a   : > { %v17803_v46 = vpop.f32.mrb[31].mxu1 }
 0x33c   : > { %14124 = vmatmul.mubr.msk.f32.gmra.mrb[24].mxu0 %vm297_vm0, %v19099_v59  ;;  %v14891_v59 = vpack.c.bf16 %v11904_v26, %v11903_v30  ;;  %v6722_v30 = vld [vmem:[#allocation2 + $0x9a] sm:$0xff]  ;;  %v6723_v26 = vld [vmem:[#allocation2 + $0xaa] sm:$0xff] }
 0x33d   : > { %14126 = vmatprep.mubr.msk.f32.mxu0 %vm297_vm0, %v19100_v6  ;;  %v14899_v6 = vpack.c.bf16 %v11941_v19, %v11940_v38  ;;  %v7114_v38 = vld [vmem:[#allocation3 + $0xb2] sm:$0xff]  ;;  %v7117_v19 = vld [vmem:[#allocation3 + $0xda] sm:$0xff] }
 0x340   : > { %14127 = vmatmul.mubr.msk.f32.gmra.mrb[26].mxu0 %vm297_vm0, %v17436_v2  ;;  %v11938_v2 = vld [vmem:[%s19017_s5 + $0x20] sm:$0xff] }
 0x341   : > { %14129 = vmatprep.mubr.msk.f32.mxu0 %vm297_vm0, %v6351_v7  ;;  %v14895_v13 = vpack.c.bf16 %v11939_v25, %v11938_v2  ;;  %v6716_v7 = vld [vmem:[#allocation2 + $0x52] sm:$0xff]  ;;  %v19101_v25 = vld [vmem:[#allocation11_spill] sm:$0xff] }
 0x342   : > { %v6724_v2 = vld [vmem:[#allocation2 + $0xb2] sm:$0xff] }
 0x343   : > { %14896 = vmatprep.subr.bf16.mxu1 %v14895_v13 }
 0x344   : > { %14130 = vmatmul.mubr.msk.f32.gmra.mrb[28].mxu0 %vm297_vm0, %v6352_v18  ;;  %14898 = vmatpush3.bf16.msra.mxu1 %v14895_v13  ;;  %v6717_v18 = vld [vmem:[#allocation2 + $0x62] sm:$0xff]  ;;  %v7116_v13 = vld [vmem:[#allocation3 + $0xca] sm:$0xff] }
 0x345   : > { %14132 = vmatprep.mubr.msk.f32.mxu0 %vm297_vm0, %v6353_v37  ;;  %14900 = vmatprep.subr.bf16.mxu1 %v14899_v6  ;;  %v6718_v37 = vld [vmem:[#allocation2 + $0x6a] sm:$0xff] }
 0x348   : > { %14133 = vmatmul.mubr.msk.f32.gmra.mrb[30].mxu0 %vm297_vm0, %v6354_v62  ;;  %14902 = vmatpush3.bf16.msra.mxu1 %v14899_v6  ;;  %v6719_v62 = vld [vmem:[#allocation2 + $0x7a] sm:$0xff]  ;;  %v7120_v6 = vld [vmem:[#allocation3 + $0xfa] sm:$0xff] }
 0x349   : > { %14143 = vmatprep.mubr.msk.f32.mxu0 %vm297_vm0, %v6713_v24  ;;  %v6720_v24 = vld [vmem:[#allocation2 + $0x82] sm:$0xff] }
 0x34c   : > { %14144 = vmatmul.mubr.msk.f32.vlgmr.msra.gmra.mrb[0].mxu0 %vm297_vm0, %v6714_v29  ;;  %v7115_v29 = vld [vmem:[#allocation3 + $0xc2] sm:$0xff] }
 0x34d   : > { %14890 = vmatpush3.bf16.msra.mxu0 %v17710_v20  ;;  %14146 = vmatprep.mubr.msk.f32.mxu0 %vm297_vm0, %v6715_v49  ;;  %v6721_v20 = vld [vmem:[#allocation2 + $0x92] sm:$0xff] }
 0x34e   : > { %14892 = vmatprep.subr.bf16.mxu0 %v14891_v59  ;;  %v7118_v49 = vld [vmem:[#allocation3 + $0xe2] sm:$0xff] }
 0x350   : > { %14147 = vmatmul.mubr.msk.f32.gmra.mrb[2].mxu0 %vm297_vm0, %v6716_v7  ;;  %v7121_v7 = vld [vmem:[#allocation3 + $0x10a] sm:$0xff] }
 0x351   : > { %14149 = vmatprep.mubr.msk.f32.mxu0 %vm297_vm0, %v6717_v18  ;;  %14894 = vmatpush3.bf16.msra.mxu0 %v14891_v59  ;;  %v7119_v59 = vld [vmem:[#allocation3 + $0xf2] sm:$0xff] }
 0x352   : > { %v7122_v18 = vld [vmem:[#allocation3 + $0x112] sm:$0xff] }
 0x354   : > { %14150 = vmatmul.mubr.msk.f32.gmra.mrb[4].mxu0 %vm297_vm0, %v6718_v37  ;;  %v7123_v37 = vld [vmem:[#allocation3 + $0x122] sm:$0xff] }
 0x355   : > { %14152 = vmatprep.mubr.msk.f32.mxu0 %vm297_vm0, %v6719_v62  ;;  %v7124_v62 = vld [vmem:[#allocation3 + $0x12a] sm:$0xff] }
 0x358   : > { %14153 = vmatmul.mubr.msk.f32.gmra.mrb[6].mxu0 %vm297_vm0, %v6720_v24  ;;  %v7125_v24 = vld [vmem:[#allocation3 + $0x13a] sm:$0xff] }
 0x359   : > { %14155 = vmatprep.mubr.msk.f32.mxu0 %vm297_vm0, %v6721_v20  ;;  %v7126_v20 = vld [vmem:[#allocation3 + $0x142] sm:$0xff] }
 0x35c   : > { %14156 = vmatmul.mubr.msk.f32.gmra.mrb[8].mxu0 %vm297_vm0, %v6722_v30  ;;  %v7127_v30 = vld [vmem:[#allocation3 + $0x152] sm:$0xff] }
 0x35d   : > { %14158 = vmatprep.mubr.msk.f32.mxu0 %vm297_vm0, %v6723_v26  ;;  %v7128_v26 = vld [vmem:[#allocation3 + $0x15a] sm:$0xff] }
 0x360   : > { %14159 = vmatmul.mubr.msk.f32.gmra.mrb[10].mxu0 %vm297_vm0, %v6724_v2  ;;  %v7129_v2 = vld [vmem:[#allocation3 + $0x16a] sm:$0xff] }
 0x361   : > { %14161 = vmatprep.mubr.msk.f32.mxu0 %vm297_vm0, %v19101_v25  ;;  %v7130_v25 = vld [vmem:[#allocation3 + $0x172] sm:$0xff] }
 0x364   : > { %14162 = vmatmul.mubr.msk.f32.gmra.mrb[12].mxu0 %vm297_vm0, %v17452_v52  ;;  %v6742_v52 = vld [vmem:[#allocation2 + $0x18a] sm:$0xff] }
 0x365   : > { %14164 = vmatprep.mubr.msk.f32.mxu0 %vm297_vm0, %v17457_v58  ;;  %v6743_v58 = vld [vmem:[#allocation2 + $0x19a] sm:$0xff] }
 0x368   : > { %14165 = vmatmul.mubr.msk.f32.gmra.mrb[14].mxu0 %vm297_vm0, %v17465_v32  ;;  %v6741_v32 = vld [vmem:[#allocation2 + $0x182] sm:$0xff] }
 0x369   : > { %14167 = vmatprep.mubr.msk.f32.mxu0 %vm297_vm0, %v17468_v10  ;;  %v6744_v10 = vld [vmem:[#allocation2 + $0x1a2] sm:$0xff] }
 0x36c   : > { %14168 = vmatmul.mubr.msk.f32.gmra.mrb[16].mxu0 %vm297_vm0, %v17477_v53  ;;  %v7103_v53 = vld [vmem:[#allocation3 + $0x32] sm:$0xff] }
 0x36d   : > { %14170 = vmatprep.mubr.msk.f32.mxu0 %vm297_vm0, %v17481_v47  ;;  %v7104_v47 = vld [vmem:[#allocation3 + $0x3a] sm:$0xff] }
 0x370   : > { %14171 = vmatmul.mubr.msk.f32.gmra.mrb[18].mxu0 %vm297_vm0, %v17489_v14  ;;  %v7105_v14 = vld [vmem:[#allocation3 + $0x4a] sm:$0xff] }
 0x371   : > { %14173 = vmatprep.mubr.msk.f32.mxu0 %vm297_vm0, %v17493_v51  ;;  %v7106_v51 = vld [vmem:[#allocation3 + $0x52] sm:$0xff] }
 0x374   : > { %14174 = vmatmul.mubr.msk.f32.gmra.mrb[20].mxu0 %vm297_vm0, %v17501_v44  ;;  %v7107_v44 = vld [vmem:[#allocation3 + $0x62] sm:$0xff] }
 0x375   : > { %14176 = vmatprep.mubr.msk.f32.mxu0 %vm297_vm0, %v17505_v45  ;;  %v7108_v45 = vld [vmem:[#allocation3 + $0x6a] sm:$0xff] }
 0x378   : > { %14177 = vmatmul.mubr.msk.f32.gmra.mrb[22].mxu0 %vm297_vm0, %v17513_v21  ;;  %v7109_v21 = vld [vmem:[#allocation3 + $0x7a] sm:$0xff] }
 0x379   : > { %14179 = vmatprep.mubr.msk.f32.mxu0 %vm297_vm0, %v17517_v9  ;;  %v7110_v9 = vld [vmem:[#allocation3 + $0x82] sm:$0xff] }
 0x37c   : > { %14180 = vmatmul.mubr.msk.f32.gmra.mrb[24].mxu0 %vm297_vm0, %v17525_v11  ;;  %v7111_v11 = vld [vmem:[#allocation3 + $0x92] sm:$0xff] }
 0x37d   : > { %14182 = vmatprep.mubr.msk.f32.mxu0 %vm297_vm0, %v17529_v16  ;;  %v7112_v16 = vld [vmem:[#allocation3 + $0x9a] sm:$0xff] }
 0x380   : > { %14183 = vmatmul.mubr.msk.f32.gmra.mrb[26].mxu0 %vm297_vm0, %v17537_v17  ;;  %v7113_v17 = vld [vmem:[#allocation3 + $0xaa] sm:$0xff] }
 0x381   : > { %14185 = vmatprep.mubr.msk.f32.mxu0 %vm297_vm0, %v6741_v32  ;;  %v7131_v32 = vld [vmem:[#allocation3 + $0x182] sm:$0xff] }
 0x384   : > { %14186 = vmatmul.mubr.msk.f32.gmra.mrb[28].mxu0 %vm297_vm0, %v6742_v52  ;;  %v7132_v52 = vld [vmem:[#allocation3 + $0x18a] sm:$0xff] }
 0x385   : > { %14188 = vmatprep.mubr.msk.f32.mxu0 %vm297_vm0, %v6743_v58  ;;  %v7133_v58 = vld [vmem:[#allocation3 + $0x19a] sm:$0xff] }
 0x388   : > { %14189 = vmatmul.mubr.msk.f32.gmra.mrb[30].mxu0 %vm297_vm0, %v6744_v10  ;;  %v7134_v10 = vld [vmem:[#allocation3 + $0x1a2] sm:$0xff] }
 0x389   : > { %14199 = vmatprep.mubr.msk.f32.mxu0 %vm297_vm0, %v7103_v53  ;;  %v7687_v53 = vld [vmem:[#allocation4 + $0x1] sm:$0xff] }
 0x38a   : > { %14255 = vmatprep.mubr.msk.f32.mxu1 %vm297_vm0, %v7687_v53 }
 0x38c   : > { %14200 = vmatmul.mubr.msk.f32.vlgmr.msra.gmra.mrb[0].mxu0 %vm297_vm0, %v7104_v47  ;;  %v7688_v47 = vld [vmem:[#allocation4 + $0x9] sm:$0xff] }
 0x38d   : > { %14202 = vmatprep.mubr.msk.f32.mxu0 %vm297_vm0, %v7105_v14  ;;  %14256 = vmatmul.mubr.msk.f32.vlgmr.msra.gmra.mrb[32].mxu1 %vm297_vm0, %v7688_v47  ;;  %v7683_v14 = vld [vmem:[%s19017_s5] sm:$0xff] }
 0x390   : > { %14203 = vmatmul.mubr.msk.f32.gmra.mrb[2].mxu0 %vm297_vm0, %v7106_v51  ;;  %v7684_v51 = vld [vmem:[%s19017_s5 + $0x8] sm:$0xff] }
 0x391   : > { %14205 = vmatprep.mubr.msk.f32.mxu0 %vm297_vm0, %v7107_v44  ;;  %v14903_v44 = vpack.c.bf16 %v7684_v51, %v7683_v14 }
 0x393   : > { %14904 = vmatprep.subr.bf16.mxu1 %v14903_v44 }
 0x394   : > { %14206 = vmatmul.mubr.msk.f32.gmra.mrb[4].mxu0 %vm297_vm0, %v7108_v45  ;;  %14906 = vmatpush3.bf16.msra.mxu1 %v14903_v44  ;;  %v7685_v45 = vld [vmem:[%s19017_s5 + $0x10] sm:$0xff] }
 0x395   : > { %14208 = vmatprep.mubr.msk.f32.mxu0 %vm297_vm0, %v7109_v21  ;;  %v7686_v21 = vld [vmem:[%s19017_s5 + $0x18] sm:$0xff] }
 0x398   : > { %14209 = vmatmul.mubr.msk.f32.gmra.mrb[6].mxu0 %vm297_vm0, %v7110_v9  ;;  %v14907_v9 = vpack.c.bf16 %v7686_v21, %v7685_v45 }
 0x399   : > { %14211 = vmatprep.mubr.msk.f32.mxu0 %vm297_vm0, %v7111_v11  ;;  %v12006_v11 = vld [vmem:[%s19017_s5 + $0x40] sm:$0xff] }
 0x39a   : > { %14908 = vmatprep.subr.bf16.mxu1 %v14907_v9 }
 0x39b   : > { %14910 = vmatpush3.bf16.msra.mxu1 %v14907_v9 }
 0x39c   : > { %14212 = vmatmul.mubr.msk.f32.gmra.mrb[8].mxu0 %vm297_vm0, %v7112_v16  ;;  %v12007_v16 = vld [vmem:[%s19017_s5 + $0x48] sm:$0xff] }
 0x39d   : > { %14214 = vmatprep.mubr.msk.f32.mxu0 %vm297_vm0, %v7113_v17  ;;  %v17930_v17 = vpack.c.bf16 %v12007_v16, %v12006_v11 }
 0x39f   : > { %14912 = vmatprep.subr.bf16.mxu1 %v17930_v17 }
 0x3a0   : > { %14215 = vmatmul.mubr.msk.f32.gmra.mrb[10].mxu0 %vm297_vm0, %v7114_v38 }
 0x3a1   : > { %14217 = vmatprep.mubr.msk.f32.mxu0 %vm297_vm0, %v7115_v29  ;;  %v17936_v29 = vld [vmem:[%s19016_s4] ss:$0 sm:$0xff] }
 0x3a4   : > { %14218 = vmatmul.mubr.msk.f32.gmra.mrb[12].mxu0 %vm297_vm0, %v7116_v13 }
 0x3a5   : > { %14220 = vmatprep.mubr.msk.f32.mxu0 %vm297_vm0, %v7117_v19 }
 0x3a8   : > { %14221 = vmatmul.mubr.msk.f32.gmra.mrb[14].mxu0 %vm297_vm0, %v7118_v49 }
 0x3a9   : > { %14223 = vmatprep.mubr.msk.f32.mxu0 %vm297_vm0, %v7119_v59 }
 0x3ac   : > { %14224 = vmatmul.mubr.msk.f32.gmra.mrb[16].mxu0 %vm297_vm0, %v7120_v6 }
 0x3ad   : > { %14226 = vmatprep.mubr.msk.f32.mxu0 %vm297_vm0, %v7121_v7 }
 0x3b0   : > { %14227 = vmatmul.mubr.msk.f32.gmra.mrb[18].mxu0 %vm297_vm0, %v7122_v18 }
 0x3b1   : > { %14229 = vmatprep.mubr.msk.f32.mxu0 %vm297_vm0, %v7123_v37 }
 0x3b4   : > { %14230 = vmatmul.mubr.msk.f32.gmra.mrb[20].mxu0 %vm297_vm0, %v7124_v62 }
 0x3b5   : > { %14232 = vmatprep.mubr.msk.f32.mxu0 %vm297_vm0, %v7125_v24 }
 0x3b8   : > { %14233 = vmatmul.mubr.msk.f32.gmra.mrb[22].mxu0 %vm297_vm0, %v7126_v20 }
 0x3b9   : > { %14235 = vmatprep.mubr.msk.f32.mxu0 %vm297_vm0, %v7127_v30 }
 0x3bc   : > { %14236 = vmatmul.mubr.msk.f32.gmra.mrb[24].mxu0 %vm297_vm0, %v7128_v26 }
 0x3bd   : > { %14238 = vmatprep.mubr.msk.f32.mxu0 %vm297_vm0, %v7129_v2 }
 0x3c0   : > { %14239 = vmatmul.mubr.msk.f32.gmra.mrb[26].mxu0 %vm297_vm0, %v7130_v25 }
 0x3c1   : > { %14241 = vmatprep.mubr.msk.f32.mxu0 %vm297_vm0, %v7131_v32 }
 0x3c4   : > { %14242 = vmatmul.mubr.msk.f32.gmra.mrb[28].mxu0 %vm297_vm0, %v7132_v52 }
 0x3c5   : > { %14244 = vmatprep.mubr.msk.f32.mxu0 %vm297_vm0, %v7133_v58 }
 0x3c8   : > { %14245 = vmatmul.mubr.msk.f32.gmra.mrb[30].mxu0 %vm297_vm0, %v7134_v10 }
 0x45f   : > { %v14201_v38 = vpop.f32.mrb[0].mxu0 }
 0x460   : > { %v14971_v13 = vadd.f32 %v14201_v38, %v17663_v23  ;;  %v7302_v19 = vpop.f32.mrb[1].mxu0 }
 0x461   : > { %v14972_v49 = vadd.f32 %v7302_v19, %v17667_v41 }
 0x462   : > { %v7501_v59 = vadd.f32 %v14971_v13, %v17936_v29 }
 0x463   : > { %v7500_v6 = vadd.f32 %v14972_v49, %v17936_v29  ;;  %v14204_v7 = vpop.f32.mrb[2].mxu0 }
 0x464   : > { %v7533_v18 = vmax.f32 %v7501_v59, 0.0  ;;  %v14973_v37 = vadd.f32 %v14204_v7, %v17671_v28  ;;  %v7312_v62 = vpop.f32.mrb[3].mxu0 }
 0x465   : > { %v7532_v24 = vmax.f32 %v7500_v6, 0.0  ;;  %v14974_v20 = vadd.f32 %v7312_v62, %v17674_v1 }
 0x466   : > { %7620 = vst.msk [vmem:[#allocation4 + $0x21] sm:$0xff] %vm297_vm0, %v7533_v18  ;;  %v7503_v30 = vadd.f32 %v14973_v37, %v17936_v29 }
 0x467   : > { %7619 = vst.msk [vmem:[#allocation4 + $0x19] sm:$0xff] %vm297_vm0, %v7532_v24  ;;  %v7502_v23 = vadd.f32 %v14974_v20, %v17936_v29  ;;  %v14207_v41 = vpop.f32.mrb[4].mxu0 }
 0x468   : > { %v7535_v26 = vmax.f32 %v7503_v30, 0.0  ;;  %v14975_v2 = vadd.f32 %v14207_v41, %v17677_v22  ;;  %v7322_v25 = vpop.f32.mrb[5].mxu0 }
 0x469   : > { %v7534_v32 = vmax.f32 %v7502_v23, 0.0  ;;  %v14976_v28 = vadd.f32 %v7322_v25, %v17680_v34 }
 0x46a   : > { %7622 = vst.msk [vmem:[#allocation4 + $0x39] sm:$0xff] %vm297_vm0, %v7535_v26  ;;  %v7505_v1 = vadd.f32 %v14975_v2, %v17936_v29 }
 0x46b   : > { %7621 = vst.msk [vmem:[#allocation4 + $0x31] sm:$0xff] %vm297_vm0, %v7534_v32  ;;  %v7504_v52 = vadd.f32 %v14976_v28, %v17936_v29  ;;  %v14210_v58 = vpop.f32.mrb[6].mxu0 }
 0x46c   : > { %v7537_v10 = vmax.f32 %v7505_v1, 0.0  ;;  %v14977_v53 = vadd.f32 %v14210_v58, %v17689_v31  ;;  %v7332_v47 = vpop.f32.mrb[7].mxu0 }
 0x46d   : > { %v7536_v14 = vmax.f32 %v7504_v52, 0.0  ;;  %v14978_v22 = vadd.f32 %v7332_v47, %v17693_v40  ;;  %v17964_v21 = vld [vmem:[#allocation4 + $0x21] sm:$0xff] }
 0x46e   : > { %7624 = vst.msk [vmem:[#allocation4 + $0x51] sm:$0xff] %vm297_vm0, %v7537_v10  ;;  %v7507_v34 = vadd.f32 %v14977_v53, %v17936_v29  ;;  %v17958_v51 = vld [vmem:[#allocation4 + $0x19] sm:$0xff] }
 0x46f   : > { %7623 = vst.msk [vmem:[#allocation4 + $0x49] sm:$0xff] %vm297_vm0, %v7536_v14  ;;  %v7506_v44 = vadd.f32 %v14978_v22, %v17936_v29  ;;  %v14213_v45 = vpop.f32.mrb[8].mxu0  ;;  %14258 = vmatprep.mubr.msk.f32.mxu1 %vm297_vm0, %v17958_v51 }
 0x470   : > { %v7539_v31 = vmax.f32 %v7507_v34, 0.0  ;;  %v14979_v9 = vadd.f32 %v14213_v45, %v17703_v15  ;;  %v7342_v40 = vpop.f32.mrb[9].mxu0  ;;  %14259 = vmatmul.mubr.msk.f32.gmra.mrb[34].mxu1 %vm297_vm0, %v17964_v21 }
 0x471   : > { %v7538_v11 = vmax.f32 %v7506_v44, 0.0  ;;  %v14980_v16 = vadd.f32 %v7342_v40, %v17708_v55  ;;  %v17978_v15 = vld [vmem:[#allocation4 + $0x39] sm:$0xff] }
 0x472   : > { %7626 = vst.msk [vmem:[#allocation4 + $0x69] sm:$0xff] %vm297_vm0, %v7539_v31  ;;  %v7509_v38 = vadd.f32 %v14979_v9, %v17936_v29  ;;  %v17972_v13 = vld [vmem:[#allocation4 + $0x31] sm:$0xff] }
 0x473   : > { %7625 = vst.msk [vmem:[#allocation4 + $0x61] sm:$0xff] %vm297_vm0, %v7538_v11  ;;  %v7508_v19 = vadd.f32 %v14980_v16, %v17936_v29  ;;  %v14216_v49 = vpop.f32.mrb[10].mxu0  ;;  %14261 = vmatprep.mubr.msk.f32.mxu1 %vm297_vm0, %v17972_v13 }
 0x474   : > { %v7541_v59 = vmax.f32 %v7509_v38, 0.0  ;;  %v14981_v6 = vadd.f32 %v14216_v49, %v17714_v35  ;;  %v7352_v55 = vpop.f32.mrb[11].mxu0  ;;  %14262 = vmatmul.mubr.msk.f32.gmra.mrb[36].mxu1 %vm297_vm0, %v17978_v15 }
 0x475   : > { %v7540_v7 = vmax.f32 %v7508_v19, 0.0  ;;  %v14982_v18 = vadd.f32 %v7352_v55, %v17718_v57  ;;  %v17992_v35 = vld [vmem:[#allocation4 + $0x51] sm:$0xff] }
 0x476   : > { %7628 = vst.msk [vmem:[#allocation4 + $0x81] sm:$0xff] %vm297_vm0, %v7541_v59  ;;  %v7511_v37 = vadd.f32 %v14981_v6, %v17936_v29  ;;  %v17986_v62 = vld [vmem:[#allocation4 + $0x49] sm:$0xff] }
 0x477   : > { %7627 = vst.msk [vmem:[#allocation4 + $0x79] sm:$0xff] %vm297_vm0, %v7540_v7  ;;  %v7510_v24 = vadd.f32 %v14982_v18, %v17936_v29  ;;  %v14219_v20 = vpop.f32.mrb[12].mxu0  ;;  %14264 = vmatprep.mubr.msk.f32.mxu1 %vm297_vm0, %v17986_v62 }
 0x478   : > { %v7543_v30 = vmax.f32 %v7511_v37, 0.0  ;;  %v14983_v23 = vadd.f32 %v14219_v20, %v17723_v3  ;;  %v7362_v57 = vpop.f32.mrb[13].mxu0  ;;  %14265 = vmatmul.mubr.msk.f32.gmra.mrb[38].mxu1 %vm297_vm0, %v17992_v35 }
 0x479   : > { %v7542_v41 = vmax.f32 %v7510_v24, 0.0  ;;  %v14984_v26 = vadd.f32 %v7362_v57, %v17727_v56  ;;  %v18006_v3 = vld [vmem:[#allocation4 + $0x69] sm:$0xff] }
 0x47a   : > { %7630 = vst.msk [vmem:[#allocation4 + $0x99] sm:$0xff] %vm297_vm0, %v7543_v30  ;;  %v7513_v2 = vadd.f32 %v14983_v23, %v17936_v29  ;;  %v18000_v25 = vld [vmem:[#allocation4 + $0x61] sm:$0xff] }
 0x47b   : > { %7629 = vst.msk [vmem:[#allocation4 + $0x91] sm:$0xff] %vm297_vm0, %v7542_v41  ;;  %v7512_v32 = vadd.f32 %v14984_v26, %v17936_v29  ;;  %v14222_v28 = vpop.f32.mrb[14].mxu0  ;;  %14267 = vmatprep.mubr.msk.f32.mxu1 %vm297_vm0, %v18000_v25 }
 0x47c   : > { %v7545_v1 = vmax.f32 %v7513_v2, 0.0  ;;  %v14985_v52 = vadd.f32 %v14222_v28, %v17731_v60  ;;  %v7372_v56 = vpop.f32.mrb[15].mxu0  ;;  %14268 = vmatmul.mubr.msk.f32.gmra.mrb[40].mxu1 %vm297_vm0, %v18006_v3 }
 0x47d   : > { %v7544_v58 = vmax.f32 %v7512_v32, 0.0  ;;  %v14986_v10 = vadd.f32 %v7372_v56, %v17735_v61  ;;  %v18020_v60 = vld [vmem:[#allocation4 + $0x81] sm:$0xff] }
 0x47e   : > { %7632 = vst.msk [vmem:[#allocation4 + $0xb1] sm:$0xff] %vm297_vm0, %v7545_v1  ;;  %v7515_v53 = vadd.f32 %v14985_v52, %v17936_v29  ;;  %v18014_v47 = vld [vmem:[#allocation4 + $0x79] sm:$0xff] }
 0x47f   : > { %7631 = vst.msk [vmem:[#allocation4 + $0xa9] sm:$0xff] %vm297_vm0, %v7544_v58  ;;  %v7514_v14 = vadd.f32 %v14986_v10, %v17936_v29  ;;  %v14225_v22 = vpop.f32.mrb[16].mxu0  ;;  %14270 = vmatprep.mubr.msk.f32.mxu1 %vm297_vm0, %v18014_v47 }
 0x480   : > { %v7547_v34 = vmax.f32 %v7515_v53, 0.0  ;;  %v14987_v44 = vadd.f32 %v14225_v22, %v17745_v63  ;;  %v7382_v61 = vpop.f32.mrb[17].mxu0  ;;  %14271 = vmatmul.mubr.msk.f32.gmra.mrb[42].mxu1 %vm297_vm0, %v18020_v60 }
 0x481   : > { %v7546_v45 = vmax.f32 %v7514_v14, 0.0  ;;  %v14988_v31 = vadd.f32 %v7382_v61, %v17747_v0  ;;  %v18034_v63 = vld [vmem:[#allocation4 + $0x99] sm:$0xff] }
 0x482   : > { %7634 = vst.msk [vmem:[#allocation4 + $0xc9] sm:$0xff] %vm297_vm0, %v7547_v34  ;;  %v7517_v9 = vadd.f32 %v14987_v44, %v17936_v29  ;;  %v18028_v40 = vld [vmem:[#allocation4 + $0x91] sm:$0xff] }
 0x483   : > { %7633 = vst.msk [vmem:[#allocation4 + $0xc1] sm:$0xff] %vm297_vm0, %v7546_v45  ;;  %v7516_v11 = vadd.f32 %v14988_v31, %v17936_v29  ;;  %v14228_v16 = vpop.f32.mrb[18].mxu0  ;;  %14273 = vmatprep.mubr.msk.f32.mxu1 %vm297_vm0, %v18028_v40 }
 0x484   : > { %v7549_v38 = vmax.f32 %v7517_v9, 0.0  ;;  %v14989_v19 = vadd.f32 %v14228_v16, %v17753_v5  ;;  %v7392_v0 = vpop.f32.mrb[19].mxu0  ;;  %14274 = vmatmul.mubr.msk.f32.gmra.mrb[44].mxu1 %vm297_vm0, %v18034_v63 }
 0x485   : > { %v7548_v49 = vmax.f32 %v7516_v11, 0.0  ;;  %v14990_v59 = vadd.f32 %v7392_v0, %v17755_v27  ;;  %v18048_v5 = vld [vmem:[#allocation4 + $0xb1] sm:$0xff] }
 0x486   : > { %7636 = vst.msk [vmem:[#allocation4 + $0xe1] sm:$0xff] %vm297_vm0, %v7549_v38  ;;  %v7519_v6 = vadd.f32 %v14989_v19, %v17936_v29  ;;  %v18042_v55 = vld [vmem:[#allocation4 + $0xa9] sm:$0xff] }
 0x487   : > { %7635 = vst.msk [vmem:[#allocation4 + $0xd9] sm:$0xff] %vm297_vm0, %v7548_v49  ;;  %v7518_v7 = vadd.f32 %v14990_v59, %v17936_v29  ;;  %v14231_v18 = vpop.f32.mrb[20].mxu0  ;;  %14276 = vmatprep.mubr.msk.f32.mxu1 %vm297_vm0, %v18042_v55 }
 0x488   : > { %v7551_v37 = vmax.f32 %v7519_v6, 0.0  ;;  %v14991_v24 = vadd.f32 %v14231_v18, %v17761_v33  ;;  %v7402_v27 = vpop.f32.mrb[21].mxu0  ;;  %14277 = vmatmul.mubr.msk.f32.gmra.mrb[46].mxu1 %vm297_vm0, %v18048_v5 }
 0x489   : > { %v7550_v20 = vmax.f32 %v7518_v7, 0.0  ;;  %v14992_v30 = vadd.f32 %v7402_v27, %v17763_v43  ;;  %v18062_v33 = vld [vmem:[#allocation4 + $0xc9] sm:$0xff] }
 0x48a   : > { %7638 = vst.msk [vmem:[#allocation4 + $0xf9] sm:$0xff] %vm297_vm0, %v7551_v37  ;;  %v7521_v23 = vadd.f32 %v14991_v24, %v17936_v29  ;;  %v18056_v57 = vld [vmem:[#allocation4 + $0xc1] sm:$0xff] }
 0x48b   : > { %7637 = vst.msk [vmem:[#allocation4 + $0xf1] sm:$0xff] %vm297_vm0, %v7550_v20  ;;  %v7520_v41 = vadd.f32 %v14992_v30, %v17936_v29  ;;  %v14234_v26 = vpop.f32.mrb[22].mxu0  ;;  %14279 = vmatprep.mubr.msk.f32.mxu1 %vm297_vm0, %v18056_v57 }
 0x48c   : > { %v7553_v2 = vmax.f32 %v7521_v23, 0.0  ;;  %v14993_v32 = vadd.f32 %v14234_v26, %v17769_v12  ;;  %v7412_v43 = vpop.f32.mrb[23].mxu0  ;;  %14280 = vmatmul.mubr.msk.f32.gmra.mrb[48].mxu1 %vm297_vm0, %v18062_v33 }
 0x48d   : > { %v7552_v28 = vmax.f32 %v7520_v41, 0.0  ;;  %v14994_v1 = vadd.f32 %v7412_v43, %v17771_v39  ;;  %v18076_v12 = vld [vmem:[#allocation4 + $0xe1] sm:$0xff] }
 0x48e   : > { %7640 = vst.msk [vmem:[#allocation4 + $0x111] sm:$0xff] %vm297_vm0, %v7553_v2  ;;  %v7523_v52 = vadd.f32 %v14993_v32, %v17936_v29  ;;  %v18070_v56 = vld [vmem:[#allocation4 + $0xd9] sm:$0xff] }
 0x48f   : > { %7639 = vst.msk [vmem:[#allocation4 + $0x109] sm:$0xff] %vm297_vm0, %v7552_v28  ;;  %v7522_v58 = vadd.f32 %v14994_v1, %v17936_v29  ;;  %v14237_v10 = vpop.f32.mrb[24].mxu0  ;;  %14282 = vmatprep.mubr.msk.f32.mxu1 %vm297_vm0, %v18070_v56 }
 0x490   : > { %v7555_v53 = vmax.f32 %v7523_v52, 0.0  ;;  %v14995_v14 = vadd.f32 %v14237_v10, %v17777_v42  ;;  %v7422_v39 = vpop.f32.mrb[25].mxu0  ;;  %14283 = vmatmul.mubr.msk.f32.gmra.mrb[50].mxu1 %vm297_vm0, %v18076_v12  ;;  %v7651_v10 = vld [vmem:[#allocation4] sm:$0xff] }
 0x491   : > { %v7554_v22 = vmax.f32 %v7522_v58, 0.0  ;;  %v14996_v34 = vadd.f32 %v7422_v39, %v17779_v36  ;;  %v18090_v42 = vld [vmem:[#allocation4 + $0xf9] sm:$0xff] }
 0x492   : > { %7642 = vst.msk [vmem:[#allocation4 + $0x129] sm:$0xff] %vm297_vm0, %v7555_v53  ;;  %v7525_v44 = vadd.f32 %v14995_v14, %v17936_v29  ;;  %v18084_v61 = vld [vmem:[#allocation4 + $0xf1] sm:$0xff] }
 0x493   : > { %7641 = vst.msk [vmem:[#allocation4 + $0x121] sm:$0xff] %vm297_vm0, %v7554_v22  ;;  %v7524_v45 = vadd.f32 %v14996_v34, %v17936_v29  ;;  %v14240_v31 = vpop.f32.mrb[26].mxu0  ;;  %14285 = vmatprep.mubr.msk.f32.mxu1 %vm297_vm0, %v18084_v61  ;;  %v12008_v14 = vld [vmem:[%s19017_s5 + $0x50] sm:$0xff]  ;;  %v12009_v39 = vld [vmem:[%s19017_s5 + $0x58] sm:$0xff]  ;;  %v7652_v22 = vld [vmem:[#allocation4 + $0x8] sm:$0xff] }
 0x494   : > { %v7557_v9 = vmax.f32 %v7525_v44, 0.0  ;;  %v14997_v11 = vadd.f32 %v14240_v31, %v17785_v48  ;;  %v7432_v36 = vpop.f32.mrb[27].mxu0  ;;  %14286 = vmatmul.mubr.msk.f32.gmra.mrb[52].mxu1 %vm297_vm0, %v18090_v42  ;;  %v14915_v34 = vpack.c.bf16 %v12009_v39, %v12008_v14  ;;  %v12042_v44 = vld [vmem:[%s19017_s5 + $0x60] sm:$0xff]  ;;  %v18168_v31 = vld [vmem:[#allocation4 + $0x18] sm:$0xff] }
 0x495   : > { %v7556_v16 = vmax.f32 %v7524_v45, 0.0  ;;  %v14998_v38 = vadd.f32 %v7432_v36, %v17787_v50  ;;  %v18104_v48 = vld [vmem:[#allocation4 + $0x111] sm:$0xff]  ;;  %v12043_v45 = vld [vmem:[%s19017_s5 + $0x68] sm:$0xff] }
 0x496   : > { %7644 = vst.msk [vmem:[#allocation4 + $0x141] sm:$0xff] %vm297_vm0, %v7557_v9  ;;  %v7527_v19 = vadd.f32 %v14997_v11, %v17936_v29  ;;  %v18098_v0 = vld [vmem:[#allocation4 + $0x109] sm:$0xff]  ;;  %v18173_v9 = vpack.c.bf16 %v12043_v45, %v12042_v44  ;;  %v18175_v11 = vld [vmem:[#allocation4 + $0x20] sm:$0xff]  ;;  %v12045_v45 = vld [vmem:[%s19017_s5 + $0x78] sm:$0xff] }
 0x497   : > { %7643 = vst.msk [vmem:[#allocation4 + $0x139] sm:$0xff] %vm297_vm0, %v7556_v16  ;;  %v7526_v49 = vadd.f32 %v14998_v38, %v17936_v29  ;;  %v14243_v59 = vpop.f32.mrb[28].mxu0  ;;  %14288 = vmatprep.mubr.msk.f32.mxu1 %vm297_vm0, %v18098_v0  ;;  %v18179_v36 = vld [vmem:[#allocation4 + $0x30] sm:$0xff]  ;;  %v18188_v16 = vld [vmem:[#allocation4 + $0x48] sm:$0xff] }
 0x498   : > { %v7559_v6 = vmax.f32 %v7527_v19, 0.0  ;;  %v14999_v7 = vadd.f32 %v14243_v59, %v17793_v54  ;;  %v7442_v50 = vpop.f32.mrb[29].mxu0  ;;  %14289 = vmatmul.mubr.msk.f32.gmra.mrb[54].mxu1 %vm297_vm0, %v18104_v48  ;;  %v18192_v38 = vld [vmem:[#allocation4 + $0x50] sm:$0xff]  ;;  %v18196_v19 = vld [vmem:[#allocation4 + $0x60] sm:$0xff]  ;;  %v18204_v59 = vld [vmem:[#allocation4 + $0x78] sm:$0xff] }
 0x499   : > { %v7558_v18 = vmax.f32 %v7526_v49, 0.0  ;;  %v15000_v37 = vadd.f32 %v7442_v50, %v17795_v8  ;;  %v18118_v54 = vld [vmem:[#allocation4 + $0x129] sm:$0xff]  ;;  %v18216_v50 = vld [vmem:[#allocation4 + $0x98] sm:$0xff] }
 0x49a   : > { %7646 = vst.msk [vmem:[#allocation4 + $0x159] sm:$0xff] %vm297_vm0, %v7559_v6  ;;  %v7529_v24 = vadd.f32 %v14999_v7, %v17936_v29  ;;  %v18112_v27 = vld [vmem:[#allocation4 + $0x121] sm:$0xff]  ;;  %v18212_v7 = vld [vmem:[#allocation4 + $0x90] sm:$0xff] }
 0x49b   : > { %7645 = vst.msk [vmem:[#allocation4 + $0x151] sm:$0xff] %vm297_vm0, %v7558_v18  ;;  %v7528_v20 = vadd.f32 %v15000_v37, %v17936_v29  ;;  %v14246_v30 = vpop.f32.mrb[30].mxu0  ;;  %14291 = vmatprep.mubr.msk.f32.mxu1 %vm297_vm0, %v18112_v27  ;;  %v18200_v49 = vld [vmem:[#allocation4 + $0x68] sm:$0xff]  ;;  %v18208_v6 = vld [vmem:[#allocation4 + $0x80] sm:$0xff]  ;;  %v18224_v37 = vld [vmem:[#allocation4 + $0xb0] sm:$0xff] }
 0x49c   : > { %v7561_v23 = vmax.f32 %v7529_v24, 0.0  ;;  %v15001_v41 = vadd.f32 %v14246_v30, %v17801_v4  ;;  %v7452_v8 = vpop.f32.mrb[31].mxu0  ;;  %14292 = vmatmul.mubr.msk.f32.gmra.mrb[56].mxu1 %vm297_vm0, %v18118_v54  ;;  %v18220_v18 = vld [vmem:[#allocation4 + $0xa8] sm:$0xff]  ;;  %v18228_v24 = vld [vmem:[#allocation4 + $0xc0] sm:$0xff]  ;;  %v18236_v30 = vld [vmem:[#allocation4 + $0xd8] sm:$0xff] }
 0x49d   : > { %v7560_v26 = vmax.f32 %v7528_v20, 0.0  ;;  %v15002_v2 = vadd.f32 %v7452_v8, %v17803_v46  ;;  %v18132_v4 = vld [vmem:[#allocation4 + $0x141] sm:$0xff]  ;;  %v18248_v8 = vld [vmem:[#allocation4 + $0xf8] sm:$0xff]  ;;  %v12044_v44 = vld [vmem:[%s19017_s5 + $0x70] sm:$0xff] }
 0x49e   : > { %7648 = vst.msk [vmem:[#allocation4 + $0x171] sm:$0xff] %vm297_vm0, %v7561_v23  ;;  %v7531_v32 = vadd.f32 %v15001_v41, %v17936_v29  ;;  %v18126_v43 = vld [vmem:[#allocation4 + $0x139] sm:$0xff]  ;;  %19102 = vst [vmem:[#allocation8_spill] sm:$0xff] %v18132_v4  ;;  %v18232_v20 = vld [vmem:[#allocation4 + $0xc8] sm:$0xff] }
 0x49f   : > { %7647 = vst.msk [vmem:[#allocation4 + $0x169] sm:$0xff] %vm297_vm0, %v7560_v26  ;;  %v7530_v28 = vadd.f32 %v15002_v2, %v17936_v29  ;;  %14294 = vmatprep.mubr.msk.f32.mxu1 %vm297_vm0, %v18126_v43  ;;  %v18240_v23 = vld [vmem:[#allocation4 + $0xe0] sm:$0xff]  ;;  %v18244_v41 = vld [vmem:[#allocation4 + $0xf0] sm:$0xff]  ;;  %v18252_v26 = vld [vmem:[#allocation4 + $0x108] sm:$0xff] }
 0x4a0   : > { %v7563_v1 = vmax.f32 %v7531_v32, 0.0  ;;  %14295 = vmatmul.mubr.msk.f32.gmra.mrb[58].mxu1 %vm297_vm0, %v18132_v4  ;;  %v18256_v2 = vld [vmem:[#allocation4 + $0x110] sm:$0xff]  ;;  %v18260_v32 = vld [vmem:[#allocation4 + $0x120] sm:$0xff] }
 0x4a1   : > { %v7562_v46 = vmax.f32 %v7530_v28, 0.0  ;;  %v18142_v29 = vld [vmem:[#allocation4 + $0x159] sm:$0xff]  ;;  %v18264_v28 = vld [vmem:[#allocation4 + $0x128] sm:$0xff] }
 0x4a2   : > { %7650 = vst.msk [vmem:[#allocation4 + $0x189] sm:$0xff] %vm297_vm0, %v7563_v1  ;;  %v18137_v52 = vld [vmem:[#allocation4 + $0x151] sm:$0xff]  ;;  %19104 = vst [vmem:[#allocation10_spill] sm:$0xff] %v18142_v29  ;;  %v18306_v4 = vld [vmem:[#allocation4 + $0x1a] sm:$0xff] }
 0x4a3   : > { %19103 = vst [vmem:[#allocation9_spill] sm:$0xff] %v18137_v52  ;;  %7649 = vst.msk [vmem:[#allocation4 + $0x181] sm:$0xff] %vm297_vm0, %v7562_v46  ;;  %14297 = vmatprep.mubr.msk.f32.mxu1 %vm297_vm0, %v18137_v52  ;;  %v18268_v1 = vld [vmem:[#allocation4 + $0x138] sm:$0xff]  ;;  %v18272_v46 = vld [vmem:[#allocation4 + $0x140] sm:$0xff] }
 0x4a4   : > { %14298 = vmatmul.mubr.msk.f32.gmra.mrb[60].mxu1 %vm297_vm0, %v18142_v29  ;;  %v18280_v14 = vld [vmem:[#allocation4 + $0x158] sm:$0xff]  ;;  %v12078_v29 = vld [vmem:[%s19017_s5 + $0x80] sm:$0xff]  ;;  %v12079_v52 = vld [vmem:[%s19017_s5 + $0x88] sm:$0xff] }
 0x4a5   : > { %v18150_v53 = vld [vmem:[#allocation4 + $0x171] sm:$0xff] }
 0x4a6   : > { %v18146_v58 = vld [vmem:[#allocation4 + $0x169] sm:$0xff]  ;;  %19106 = vst [vmem:[#allocation12_spill] sm:$0xff] %v18150_v53 }
 0x4a7   : > { %19105 = vst [vmem:[#allocation11_spill] sm:$0xff] %v18146_v58  ;;  %14300 = vmatprep.mubr.msk.f32.mxu1 %vm297_vm0, %v18146_v58  ;;  %v18284_v39 = vld [vmem:[#allocation4 + $0x168] sm:$0xff]  ;;  %v14923_v58 = vpack.c.bf16 %v12045_v45, %v12044_v44  ;;  %v18317_v45 = vld [vmem:[#allocation4 + $0x32] sm:$0xff] }
 0x4a8   : > { %14301 = vmatmul.mubr.msk.f32.gmra.mrb[62].mxu1 %vm297_vm0, %v18150_v53  ;;  %v8367_v53 = vld [vmem:[#allocation4 + $0xa] sm:$0xff]  ;;  %v18313_v44 = vld [vmem:[#allocation4 + $0x22] sm:$0xff]  ;;  %19107 = vst [vmem:[#allocation13_spill] sm:$0xff] %v18317_v45 }
 0x4a9   : > { %14311 = vmatprep.mubr.msk.f32.mxu1 %vm297_vm0, %v7651_v10  ;;  %v18276_v10 = vld [vmem:[#allocation4 + $0x150] sm:$0xff] }
 0x4ac   : > { %14312 = vmatmul.mubr.msk.f32.vlgmr.msra.gmra.mrb[32].mxu1 %vm297_vm0, %v7652_v22  ;;  %v8366_v22 = vld [vmem:[#allocation4 + $0x2] sm:$0xff] }
 0x4ad   : > { %14914 = vmatpush3.bf16.msra.mxu1 %v17930_v17  ;;  %14314 = vmatprep.mubr.msk.f32.mxu1 %vm297_vm0, %v18168_v31  ;;  %v18184_v17 = vld [vmem:[#allocation4 + $0x38] sm:$0xff] }
 0x4ae   : > { %14916 = vmatprep.subr.bf16.mxu1 %v14915_v34 }
 0x4b0   : > { %14315 = vmatmul.mubr.msk.f32.gmra.mrb[34].mxu1 %vm297_vm0, %v18175_v11 }
 0x4b1   : > { %14317 = vmatprep.mubr.msk.f32.mxu1 %vm297_vm0, %v18179_v36  ;;  %14918 = vmatpush3.bf16.msra.mxu1 %v14915_v34  ;;  %v18288_v34 = vld [vmem:[#allocation4 + $0x170] sm:$0xff] }
 0x4b2   : > { %14920 = vmatprep.subr.bf16.mxu1 %v18173_v9 }
 0x4b4   : > { %14318 = vmatmul.mubr.msk.f32.gmra.mrb[36].mxu1 %vm297_vm0, %v18184_v17 }
 0x4b5   : > { %14320 = vmatprep.mubr.msk.f32.mxu1 %vm297_vm0, %v18188_v16 }
 0x4b8   : > { %14321 = vmatmul.mubr.msk.f32.gmra.mrb[38].mxu1 %vm297_vm0, %v18192_v38 }
 0x4b9   : > { %14323 = vmatprep.mubr.msk.f32.mxu1 %vm297_vm0, %v18196_v19 }
 0x4bc   : > { %14324 = vmatmul.mubr.msk.f32.gmra.mrb[40].mxu1 %vm297_vm0, %v18200_v49 }
 0x4bd   : > { %14326 = vmatprep.mubr.msk.f32.mxu1 %vm297_vm0, %v18204_v59 }
 0x4c0   : > { %14327 = vmatmul.mubr.msk.f32.gmra.mrb[42].mxu1 %vm297_vm0, %v18208_v6 }
 0x4c1   : > { %14329 = vmatprep.mubr.msk.f32.mxu1 %vm297_vm0, %v18212_v7 }
 0x4c4   : > { %14330 = vmatmul.mubr.msk.f32.gmra.mrb[44].mxu1 %vm297_vm0, %v18216_v50 }
 0x4c5   : > { %14332 = vmatprep.mubr.msk.f32.mxu1 %vm297_vm0, %v18220_v18 }
 0x4c8   : > { %14333 = vmatmul.mubr.msk.f32.gmra.mrb[46].mxu1 %vm297_vm0, %v18224_v37 }
 0x4c9   : > { %14335 = vmatprep.mubr.msk.f32.mxu1 %vm297_vm0, %v18228_v24 }
 0x4cc   : > { %14336 = vmatmul.mubr.msk.f32.gmra.mrb[48].mxu1 %vm297_vm0, %v18232_v20 }
 0x4cd   : > { %14338 = vmatprep.mubr.msk.f32.mxu1 %vm297_vm0, %v18236_v30 }
 0x4d0   : > { %14339 = vmatmul.mubr.msk.f32.gmra.mrb[50].mxu1 %vm297_vm0, %v18240_v23 }
 0x4d1   : > { %14341 = vmatprep.mubr.msk.f32.mxu1 %vm297_vm0, %v18244_v41 }
 0x4d4   : > { %14342 = vmatmul.mubr.msk.f32.gmra.mrb[52].mxu1 %vm297_vm0, %v18248_v8 }
 0x4d5   : > { %14344 = vmatprep.mubr.msk.f32.mxu1 %vm297_vm0, %v18252_v26 }
 0x4d8   : > { %14345 = vmatmul.mubr.msk.f32.gmra.mrb[54].mxu1 %vm297_vm0, %v18256_v2 }
 0x4d9   : > { %14347 = vmatprep.mubr.msk.f32.mxu1 %vm297_vm0, %v18260_v32 }
 0x4dc   : > { %14348 = vmatmul.mubr.msk.f32.gmra.mrb[56].mxu1 %vm297_vm0, %v18264_v28 }
 0x4dd   : > { %14350 = vmatprep.mubr.msk.f32.mxu1 %vm297_vm0, %v18268_v1 }
 0x4e0   : > { %14351 = vmatmul.mubr.msk.f32.gmra.mrb[58].mxu1 %vm297_vm0, %v18272_v46 }
 0x4e1   : > { %14353 = vmatprep.mubr.msk.f32.mxu1 %vm297_vm0, %v18276_v10 }
 0x4e4   : > { %14354 = vmatmul.mubr.msk.f32.gmra.mrb[60].mxu1 %vm297_vm0, %v18280_v14 }
 0x4e5   : > { %14356 = vmatprep.mubr.msk.f32.mxu1 %vm297_vm0, %v18284_v39 }
 0x4e8   : > { %14357 = vmatmul.mubr.msk.f32.gmra.mrb[62].mxu1 %vm297_vm0, %v18288_v34 }
 0x4e9   : > { %14367 = vmatprep.mubr.msk.f32.mxu1 %vm297_vm0, %v8366_v22  ;;  %v18311_v22 = vpack.c.bf16 %v12079_v52, %v12078_v29  ;;  %v18326_v52 = vld [vmem:[#allocation4 + $0x4a] sm:$0xff]  ;;  %v18330_v29 = vld [vmem:[#allocation4 + $0x52] sm:$0xff] }
 0x4ea   : > { %19109 = vst [vmem:[#allocation15_spill] sm:$0xff] %v18326_v52  ;;  %19110 = vst [vmem:[#allocation16_spill] sm:$0xff] %v18330_v29 }
 0x4ec   : > { %14368 = vmatmul.mubr.msk.f32.vlgmr.msra.gmra.mrb[32].mxu1 %vm297_vm0, %v8367_v53  ;;  %v18322_v53 = vld [vmem:[#allocation4 + $0x3a] sm:$0xff] }
 0x4ed   : > { %14922 = vmatpush3.bf16.msra.mxu1 %v18173_v9  ;;  %14370 = vmatprep.mubr.msk.f32.mxu1 %vm297_vm0, %v18306_v4  ;;  %19108 = vst [vmem:[#allocation14_spill] sm:$0xff] %v18322_v53  ;;  %v18334_v9 = vld [vmem:[#allocation4 + $0x62] sm:$0xff] }
 0x4ee   : > { %14924 = vmatprep.subr.bf16.mxu1 %v14923_v58  ;;  %19111 = vst [vmem:[#allocation17_spill] sm:$0xff] %v18334_v9 }
 0x4f0   : > { %14371 = vmatmul.mubr.msk.f32.gmra.mrb[34].mxu1 %vm297_vm0, %v18313_v44 }
 0x4f1   : > { %14373 = vmatprep.mubr.msk.f32.mxu1 %vm297_vm0, %v18317_v45  ;;  %14926 = vmatpush3.bf16.msra.mxu1 %v14923_v58  ;;  %v18338_v58 = vld [vmem:[#allocation4 + $0x6a] sm:$0xff] }
 0x4f2   : > { %14928 = vmatprep.subr.bf16.mxu1 %v18311_v22  ;;  %19112 = vst [vmem:[#allocation18_spill] sm:$0xff] %v18338_v58  ;;  %v12115_v45 = vld [vmem:[%s19017_s5 + $0xa8] sm:$0xff] }
 0x4f4   : > { %14374 = vmatmul.mubr.msk.f32.gmra.mrb[36].mxu1 %vm297_vm0, %v18322_v53  ;;  %v18342_v53 = vld [vmem:[#allocation4 + $0x7a] sm:$0xff] }
 0x4f5   : > { %14376 = vmatprep.mubr.msk.f32.mxu1 %vm297_vm0, %v18326_v52  ;;  %19113 = vst [vmem:[#allocation19_spill] sm:$0xff] %v18342_v53  ;;  %v18346_v52 = vld [vmem:[#allocation4 + $0x82] sm:$0xff] }
 0x4f6   : > { %19114 = vst [vmem:[#allocation20_spill] sm:$0xff] %v18346_v52 }
 0x4f8   : > { %14377 = vmatmul.mubr.msk.f32.gmra.mrb[38].mxu1 %vm297_vm0, %v18330_v29  ;;  %v18350_v29 = vld [vmem:[#allocation4 + $0x92] sm:$0xff] }
 0x4f9   : > { %14379 = vmatprep.mubr.msk.f32.mxu1 %vm297_vm0, %v18334_v9  ;;  %19115 = vst [vmem:[#allocation21_spill] sm:$0xff] %v18350_v29  ;;  %v18354_v9 = vld [vmem:[#allocation4 + $0x9a] sm:$0xff] }
 0x4fa   : > { %19116 = vst [vmem:[#allocation22_spill] sm:$0xff] %v18354_v9 }
 0x4fc   : > { %14380 = vmatmul.mubr.msk.f32.gmra.mrb[40].mxu1 %vm297_vm0, %v18338_v58  ;;  %v18358_v58 = vld [vmem:[#allocation4 + $0xaa] sm:$0xff] }
 0x4fd   : > { %14382 = vmatprep.mubr.msk.f32.mxu1 %vm297_vm0, %v18342_v53  ;;  %19117 = vst [vmem:[#allocation23_spill] sm:$0xff] %v18358_v58  ;;  %v18362_v53 = vld [vmem:[#allocation4 + $0xb2] sm:$0xff] }
 0x4fe   : > { %19118 = vst [vmem:[#allocation24_spill] sm:$0xff] %v18362_v53 }
 0x500   : > { %14383 = vmatmul.mubr.msk.f32.gmra.mrb[42].mxu1 %vm297_vm0, %v18346_v52  ;;  %v18366_v52 = vld [vmem:[#allocation4 + $0xc2] sm:$0xff] }
 0x501   : > { %14385 = vmatprep.mubr.msk.f32.mxu1 %vm297_vm0, %v18350_v29  ;;  %19119 = vst [vmem:[#allocation25_spill] sm:$0xff] %v18366_v52  ;;  %v18370_v29 = vld [vmem:[#allocation4 + $0xca] sm:$0xff] }
 0x502   : > { %19120 = vst [vmem:[#allocation26_spill] sm:$0xff] %v18370_v29 }
 0x504   : > { %14386 = vmatmul.mubr.msk.f32.gmra.mrb[44].mxu1 %vm297_vm0, %v18354_v9  ;;  %v18374_v9 = vld [vmem:[#allocation4 + $0xda] sm:$0xff] }
 0x505   : > { %14388 = vmatprep.mubr.msk.f32.mxu1 %vm297_vm0, %v18358_v58  ;;  %19121 = vst [vmem:[#allocation27_spill] sm:$0xff] %v18374_v9  ;;  %v18378_v58 = vld [vmem:[#allocation4 + $0xe2] sm:$0xff] }
 0x506   : > { %19122 = vst [vmem:[#allocation28_spill] sm:$0xff] %v18378_v58 }
 0x508   : > { %14389 = vmatmul.mubr.msk.f32.gmra.mrb[46].mxu1 %vm297_vm0, %v18362_v53  ;;  %v18382_v53 = vld [vmem:[#allocation4 + $0xf2] sm:$0xff] }
 0x509   : > { %14391 = vmatprep.mubr.msk.f32.mxu1 %vm297_vm0, %v18366_v52  ;;  %19123 = vst [vmem:[#allocation29_spill] sm:$0xff] %v18382_v53  ;;  %v18386_v52 = vld [vmem:[#allocation4 + $0xfa] sm:$0xff] }
 0x50a   : > { %19124 = vst [vmem:[#allocation30_spill] sm:$0xff] %v18386_v52 }
 0x50c   : > { %14392 = vmatmul.mubr.msk.f32.gmra.mrb[48].mxu1 %vm297_vm0, %v18370_v29  ;;  %v18390_v29 = vld [vmem:[#allocation4 + $0x10a] sm:$0xff] }
 0x50d   : > { %14394 = vmatprep.mubr.msk.f32.mxu1 %vm297_vm0, %v18374_v9  ;;  %19125 = vst [vmem:[#allocation31_spill] sm:$0xff] %v18390_v29  ;;  %v18394_v9 = vld [vmem:[#allocation4 + $0x112] sm:$0xff] }
 0x50e   : > { %19126 = vst [vmem:[#allocation32_spill] sm:$0xff] %v18394_v9 }
 0x510   : > { %14395 = vmatmul.mubr.msk.f32.gmra.mrb[50].mxu1 %vm297_vm0, %v18378_v58  ;;  %v18398_v58 = vld [vmem:[#allocation4 + $0x122] sm:$0xff] }
 0x511   : > { %14397 = vmatprep.mubr.msk.f32.mxu1 %vm297_vm0, %v18382_v53  ;;  %19127 = vst [vmem:[#allocation33_spill] sm:$0xff] %v18398_v58  ;;  %v18402_v53 = vld [vmem:[#allocation4 + $0x12a] sm:$0xff] }
 0x512   : > { %19128 = vst [vmem:[#allocation34_spill] sm:$0xff] %v18402_v53 }
 0x514   : > { %14398 = vmatmul.mubr.msk.f32.gmra.mrb[52].mxu1 %vm297_vm0, %v18386_v52  ;;  %v18406_v52 = vld [vmem:[#allocation4 + $0x13a] sm:$0xff] }
 0x515   : > { %14400 = vmatprep.mubr.msk.f32.mxu1 %vm297_vm0, %v18390_v29  ;;  %19129 = vst [vmem:[#allocation35_spill] sm:$0xff] %v18406_v52  ;;  %v18410_v29 = vld [vmem:[#allocation4 + $0x142] sm:$0xff] }
 0x516   : > { %19130 = vst [vmem:[#allocation36_spill] sm:$0xff] %v18410_v29 }
 0x518   : > { %14401 = vmatmul.mubr.msk.f32.gmra.mrb[54].mxu1 %vm297_vm0, %v18394_v9  ;;  %v18414_v9 = vld [vmem:[#allocation4 + $0x152] sm:$0xff] }
 0x519   : > { %14403 = vmatprep.mubr.msk.f32.mxu1 %vm297_vm0, %v18398_v58  ;;  %19131 = vst [vmem:[#allocation37_spill] sm:$0xff] %v18414_v9  ;;  %v18418_v58 = vld [vmem:[#allocation4 + $0x15a] sm:$0xff] }
 0x51a   : > { %19132 = vst [vmem:[#allocation38_spill] sm:$0xff] %v18418_v58 }
 0x51c   : > { %14404 = vmatmul.mubr.msk.f32.gmra.mrb[56].mxu1 %vm297_vm0, %v18402_v53  ;;  %v18422_v53 = vld [vmem:[#allocation4 + $0x16a] sm:$0xff] }
 0x51d   : > { %14406 = vmatprep.mubr.msk.f32.mxu1 %vm297_vm0, %v18406_v52  ;;  %19133 = vst [vmem:[#allocation39_spill] sm:$0xff] %v18422_v53  ;;  %v18426_v52 = vld [vmem:[#allocation4 + $0x172] sm:$0xff] }
 0x51e   : > { %19134 = vst [vmem:[#allocation40_spill] sm:$0xff] %v18426_v52 }
 0x520   : > { %14407 = vmatmul.mubr.msk.f32.gmra.mrb[58].mxu1 %vm297_vm0, %v18410_v29  ;;  %v12080_v29 = vld [vmem:[%s19017_s5 + $0x90] sm:$0xff] }
 0x521   : > { %14409 = vmatprep.mubr.msk.f32.mxu1 %vm297_vm0, %v18414_v9  ;;  %v12081_v9 = vld [vmem:[%s19017_s5 + $0x98] sm:$0xff] }
 0x524   : > { %14410 = vmatmul.mubr.msk.f32.gmra.mrb[60].mxu1 %vm297_vm0, %v18418_v58  ;;  %v14931_v58 = vpack.c.bf16 %v12081_v9, %v12080_v29  ;;  %v12150_v29 = vld [vmem:[%s19017_s5 + $0xc0] sm:$0xff]  ;;  %v12151_v9 = vld [vmem:[%s19017_s5 + $0xc8] sm:$0xff] }
 0x525   : > { %14412 = vmatprep.mubr.msk.f32.mxu1 %vm297_vm0, %v18422_v53  ;;  %v12114_v53 = vld [vmem:[%s19017_s5 + $0xa0] sm:$0xff] }
 0x528   : > { %14413 = vmatmul.mubr.msk.f32.gmra.mrb[62].mxu1 %vm297_vm0, %v18426_v52  ;;  %v14935_v52 = vpack.c.bf16 %v12115_v45, %v12114_v53  ;;  %v12117_v45 = vld [vmem:[%s19017_s5 + $0xb8] sm:$0xff] }
 0x529   : > { %14423 = vmatprep.mubr.msk.f32.mxu1 %vm297_vm0, %v18168_v31  ;;  %v18503_v31 = vld [vmem:[#allocation4 + $0x180] sm:$0xff] }
 0x52c   : > { %14424 = vmatmul.mubr.msk.f32.vlgmr.msra.gmra.mrb[32].mxu1 %vm297_vm0, %v18175_v11  ;;  %v18507_v11 = vld [vmem:[#allocation4 + $0x188] sm:$0xff] }
 0x52d   : > { %14930 = vmatpush3.bf16.msra.mxu1 %v18311_v22  ;;  %14426 = vmatprep.mubr.msk.f32.mxu1 %vm297_vm0, %v18179_v36  ;;  %v12116_v22 = vld [vmem:[%s19017_s5 + $0xb0] sm:$0xff] }
 0x52e   : > { %14932 = vmatprep.subr.bf16.mxu1 %v14931_v58  ;;  %v14939_v53 = vpack.c.bf16 %v12117_v45, %v12116_v22  ;;  %v19153_v22 = vld [vmem:[#allocation26_spill] sm:$0xff]  ;;  %v19154_v45 = vld [vmem:[#allocation27_spill] sm:$0xff] }
 0x530   : > { %14427 = vmatmul.mubr.msk.f32.gmra.mrb[34].mxu1 %vm297_vm0, %v18184_v17 }
 0x531   : > { %14429 = vmatprep.mubr.msk.f32.mxu1 %vm297_vm0, %v18188_v16  ;;  %14934 = vmatpush3.bf16.msra.mxu1 %v14931_v58  ;;  %v14943_v58 = vpack.c.bf16 %v12151_v9, %v12150_v29  ;;  %v19156_v29 = vld [vmem:[#allocation29_spill] sm:$0xff]  ;;  %v19157_v9 = vld [vmem:[#allocation30_spill] sm:$0xff] }
 0x532   : > { %14936 = vmatprep.subr.bf16.mxu1 %v14935_v52 }
 0x534   : > { %14430 = vmatmul.mubr.msk.f32.gmra.mrb[36].mxu1 %vm297_vm0, %v18192_v38 }
 0x535   : > { %14432 = vmatprep.mubr.msk.f32.mxu1 %vm297_vm0, %v18196_v19 }
 0x538   : > { %14433 = vmatmul.mubr.msk.f32.gmra.mrb[38].mxu1 %vm297_vm0, %v18200_v49 }
 0x539   : > { %14435 = vmatprep.mubr.msk.f32.mxu1 %vm297_vm0, %v18204_v59 }
 0x53c   : > { %14436 = vmatmul.mubr.msk.f32.gmra.mrb[40].mxu1 %vm297_vm0, %v18208_v6 }
 0x53d   : > { %14438 = vmatprep.mubr.msk.f32.mxu1 %vm297_vm0, %v18212_v7 }
 0x540   : > { %14439 = vmatmul.mubr.msk.f32.gmra.mrb[42].mxu1 %vm297_vm0, %v18216_v50 }
 0x541   : > { %14441 = vmatprep.mubr.msk.f32.mxu1 %vm297_vm0, %v18220_v18 }
 0x544   : > { %14442 = vmatmul.mubr.msk.f32.gmra.mrb[44].mxu1 %vm297_vm0, %v18224_v37 }
 0x545   : > { %14444 = vmatprep.mubr.msk.f32.mxu1 %vm297_vm0, %v18228_v24 }
 0x548   : > { %14445 = vmatmul.mubr.msk.f32.gmra.mrb[46].mxu1 %vm297_vm0, %v18232_v20 }
 0x549   : > { %14447 = vmatprep.mubr.msk.f32.mxu1 %vm297_vm0, %v18236_v30 }
 0x54c   : > { %14448 = vmatmul.mubr.msk.f32.gmra.mrb[48].mxu1 %vm297_vm0, %v18240_v23 }
 0x54d   : > { %14450 = vmatprep.mubr.msk.f32.mxu1 %vm297_vm0, %v18244_v41 }
 0x550   : > { %14451 = vmatmul.mubr.msk.f32.gmra.mrb[50].mxu1 %vm297_vm0, %v18248_v8 }
 0x551   : > { %14453 = vmatprep.mubr.msk.f32.mxu1 %vm297_vm0, %v18252_v26 }
 0x554   : > { %14454 = vmatmul.mubr.msk.f32.gmra.mrb[52].mxu1 %vm297_vm0, %v18256_v2 }
 0x555   : > { %14456 = vmatprep.mubr.msk.f32.mxu1 %vm297_vm0, %v18260_v32 }
 0x558   : > { %14457 = vmatmul.mubr.msk.f32.gmra.mrb[54].mxu1 %vm297_vm0, %v18264_v28 }
 0x559   : > { %14459 = vmatprep.mubr.msk.f32.mxu1 %vm297_vm0, %v18268_v1 }
 0x55c   : > { %14460 = vmatmul.mubr.msk.f32.gmra.mrb[56].mxu1 %vm297_vm0, %v18272_v46 }
 0x55d   : > { %14462 = vmatprep.mubr.msk.f32.mxu1 %vm297_vm0, %v18276_v10 }
 0x560   : > { %14463 = vmatmul.mubr.msk.f32.gmra.mrb[58].mxu1 %vm297_vm0, %v18280_v14 }
 0x561   : > { %14465 = vmatprep.mubr.msk.f32.mxu1 %vm297_vm0, %v18284_v39 }
 0x564   : > { %14466 = vmatmul.mubr.msk.f32.gmra.mrb[60].mxu1 %vm297_vm0, %v18288_v34 }
 0x565   : > { %14468 = vmatprep.mubr.msk.f32.mxu1 %vm297_vm0, %v18503_v31 }
 0x568   : > { %14469 = vmatmul.mubr.msk.f32.gmra.mrb[62].mxu1 %vm297_vm0, %v18507_v11 }
 0x569   : > { %14479 = vmatprep.mubr.msk.f32.mxu1 %vm297_vm0, %v17958_v51  ;;  %v19135_v51 = vld [vmem:[#allocation8_spill] sm:$0xff] }
 0x56c   : > { %14480 = vmatmul.mubr.msk.f32.vlgmr.msra.gmra.mrb[32].mxu1 %vm297_vm0, %v17964_v21  ;;  %v19136_v21 = vld [vmem:[#allocation9_spill] sm:$0xff] }
 0x56d   : > { %14938 = vmatpush3.bf16.msra.mxu1 %v14935_v52  ;;  %14482 = vmatprep.mubr.msk.f32.mxu1 %vm297_vm0, %v17972_v13  ;;  %v19137_v13 = vld [vmem:[#allocation10_spill] sm:$0xff]  ;;  %v19152_v52 = vld [vmem:[#allocation25_spill] sm:$0xff] }
 0x56e   : > { %14940 = vmatprep.subr.bf16.mxu1 %v14939_v53 }
 0x570   : > { %14483 = vmatmul.mubr.msk.f32.gmra.mrb[34].mxu1 %vm297_vm0, %v17978_v15  ;;  %v19138_v15 = vld [vmem:[#allocation11_spill] sm:$0xff] }
 0x571   : > { %14485 = vmatprep.mubr.msk.f32.mxu1 %vm297_vm0, %v17986_v62  ;;  %14942 = vmatpush3.bf16.msra.mxu1 %v14939_v53  ;;  %v19139_v62 = vld [vmem:[#allocation12_spill] sm:$0xff] }
 0x572   : > { %14944 = vmatprep.subr.bf16.mxu1 %v14943_v58  ;;  %v19155_v53 = vld [vmem:[#allocation28_spill] sm:$0xff] }
 0x574   : > { %14486 = vmatmul.mubr.msk.f32.gmra.mrb[36].mxu1 %vm297_vm0, %v17992_v35  ;;  %v18583_v35 = vld [vmem:[#allocation4 + $0x181] sm:$0xff] }
 0x575   : > { %14488 = vmatprep.mubr.msk.f32.mxu1 %vm297_vm0, %v18000_v25  ;;  %v18587_v25 = vld [vmem:[#allocation4 + $0x189] sm:$0xff] }
 0x578   : > { %14489 = vmatmul.mubr.msk.f32.gmra.mrb[38].mxu1 %vm297_vm0, %v18006_v3  ;;  %v12152_v3 = vld [vmem:[%s19017_s5 + $0xd0] sm:$0xff] }
 0x579   : > { %14491 = vmatprep.mubr.msk.f32.mxu1 %vm297_vm0, %v18014_v47  ;;  %v12153_v47 = vld [vmem:[%s19017_s5 + $0xd8] sm:$0xff] }
 0x57c   : > { %14492 = vmatmul.mubr.msk.f32.gmra.mrb[40].mxu1 %vm297_vm0, %v18020_v60  ;;  %v14947_v60 = vpack.c.bf16 %v12153_v47, %v12152_v3  ;;  %v19159_v3 = vld [vmem:[#allocation32_spill] sm:$0xff]  ;;  %v19160_v47 = vld [vmem:[#allocation33_spill] sm:$0xff] }
 0x57d   : > { %14494 = vmatprep.mubr.msk.f32.mxu1 %vm297_vm0, %v18028_v40  ;;  %v12186_v40 = vld [vmem:[%s19017_s5 + $0xe0] sm:$0xff] }
 0x580   : > { %14495 = vmatmul.mubr.msk.f32.gmra.mrb[42].mxu1 %vm297_vm0, %v18034_v63  ;;  %v12187_v63 = vld [vmem:[%s19017_s5 + $0xe8] sm:$0xff] }
 0x581   : > { %14497 = vmatprep.mubr.msk.f32.mxu1 %vm297_vm0, %v18042_v55  ;;  %v19140_v55 = vld [vmem:[#allocation13_spill] sm:$0xff] }
 0x584   : > { %14498 = vmatmul.mubr.msk.f32.gmra.mrb[44].mxu1 %vm297_vm0, %v18048_v5  ;;  %v14951_v5 = vpack.c.bf16 %v12187_v63, %v12186_v40  ;;  %v19162_v40 = vld [vmem:[#allocation35_spill] sm:$0xff]  ;;  %v19163_v63 = vld [vmem:[#allocation36_spill] sm:$0xff] }
 0x585   : > { %14500 = vmatprep.mubr.msk.f32.mxu1 %vm297_vm0, %v18056_v57  ;;  %v19141_v57 = vld [vmem:[#allocation14_spill] sm:$0xff] }
 0x588   : > { %14501 = vmatmul.mubr.msk.f32.gmra.mrb[46].mxu1 %vm297_vm0, %v18062_v33  ;;  %v19142_v33 = vld [vmem:[#allocation15_spill] sm:$0xff] }
 0x589   : > { %14503 = vmatprep.mubr.msk.f32.mxu1 %vm297_vm0, %v18070_v56  ;;  %v19143_v56 = vld [vmem:[#allocation16_spill] sm:$0xff] }
 0x58c   : > { %14504 = vmatmul.mubr.msk.f32.gmra.mrb[48].mxu1 %vm297_vm0, %v18076_v12  ;;  %v19144_v12 = vld [vmem:[#allocation17_spill] sm:$0xff] }
 0x58d   : > { %14506 = vmatprep.mubr.msk.f32.mxu1 %vm297_vm0, %v18084_v61  ;;  %v19145_v61 = vld [vmem:[#allocation18_spill] sm:$0xff] }
 0x590   : > { %14507 = vmatmul.mubr.msk.f32.gmra.mrb[50].mxu1 %vm297_vm0, %v18090_v42  ;;  %v19146_v42 = vld [vmem:[#allocation19_spill] sm:$0xff] }
 0x591   : > { %14509 = vmatprep.mubr.msk.f32.mxu1 %vm297_vm0, %v18098_v0  ;;  %v19147_v0 = vld [vmem:[#allocation20_spill] sm:$0xff] }
 0x594   : > { %14510 = vmatmul.mubr.msk.f32.gmra.mrb[52].mxu1 %vm297_vm0, %v18104_v48  ;;  %v19148_v48 = vld [vmem:[#allocation21_spill] sm:$0xff] }
 0x595   : > { %14512 = vmatprep.mubr.msk.f32.mxu1 %vm297_vm0, %v18112_v27  ;;  %v19149_v27 = vld [vmem:[#allocation22_spill] sm:$0xff] }
 0x598   : > { %14513 = vmatmul.mubr.msk.f32.gmra.mrb[54].mxu1 %vm297_vm0, %v18118_v54 }
 0x599   : > { %14515 = vmatprep.mubr.msk.f32.mxu1 %vm297_vm0, %v18126_v43 }
 0x59c   : > { %14516 = vmatmul.mubr.msk.f32.gmra.mrb[56].mxu1 %vm297_vm0, %v19135_v51 }
 0x59d   : > { %14518 = vmatprep.mubr.msk.f32.mxu1 %vm297_vm0, %v19136_v21 }
 0x5a0   : > { %14519 = vmatmul.mubr.msk.f32.gmra.mrb[58].mxu1 %vm297_vm0, %v19137_v13 }
 0x5a1   : > { %14521 = vmatprep.mubr.msk.f32.mxu1 %vm297_vm0, %v19138_v15 }
 0x5a4   : > { %14522 = vmatmul.mubr.msk.f32.gmra.mrb[60].mxu1 %vm297_vm0, %v19139_v62 }
 0x5a5   : > { %14524 = vmatprep.mubr.msk.f32.mxu1 %vm297_vm0, %v18583_v35 }
 0x5a8   : > { %14525 = vmatmul.mubr.msk.f32.gmra.mrb[62].mxu1 %vm297_vm0, %v18587_v25 }
 0x5a9   : > { %14535 = vmatprep.mubr.msk.f32.mxu1 %vm297_vm0, %v18306_v4  ;;  %v19150_v4 = vld [vmem:[#allocation23_spill] sm:$0xff] }
 0x5ac   : > { %14536 = vmatmul.mubr.msk.f32.vlgmr.msra.gmra.mrb[32].mxu1 %vm297_vm0, %v18313_v44  ;;  %v19151_v44 = vld [vmem:[#allocation24_spill] sm:$0xff] }
 0x5ad   : > { %14946 = vmatpush3.bf16.msra.mxu1 %v14943_v58  ;;  %14538 = vmatprep.mubr.msk.f32.mxu1 %vm297_vm0, %v19140_v55  ;;  %v19158_v58 = vld [vmem:[#allocation31_spill] sm:$0xff] }
 0x5ae   : > { %14948 = vmatprep.subr.bf16.mxu1 %v14947_v60 }
 0x5b0   : > { %14539 = vmatmul.mubr.msk.f32.gmra.mrb[34].mxu1 %vm297_vm0, %v19141_v57 }
 0x5b1   : > { %14541 = vmatprep.mubr.msk.f32.mxu1 %vm297_vm0, %v19142_v33  ;;  %14950 = vmatpush3.bf16.msra.mxu1 %v14947_v60  ;;  %v19161_v60 = vld [vmem:[#allocation34_spill] sm:$0xff] }
 0x5b2   : > { %14952 = vmatprep.subr.bf16.mxu1 %v14951_v5 }
 0x5b4   : > { %14542 = vmatmul.mubr.msk.f32.gmra.mrb[36].mxu1 %vm297_vm0, %v19143_v56 }
 0x5b5   : > { %14544 = vmatprep.mubr.msk.f32.mxu1 %vm297_vm0, %v19144_v12 }
 0x5b8   : > { %14545 = vmatmul.mubr.msk.f32.gmra.mrb[38].mxu1 %vm297_vm0, %v19145_v61 }
 0x5b9   : > { %14547 = vmatprep.mubr.msk.f32.mxu1 %vm297_vm0, %v19146_v42 }
 0x5bc   : > { %14548 = vmatmul.mubr.msk.f32.gmra.mrb[40].mxu1 %vm297_vm0, %v19147_v0 }
 0x5bd   : > { %14550 = vmatprep.mubr.msk.f32.mxu1 %vm297_vm0, %v19148_v48 }
 0x5c0   : > { %14551 = vmatmul.mubr.msk.f32.gmra.mrb[42].mxu1 %vm297_vm0, %v19149_v27 }
 0x5c1   : > { %14553 = vmatprep.mubr.msk.f32.mxu1 %vm297_vm0, %v19150_v4 }
 0x5c4   : > { %14554 = vmatmul.mubr.msk.f32.gmra.mrb[44].mxu1 %vm297_vm0, %v19151_v44 }
 0x5c5   : > { %14556 = vmatprep.mubr.msk.f32.mxu1 %vm297_vm0, %v19152_v52 }
 0x5c8   : > { %14557 = vmatmul.mubr.msk.f32.gmra.mrb[46].mxu1 %vm297_vm0, %v19153_v22 }
 0x5c9   : > { %14559 = vmatprep.mubr.msk.f32.mxu1 %vm297_vm0, %v19154_v45 }
 0x5cc   : > { %14560 = vmatmul.mubr.msk.f32.gmra.mrb[48].mxu1 %vm297_vm0, %v19155_v53 }
 0x5cd   : > { %14562 = vmatprep.mubr.msk.f32.mxu1 %vm297_vm0, %v19156_v29  ;;  %v19164_v29 = vld [vmem:[#allocation37_spill] sm:$0xff] }
 0x5d0   : > { %14563 = vmatmul.mubr.msk.f32.gmra.mrb[50].mxu1 %vm297_vm0, %v19157_v9  ;;  %v19165_v9 = vld [vmem:[#allocation38_spill] sm:$0xff] }
 0x5d1   : > { %14565 = vmatprep.mubr.msk.f32.mxu1 %vm297_vm0, %v19158_v58  ;;  %v19166_v58 = vld [vmem:[#allocation39_spill] sm:$0xff] }
 0x5d4   : > { %14566 = vmatmul.mubr.msk.f32.gmra.mrb[52].mxu1 %vm297_vm0, %v19159_v3  ;;  %v19167_v3 = vld [vmem:[#allocation40_spill] sm:$0xff] }
 0x5d5   : > { %14568 = vmatprep.mubr.msk.f32.mxu1 %vm297_vm0, %v19160_v47  ;;  %v18663_v47 = vld [vmem:[#allocation4 + $0x182] sm:$0xff] }
 0x5d6   : > { %19168 = vst [vmem:[#allocation8_spill] sm:$0xff] %v18663_v47 }
 0x5d8   : > { %14569 = vmatmul.mubr.msk.f32.gmra.mrb[54].mxu1 %vm297_vm0, %v19161_v60 }
 0x5d9   : > { %14571 = vmatprep.mubr.msk.f32.mxu1 %vm297_vm0, %v19162_v40  ;;  %v18667_v40 = vld [vmem:[#allocation4 + $0x18a] sm:$0xff] }
 0x5da   : > { %19169 = vst [vmem:[#allocation9_spill] sm:$0xff] %v18667_v40 }
 0x5dc   : > { %14572 = vmatmul.mubr.msk.f32.gmra.mrb[56].mxu1 %vm297_vm0, %v19163_v63 }
 0x5dd   : > { %14574 = vmatprep.mubr.msk.f32.mxu1 %vm297_vm0, %v19164_v29  ;;  %v12188_v29 = vld [vmem:[%s19017_s5 + $0xf0] sm:$0xff] }
 0x5e0   : > { %14575 = vmatmul.mubr.msk.f32.gmra.mrb[58].mxu1 %vm297_vm0, %v19165_v9  ;;  %v12189_v9 = vld [vmem:[%s19017_s5 + $0xf8] sm:$0xff] }
 0x5e1   : > { %14577 = vmatprep.mubr.msk.f32.mxu1 %vm297_vm0, %v19166_v58  ;;  %v12223_v58 = vld [vmem:[%s19017_s5 + $0x108] sm:$0xff] }
 0x5e4   : > { %14578 = vmatmul.mubr.msk.f32.gmra.mrb[60].mxu1 %vm297_vm0, %v19167_v3  ;;  %v14955_v3 = vpack.c.bf16 %v12189_v9, %v12188_v29 }
 0x5e5   : > { %14580 = vmatprep.mubr.msk.f32.mxu1 %vm297_vm0, %v18663_v47  ;;  %v12222_v47 = vld [vmem:[%s19017_s5 + $0x100] sm:$0xff] }
 0x5e8   : > { %14581 = vmatmul.mubr.msk.f32.gmra.mrb[62].mxu1 %vm297_vm0, %v18667_v40  ;;  %v14959_v40 = vpack.c.bf16 %v12223_v58, %v12222_v47 }
 0x5e9   : > { %14591 = vmatprep.mubr.msk.f32.mxu1 %vm297_vm0, %v18179_v36  ;;  %v9957_v36 = vld [vmem:[#allocation4 + $0x198] sm:$0xff] }
 0x5ec   : > { %14592 = vmatmul.mubr.msk.f32.vlgmr.msra.gmra.mrb[32].mxu1 %vm297_vm0, %v18184_v17  ;;  %v9958_v17 = vld [vmem:[#allocation4 + $0x1a0] sm:$0xff] }
 0x5ed   : > { %14954 = vmatpush3.bf16.msra.mxu1 %v14951_v5  ;;  %14594 = vmatprep.mubr.msk.f32.mxu1 %vm297_vm0, %v18188_v16  ;;  %v12224_v16 = vld [vmem:[%s19017_s5 + $0x110] sm:$0xff]  ;;  %v19181_v5 = vld [vmem:[#allocation9_spill] sm:$0xff] }
 0x5ee   : > { %14956 = vmatprep.subr.bf16.mxu1 %v14955_v3 }
 0x5f0   : > { %14595 = vmatmul.mubr.msk.f32.gmra.mrb[34].mxu1 %vm297_vm0, %v18192_v38  ;;  %v12225_v38 = vld [vmem:[%s19017_s5 + $0x118] sm:$0xff] }
 0x5f1   : > { %14597 = vmatprep.mubr.msk.f32.mxu1 %vm297_vm0, %v18196_v19  ;;  %14958 = vmatpush3.bf16.msra.mxu1 %v14955_v3  ;;  %v10317_v19 = vld [vmem:[#allocation4 + $0x31] sm:$0xff] }
 0x5f2   : > { %14960 = vmatprep.subr.bf16.mxu1 %v14959_v40 }
 0x5f4   : > { %14598 = vmatmul.mubr.msk.f32.gmra.mrb[36].mxu1 %vm297_vm0, %v18200_v49  ;;  %v14963_v49 = vpack.c.bf16 %v12225_v38, %v12224_v16 }
 0x5f5   : > { %14600 = vmatprep.mubr.msk.f32.mxu1 %vm297_vm0, %v18204_v59  ;;  %v10318_v59 = vld [vmem:[#allocation4 + $0x39] sm:$0xff] }
 0x5f8   : > { %14601 = vmatmul.mubr.msk.f32.gmra.mrb[38].mxu1 %vm297_vm0, %v18208_v6  ;;  %v10319_v6 = vld [vmem:[#allocation4 + $0x49] sm:$0xff] }
 0x5f9   : > { %14603 = vmatprep.mubr.msk.f32.mxu1 %vm297_vm0, %v18212_v7  ;;  %v10320_v7 = vld [vmem:[#allocation4 + $0x51] sm:$0xff] }
 0x5fc   : > { %14604 = vmatmul.mubr.msk.f32.gmra.mrb[40].mxu1 %vm297_vm0, %v18216_v50  ;;  %v10321_v50 = vld [vmem:[#allocation4 + $0x61] sm:$0xff] }
 0x5fd   : > { %14606 = vmatprep.mubr.msk.f32.mxu1 %vm297_vm0, %v18220_v18  ;;  %v10322_v18 = vld [vmem:[#allocation4 + $0x69] sm:$0xff] }
 0x600   : > { %14607 = vmatmul.mubr.msk.f32.gmra.mrb[42].mxu1 %vm297_vm0, %v18224_v37  ;;  %v10323_v37 = vld [vmem:[#allocation4 + $0x79] sm:$0xff] }
 0x601   : > { %14609 = vmatprep.mubr.msk.f32.mxu1 %vm297_vm0, %v18228_v24  ;;  %v10324_v24 = vld [vmem:[#allocation4 + $0x81] sm:$0xff] }
 0x604   : > { %14610 = vmatmul.mubr.msk.f32.gmra.mrb[44].mxu1 %vm297_vm0, %v18232_v20  ;;  %v10325_v20 = vld [vmem:[#allocation4 + $0x91] sm:$0xff] }
 0x605   : > { %14612 = vmatprep.mubr.msk.f32.mxu1 %vm297_vm0, %v18236_v30  ;;  %v10326_v30 = vld [vmem:[#allocation4 + $0x99] sm:$0xff] }
 0x608   : > { %14613 = vmatmul.mubr.msk.f32.gmra.mrb[46].mxu1 %vm297_vm0, %v18240_v23  ;;  %v10327_v23 = vld [vmem:[#allocation4 + $0xa9] sm:$0xff] }
 0x609   : > { %14615 = vmatprep.mubr.msk.f32.mxu1 %vm297_vm0, %v18244_v41  ;;  %v10328_v41 = vld [vmem:[#allocation4 + $0xb1] sm:$0xff] }
 0x60c   : > { %14616 = vmatmul.mubr.msk.f32.gmra.mrb[48].mxu1 %vm297_vm0, %v18248_v8  ;;  %v10329_v8 = vld [vmem:[#allocation4 + $0xc1] sm:$0xff] }
 0x60d   : > { %14618 = vmatprep.mubr.msk.f32.mxu1 %vm297_vm0, %v18252_v26  ;;  %v10330_v26 = vld [vmem:[#allocation4 + $0xc9] sm:$0xff] }
 0x610   : > { %14619 = vmatmul.mubr.msk.f32.gmra.mrb[50].mxu1 %vm297_vm0, %v18256_v2  ;;  %v10331_v2 = vld [vmem:[#allocation4 + $0xd9] sm:$0xff] }
 0x611   : > { %14621 = vmatprep.mubr.msk.f32.mxu1 %vm297_vm0, %v18260_v32  ;;  %v10332_v32 = vld [vmem:[#allocation4 + $0xe1] sm:$0xff] }
 0x614   : > { %14622 = vmatmul.mubr.msk.f32.gmra.mrb[52].mxu1 %vm297_vm0, %v18264_v28  ;;  %v10333_v28 = vld [vmem:[#allocation4 + $0xf1] sm:$0xff] }
 0x615   : > { %14624 = vmatprep.mubr.msk.f32.mxu1 %vm297_vm0, %v18268_v1  ;;  %v10334_v1 = vld [vmem:[#allocation4 + $0xf9] sm:$0xff] }
 0x618   : > { %14625 = vmatmul.mubr.msk.f32.gmra.mrb[54].mxu1 %vm297_vm0, %v18272_v46  ;;  %v10335_v46 = vld [vmem:[#allocation4 + $0x109] sm:$0xff] }
 0x619   : > { %14627 = vmatprep.mubr.msk.f32.mxu1 %vm297_vm0, %v18276_v10  ;;  %v10336_v10 = vld [vmem:[#allocation4 + $0x111] sm:$0xff] }
 0x61c   : > { %14628 = vmatmul.mubr.msk.f32.gmra.mrb[56].mxu1 %vm297_vm0, %v18280_v14  ;;  %v10337_v14 = vld [vmem:[#allocation4 + $0x121] sm:$0xff] }
 0x61d   : > { %14630 = vmatprep.mubr.msk.f32.mxu1 %vm297_vm0, %v18284_v39  ;;  %v19170_v39 = vld [vmem:[#allocation29_spill] sm:$0xff] }
 0x620   : > { %14631 = vmatmul.mubr.msk.f32.gmra.mrb[58].mxu1 %vm297_vm0, %v18288_v34  ;;  %v19171_v34 = vld [vmem:[#allocation30_spill] sm:$0xff] }
 0x621   : > { %14633 = vmatprep.mubr.msk.f32.mxu1 %vm297_vm0, %v18503_v31  ;;  %v19172_v31 = vld [vmem:[#allocation31_spill] sm:$0xff] }
 0x624   : > { %14634 = vmatmul.mubr.msk.f32.gmra.mrb[60].mxu1 %vm297_vm0, %v18507_v11  ;;  %v19173_v11 = vld [vmem:[#allocation32_spill] sm:$0xff] }
 0x625   : > { %14636 = vmatprep.mubr.msk.f32.mxu1 %vm297_vm0, %v9957_v36 }
 0x628   : > { %14637 = vmatmul.mubr.msk.f32.gmra.mrb[62].mxu1 %vm297_vm0, %v9958_v17 }
 0x629   : > { %14647 = vmatprep.mubr.msk.f32.mxu1 %vm297_vm0, %v10317_v19 }
 0x62c   : > { %14648 = vmatmul.mubr.msk.f32.vlgmr.msra.gmra.mrb[32].mxu1 %vm297_vm0, %v10318_v59 }
 0x62d   : > { %14962 = vmatpush3.bf16.msra.mxu1 %v14959_v40  ;;  %14650 = vmatprep.mubr.msk.f32.mxu1 %vm297_vm0, %v10319_v6 }
 0x62e   : > { %14964 = vmatprep.subr.bf16.mxu1 %v14963_v49 }
 0x630   : > { %14651 = vmatmul.mubr.msk.f32.gmra.mrb[34].mxu1 %vm297_vm0, %v10320_v7 }
 0x631   : > { %14653 = vmatprep.mubr.msk.f32.mxu1 %vm297_vm0, %v10321_v50  ;;  %14966 = vmatpush3.bf16.msra.mxu1 %v14963_v49 }
 0x634   : > { %14654 = vmatmul.mubr.msk.f32.gmra.mrb[36].mxu1 %vm297_vm0, %v10322_v18 }
 0x635   : > { %14656 = vmatprep.mubr.msk.f32.mxu1 %vm297_vm0, %v10323_v37 }
 0x638   : > { %14657 = vmatmul.mubr.msk.f32.gmra.mrb[38].mxu1 %vm297_vm0, %v10324_v24 }
 0x639   : > { %14659 = vmatprep.mubr.msk.f32.mxu1 %vm297_vm0, %v10325_v20 }
 0x63c   : > { %14660 = vmatmul.mubr.msk.f32.gmra.mrb[40].mxu1 %vm297_vm0, %v10326_v30 }
 0x63d   : > { %14662 = vmatprep.mubr.msk.f32.mxu1 %vm297_vm0, %v10327_v23 }
 0x640   : > { %14663 = vmatmul.mubr.msk.f32.gmra.mrb[42].mxu1 %vm297_vm0, %v10328_v41 }
 0x641   : > { %14665 = vmatprep.mubr.msk.f32.mxu1 %vm297_vm0, %v10329_v8 }
 0x644   : > { %14666 = vmatmul.mubr.msk.f32.gmra.mrb[44].mxu1 %vm297_vm0, %v10330_v26 }
 0x645   : > { %14668 = vmatprep.mubr.msk.f32.mxu1 %vm297_vm0, %v10331_v2 }
 0x648   : > { %14669 = vmatmul.mubr.msk.f32.gmra.mrb[46].mxu1 %vm297_vm0, %v10332_v32 }
 0x649   : > { %14671 = vmatprep.mubr.msk.f32.mxu1 %vm297_vm0, %v10333_v28 }
 0x64c   : > { %14672 = vmatmul.mubr.msk.f32.gmra.mrb[48].mxu1 %vm297_vm0, %v10334_v1 }
 0x64d   : > { %14674 = vmatprep.mubr.msk.f32.mxu1 %vm297_vm0, %v10335_v46 }
 0x650   : > { %14675 = vmatmul.mubr.msk.f32.gmra.mrb[50].mxu1 %vm297_vm0, %v10336_v10 }
 0x651   : > { %14677 = vmatprep.mubr.msk.f32.mxu1 %vm297_vm0, %v10337_v14 }
 0x654   : > { %14678 = vmatmul.mubr.msk.f32.gmra.mrb[52].mxu1 %vm297_vm0, %v18118_v54  ;;  %v10347_v54 = vld [vmem:[#allocation4 + $0x199] sm:$0xff] }
 0x655   : > { %14680 = vmatprep.mubr.msk.f32.mxu1 %vm297_vm0, %v18126_v43  ;;  %v10348_v43 = vld [vmem:[#allocation4 + $0x1a1] sm:$0xff] }
 0x658   : > { %14681 = vmatmul.mubr.msk.f32.gmra.mrb[54].mxu1 %vm297_vm0, %v19135_v51  ;;  %v19174_v51 = vld [vmem:[#allocation33_spill] sm:$0xff] }
 0x659   : > { %14683 = vmatprep.mubr.msk.f32.mxu1 %vm297_vm0, %v19136_v21  ;;  %v19175_v21 = vld [vmem:[#allocation35_spill] sm:$0xff] }
 0x65c   : > { %14684 = vmatmul.mubr.msk.f32.gmra.mrb[56].mxu1 %vm297_vm0, %v19137_v13  ;;  %v19176_v13 = vld [vmem:[#allocation37_spill] sm:$0xff] }
 0x65d   : > { %14686 = vmatprep.mubr.msk.f32.mxu1 %vm297_vm0, %v19138_v15  ;;  %v19177_v15 = vld [vmem:[#allocation38_spill] sm:$0xff] }
 0x660   : > { %14687 = vmatmul.mubr.msk.f32.gmra.mrb[58].mxu1 %vm297_vm0, %v19139_v62  ;;  %v19178_v62 = vld [vmem:[#allocation39_spill] sm:$0xff] }
 0x661   : > { %14689 = vmatprep.mubr.msk.f32.mxu1 %vm297_vm0, %v18583_v35  ;;  %v19179_v35 = vld [vmem:[#allocation40_spill] sm:$0xff] }
 0x664   : > { %14690 = vmatmul.mubr.msk.f32.gmra.mrb[60].mxu1 %vm297_vm0, %v18587_v25  ;;  %v19180_v25 = vld [vmem:[#allocation8_spill] sm:$0xff] }
 0x665   : > { %14692 = vmatprep.mubr.msk.f32.mxu1 %vm297_vm0, %v10347_v54 }
 0x668   : > { %14693 = vmatmul.mubr.msk.f32.gmra.mrb[62].mxu1 %vm297_vm0, %v10348_v43 }
 0x669   : > { %14703 = vmatprep.mubr.msk.f32.mxu1 %vm297_vm0, %v19140_v55  ;;  %v10737_v55 = vld [vmem:[#allocation4 + $0x19a] sm:$0xff] }
 0x66c   : > { %14704 = vmatmul.mubr.msk.f32.vlgmr.msra.gmra.mrb[32].mxu1 %vm297_vm0, %v19141_v57  ;;  %v10738_v57 = vld [vmem:[#allocation4 + $0x1a2] sm:$0xff] }
 0x66d   : > { %14706 = vmatprep.mubr.msk.f32.mxu1 %vm297_vm0, %v19142_v33  ;;  %v18858_v33 = vld [vmem:[%s19018_s6] ss:$0 sm:$0xff] }
 0x670   : > { %14707 = vmatmul.mubr.msk.f32.gmra.mrb[34].mxu1 %vm297_vm0, %v19143_v56 }
 0x671   : > { %14709 = vmatprep.mubr.msk.f32.mxu1 %vm297_vm0, %v19144_v12 }
 0x674   : > { %14710 = vmatmul.mubr.msk.f32.gmra.mrb[36].mxu1 %vm297_vm0, %v19145_v61 }
 0x675   : > { %14712 = vmatprep.mubr.msk.f32.mxu1 %vm297_vm0, %v19146_v42 }
 0x678   : > { %14713 = vmatmul.mubr.msk.f32.gmra.mrb[38].mxu1 %vm297_vm0, %v19147_v0 }
 0x679   : > { %14715 = vmatprep.mubr.msk.f32.mxu1 %vm297_vm0, %v19148_v48 }
 0x67c   : > { %14716 = vmatmul.mubr.msk.f32.gmra.mrb[40].mxu1 %vm297_vm0, %v19149_v27 }
 0x67d   : > { %14718 = vmatprep.mubr.msk.f32.mxu1 %vm297_vm0, %v19150_v4 }
 0x680   : > { %14719 = vmatmul.mubr.msk.f32.gmra.mrb[42].mxu1 %vm297_vm0, %v19151_v44 }
 0x681   : > { %14721 = vmatprep.mubr.msk.f32.mxu1 %vm297_vm0, %v19152_v52 }
 0x684   : > { %14722 = vmatmul.mubr.msk.f32.gmra.mrb[44].mxu1 %vm297_vm0, %v19153_v22 }
 0x685   : > { %14724 = vmatprep.mubr.msk.f32.mxu1 %vm297_vm0, %v19154_v45 }
 0x688   : > { %14725 = vmatmul.mubr.msk.f32.gmra.mrb[46].mxu1 %vm297_vm0, %v19155_v53 }
 0x689   : > { %14727 = vmatprep.mubr.msk.f32.mxu1 %vm297_vm0, %v19170_v39 }
 0x68c   : > { %14728 = vmatmul.mubr.msk.f32.gmra.mrb[48].mxu1 %vm297_vm0, %v19171_v34 }
 0x68d   : > { %14730 = vmatprep.mubr.msk.f32.mxu1 %vm297_vm0, %v19172_v31 }
 0x690   : > { %14731 = vmatmul.mubr.msk.f32.gmra.mrb[50].mxu1 %vm297_vm0, %v19173_v11 }
 0x691   : > { %14733 = vmatprep.mubr.msk.f32.mxu1 %vm297_vm0, %v19174_v51 }
 0x694   : > { %14734 = vmatmul.mubr.msk.f32.gmra.mrb[52].mxu1 %vm297_vm0, %v19161_v60 }
 0x695   : > { %14736 = vmatprep.mubr.msk.f32.mxu1 %vm297_vm0, %v19175_v21 }
 0x698   : > { %14737 = vmatmul.mubr.msk.f32.gmra.mrb[54].mxu1 %vm297_vm0, %v19163_v63 }
 0x699   : > { %14739 = vmatprep.mubr.msk.f32.mxu1 %vm297_vm0, %v19176_v13 }
 0x69c   : > { %14740 = vmatmul.mubr.msk.f32.gmra.mrb[56].mxu1 %vm297_vm0, %v19177_v15 }
 0x69d   : > { %14742 = vmatprep.mubr.msk.f32.mxu1 %vm297_vm0, %v19178_v62 }
 0x6a0   : > { %14743 = vmatmul.mubr.msk.f32.gmra.mrb[58].mxu1 %vm297_vm0, %v19179_v35 }
 0x6a1   : > { %14745 = vmatprep.mubr.msk.f32.mxu1 %vm297_vm0, %v19180_v25 }
 0x6a4   : > { %14746 = vmatmul.mubr.msk.f32.gmra.mrb[60].mxu1 %vm297_vm0, %v19181_v5 }
 0x6a5   : > { %14748 = vmatprep.mubr.msk.f32.mxu1 %vm297_vm0, %v10737_v55 }
 0x6a8   : > { %14749 = vmatmul.mubr.msk.f32.gmra.mrb[62].mxu1 %vm297_vm0, %v10738_v57 }
 0x73f   : > { %v14705_v56 = vpop.f32.mrb[32].mxu1 }
 0x740   : > { %v11105_v12 = vadd.f32 %v14705_v56, %v18858_v33  ;;  %v10906_v61 = vpop.f32.mrb[33].mxu1 }
 0x741   : > { %v11104_v42 = vadd.f32 %v18858_v33, %v10906_v61 }
 0x742   : > { %v11137_v0 = vmax.f32 %v11105_v12, 0.0 }
 0x743   : > { %v11136_v48 = vmax.f32 %v11104_v42, 0.0  ;;  %v14708_v27 = vpop.f32.mrb[34].mxu1 }
 0x744   : > { %11169 = vst.msk [vmem:[%s18864_s20 + $0x8] sm:$0xff] %vm297_vm0, %v11137_v0  ;;  %v11107_v4 = vadd.f32 %v14708_v27, %v18858_v33  ;;  %v10916_v44 = vpop.f32.mrb[35].mxu1 }
 0x745   : > { %11168 = vst.msk [vmem:[%s18864_s20] sm:$0xff] %vm297_vm0, %v11136_v48  ;;  %v11106_v52 = vadd.f32 %v18858_v33, %v10916_v44 }
 0x746   : > { %v11139_v22 = vmax.f32 %v11107_v4, 0.0 }
 0x747   : > { %v11138_v45 = vmax.f32 %v11106_v52, 0.0  ;;  %v14711_v53 = vpop.f32.mrb[36].mxu1 }
 0x748   : > { %11171 = vst.msk [vmem:[%s18864_s20 + $0x18] sm:$0xff] %vm297_vm0, %v11139_v22  ;;  %v11109_v29 = vadd.f32 %v14711_v53, %v18858_v33  ;;  %v10926_v9 = vpop.f32.mrb[37].mxu1 }
 0x749   : > { %11170 = vst.msk [vmem:[%s18864_s20 + $0x10] sm:$0xff] %vm297_vm0, %v11138_v45  ;;  %v11108_v58 = vadd.f32 %v18858_v33, %v10926_v9 }
 0x74a   : > { %v11141_v3 = vmax.f32 %v11109_v29, 0.0 }
 0x74b   : > { %v11140_v47 = vmax.f32 %v11108_v58, 0.0  ;;  %v14714_v60 = vpop.f32.mrb[38].mxu1 }
 0x74c   : > { %11173 = vst.msk [vmem:[%s18864_s20 + $0x28] sm:$0xff] %vm297_vm0, %v11141_v3  ;;  %v11111_v40 = vadd.f32 %v14714_v60, %v18858_v33  ;;  %v10936_v63 = vpop.f32.mrb[39].mxu1 }
 0x74d   : > { %11172 = vst.msk [vmem:[%s18864_s20 + $0x20] sm:$0xff] %vm297_vm0, %v11140_v47  ;;  %v11110_v36 = vadd.f32 %v18858_v33, %v10936_v63 }
 0x74e   : > { %v11143_v17 = vmax.f32 %v11111_v40, 0.0 }
 0x74f   : > { %v11142_v16 = vmax.f32 %v11110_v36, 0.0  ;;  %v14717_v38 = vpop.f32.mrb[40].mxu1 }
 0x750   : > { %11175 = vst.msk [vmem:[%s18864_s20 + $0x38] sm:$0xff] %vm297_vm0, %v11143_v17  ;;  %v11113_v19 = vadd.f32 %v14717_v38, %v18858_v33  ;;  %v10946_v49 = vpop.f32.mrb[41].mxu1 }
 0x751   : > { %11174 = vst.msk [vmem:[%s18864_s20 + $0x30] sm:$0xff] %vm297_vm0, %v11142_v16  ;;  %v11112_v59 = vadd.f32 %v18858_v33, %v10946_v49 }
 0x752   : > { %v11145_v6 = vmax.f32 %v11113_v19, 0.0 }
 0x753   : > { %v11144_v7 = vmax.f32 %v11112_v59, 0.0  ;;  %v14720_v50 = vpop.f32.mrb[42].mxu1 }
 0x754   : > { %11177 = vst.msk [vmem:[%s18864_s20 + $0x48] sm:$0xff] %vm297_vm0, %v11145_v6  ;;  %v11115_v18 = vadd.f32 %v14720_v50, %v18858_v33  ;;  %v10956_v37 = vpop.f32.mrb[43].mxu1 }
 0x755   : > { %11176 = vst.msk [vmem:[%s18864_s20 + $0x40] sm:$0xff] %vm297_vm0, %v11144_v7  ;;  %v11114_v24 = vadd.f32 %v18858_v33, %v10956_v37 }
 0x756   : > { %v11147_v20 = vmax.f32 %v11115_v18, 0.0 }
 0x757   : > { %v11146_v30 = vmax.f32 %v11114_v24, 0.0  ;;  %v14723_v23 = vpop.f32.mrb[44].mxu1 }
 0x758   : > { %11179 = vst.msk [vmem:[%s18864_s20 + $0x58] sm:$0xff] %vm297_vm0, %v11147_v20  ;;  %v11117_v41 = vadd.f32 %v14723_v23, %v18858_v33  ;;  %v10966_v8 = vpop.f32.mrb[45].mxu1 }
 0x759   : > { %11178 = vst.msk [vmem:[%s18864_s20 + $0x50] sm:$0xff] %vm297_vm0, %v11146_v30  ;;  %v11116_v26 = vadd.f32 %v18858_v33, %v10966_v8 }
 0x75a   : > { %v11149_v2 = vmax.f32 %v11117_v41, 0.0 }
 0x75b   : > { %v11148_v32 = vmax.f32 %v11116_v26, 0.0  ;;  %v14726_v28 = vpop.f32.mrb[46].mxu1 }
 0x75c   : > { %11181 = vst.msk [vmem:[%s18864_s20 + $0x68] sm:$0xff] %vm297_vm0, %v11149_v2  ;;  %v11119_v1 = vadd.f32 %v14726_v28, %v18858_v33  ;;  %v10976_v46 = vpop.f32.mrb[47].mxu1 }
 0x75d   : > { %11180 = vst.msk [vmem:[%s18864_s20 + $0x60] sm:$0xff] %vm297_vm0, %v11148_v32  ;;  %v11118_v10 = vadd.f32 %v18858_v33, %v10976_v46 }
 0x75e   : > { %v11151_v14 = vmax.f32 %v11119_v1, 0.0 }
 0x75f   : > { %v11150_v54 = vmax.f32 %v11118_v10, 0.0  ;;  %v14729_v43 = vpop.f32.mrb[48].mxu1 }
 0x760   : > { %11183 = vst.msk [vmem:[%s18864_s20 + $0x78] sm:$0xff] %vm297_vm0, %v11151_v14  ;;  %v11121_v39 = vadd.f32 %v14729_v43, %v18858_v33  ;;  %v10986_v34 = vpop.f32.mrb[49].mxu1 }
 0x761   : > { %11182 = vst.msk [vmem:[%s18864_s20 + $0x70] sm:$0xff] %vm297_vm0, %v11150_v54  ;;  %v11120_v31 = vadd.f32 %v18858_v33, %v10986_v34 }
 0x762   : > { %v11153_v11 = vmax.f32 %v11121_v39, 0.0 }
 0x763   : > { %v11152_v51 = vmax.f32 %v11120_v31, 0.0  ;;  %v14732_v21 = vpop.f32.mrb[50].mxu1 }
 0x764   : > { %11185 = vst.msk [vmem:[%s18864_s20 + $0x88] sm:$0xff] %vm297_vm0, %v11153_v11  ;;  %v11123_v13 = vadd.f32 %v14732_v21, %v18858_v33  ;;  %v10996_v15 = vpop.f32.mrb[51].mxu1 }
 0x765   : > { %11184 = vst.msk [vmem:[%s18864_s20 + $0x80] sm:$0xff] %vm297_vm0, %v11152_v51  ;;  %v11122_v62 = vadd.f32 %v18858_v33, %v10996_v15 }
 0x766   : > { %v11155_v35 = vmax.f32 %v11123_v13, 0.0 }
 0x767   : > { %v11154_v25 = vmax.f32 %v11122_v62, 0.0  ;;  %v14735_v55 = vpop.f32.mrb[52].mxu1 }
 0x768   : > { %11187 = vst.msk [vmem:[%s18864_s20 + $0x98] sm:$0xff] %vm297_vm0, %v11155_v35  ;;  %v11125_v5 = vadd.f32 %v14735_v55, %v18858_v33  ;;  %v11006_v57 = vpop.f32.mrb[53].mxu1 }
 0x769   : > { %11186 = vst.msk [vmem:[%s18864_s20 + $0x90] sm:$0xff] %vm297_vm0, %v11154_v25  ;;  %v11124_v56 = vadd.f32 %v18858_v33, %v11006_v57 }
 0x76a   : > { %v11157_v12 = vmax.f32 %v11125_v5, 0.0 }
 0x76b   : > { %v11156_v61 = vmax.f32 %v11124_v56, 0.0  ;;  %v14738_v42 = vpop.f32.mrb[54].mxu1 }
 0x76c   : > { %11189 = vst.msk [vmem:[%s18864_s20 + $0xa8] sm:$0xff] %vm297_vm0, %v11157_v12  ;;  %v11127_v0 = vadd.f32 %v14738_v42, %v18858_v33  ;;  %v11016_v48 = vpop.f32.mrb[55].mxu1 }
 0x76d   : > { %11188 = vst.msk [vmem:[%s18864_s20 + $0xa0] sm:$0xff] %vm297_vm0, %v11156_v61  ;;  %v11126_v27 = vadd.f32 %v18858_v33, %v11016_v48 }
 0x76e   : > { %v11159_v4 = vmax.f32 %v11127_v0, 0.0 }
 0x76f   : > { %v11158_v44 = vmax.f32 %v11126_v27, 0.0  ;;  %v14741_v52 = vpop.f32.mrb[56].mxu1 }
 0x770   : > { %11191 = vst.msk [vmem:[%s18864_s20 + $0xb8] sm:$0xff] %vm297_vm0, %v11159_v4  ;;  %v11129_v22 = vadd.f32 %v14741_v52, %v18858_v33  ;;  %v11026_v45 = vpop.f32.mrb[57].mxu1 }
 0x771   : > { %11190 = vst.msk [vmem:[%s18864_s20 + $0xb0] sm:$0xff] %vm297_vm0, %v11158_v44  ;;  %v11128_v53 = vadd.f32 %v18858_v33, %v11026_v45 }
 0x772   : > { %v11161_v29 = vmax.f32 %v11129_v22, 0.0 }
 0x773   : > { %v11160_v9 = vmax.f32 %v11128_v53, 0.0  ;;  %v14744_v58 = vpop.f32.mrb[58].mxu1 }
 0x774   : > { %11193 = vst.msk [vmem:[%s18864_s20 + $0xc8] sm:$0xff] %vm297_vm0, %v11161_v29  ;;  %v11131_v3 = vadd.f32 %v14744_v58, %v18858_v33  ;;  %v11036_v47 = vpop.f32.mrb[59].mxu1 }
 0x775   : > { %11192 = vst.msk [vmem:[%s18864_s20 + $0xc0] sm:$0xff] %vm297_vm0, %v11160_v9  ;;  %v11130_v60 = vadd.f32 %v18858_v33, %v11036_v47 }
 0x776   : > { %v11163_v40 = vmax.f32 %v11131_v3, 0.0 }
 0x777   : > { %v11162_v63 = vmax.f32 %v11130_v60, 0.0  ;;  %v14747_v36 = vpop.f32.mrb[60].mxu1 }
 0x778   : > { %11195 = vst.msk [vmem:[%s18864_s20 + $0xd8] sm:$0xff] %vm297_vm0, %v11163_v40  ;;  %v11133_v17 = vadd.f32 %v14747_v36, %v18858_v33  ;;  %v11046_v16 = vpop.f32.mrb[61].mxu1 }
 0x779   : > { %11194 = vst.msk [vmem:[%s18864_s20 + $0xd0] sm:$0xff] %vm297_vm0, %v11162_v63  ;;  %v11132_v38 = vadd.f32 %v18858_v33, %v11046_v16 }
 0x77a   : > { %v11165_v19 = vmax.f32 %v11133_v17, 0.0 }
 0x77b   : > { %v11164_v49 = vmax.f32 %v11132_v38, 0.0  ;;  %v14750_v59 = vpop.f32.mrb[62].mxu1 }
 0x77c   : > { %11197 = vst.msk [vmem:[%s18864_s20 + $0xe8] sm:$0xff] %vm297_vm0, %v11165_v19  ;;  %v11135_v6 = vadd.f32 %v14750_v59, %v18858_v33  ;;  %v11056_v7 = vpop.f32.mrb[63].mxu1 }
 0x77d   : > { %11196 = vst.msk [vmem:[%s18864_s20 + $0xe0] sm:$0xff] %vm297_vm0, %v11164_v49  ;;  %v11134_v50 = vadd.f32 %v18858_v33, %v11056_v7 }
 0x77e   : > { %v11167_v18 = vmax.f32 %v11135_v6, 0.0 }
 0x77f   : > { %v11166_v37 = vmax.f32 %v11134_v50, 0.0 }
 0x780   : > { %11199 = vst.msk [vmem:[%s18864_s20 + $0xf8] sm:$0xff] %vm297_vm0, %v11167_v18 }
 0x781   : > { %11198 = vst.msk [vmem:[%s18864_s20 + $0xf0] sm:$0xff] %vm297_vm0, %v11166_v37 }
 0x782   : > { %15826 = shalt.err (!%p15823_p3)
}
 0x783   : > { %s15827_s16 = scalar_lea.hbm %s18961_s29, 4096  ;;  %s15831_s19 = scalar_lea.hbm %s19019_s7, 8192 }
 0x784   : > { %p15828_p4 = scmp.ne.s32.totalorder %s18961_s29, %s15827_s16  ;;  %p15832_p9 = scmp.lt.u32.totalorder %s18961_s29, %s19019_s7 }
 0x785   : > { %p15833_p10 = scmp.lt.u32.totalorder %s15831_s19, %s15827_s16  ;;  %p15835_p12 = scmp.lt.u32.totalorder %s15827_s16, %s18961_s29 }
 0x786   : > { %p15829_p7 = pnand %p15828_p4, %p15959_p5 }
 0x787   : > { %p15834_p11 = por %p15833_p10, %p15832_p9 }
 0x788   : > { %p15830_p8 = pneg %p15829_p7 }
 0x789   : > { %p15836_p13 = por %p15835_p12, %p15834_p11 }
 0x78b   : > { %p15837_p0 = pnand %p15836_p13, %p15830_p8 }
 0x78d   : > { %15840 = shalt.err (!%p15837_p0)
}
 0x78e   : > { %s15879_s22 = smov 128   ;;  %s15880_s23 = smov 8  }
 0x78f   : > { %15771 = dma.vmem_to_hbm [thread:$0]  (%p15959_p5), %s18963_s15, 4096, %s18961_s29, %s18971_s28, %s15879_s22, %s15879_s22, %s15880_s23  }
 0x790 PF: > { %p15777_p1 = scmp.ge.s32.totalorder %s15875_s27, 2  ;;  %s11229_s13 = sand.u32 1, %s15863_s24  }
 0x791   : > { %s11230_s14 = scalar_lea.sflag [#allocation6], %s11229_s13 }
 0x792   : > { %p15774_p2 = pnand %p15777_p1, %p15963_p6 }
 0x794   : > { %15858 = dma.done.wait (!%p15774_p2), %s11230_s14, 4096  }
 0x795   : > { %15860 = vsyncadd (!%p15774_p2), %s11230_s14, 4294963200  ;;  %p17_p3 = scmp.ge.s32.totalorder %s15946_s30, 4   ;;  %s19182_s24 = smov %s15867_s25 }
 0x796   : > { %s19183_s25 = smov %s15871_s26  ;;  %s19184_s26 = smov %s15957_s10 }
 0x797   : > { %s19185_s27 = smov %s15946_s30  ;;  %19 = sbr.rel (!%p17_p3) target bundleno = 3 (0x3), region = 116 }
 0x79e   :  { %11235 = vsyncpa [#allocation6], 1 }
 0x79f   :  { %11237 = vsyncpa [#allocation6 + $0x1], 1 }

</bundles_post_ra>
